<compile_context>
chip_gen: v6e
topology: v6e:2x2x1
jax: 0.10.0
libtpu: 0.0.40
codegen_flags: <defaults>
</compile_context>

<pallas_src>
import functools

import numpy as np
import jax
import jax.numpy as jnp
from jax import lax
from jax.experimental import pallas as pl
from jax.experimental.pallas import tpu as pltpu

_VMEM_LIMIT = 32 * 1024 * 1024


def _cparams(*sem):
    return pltpu.CompilerParams(dimension_semantics=sem,
                                vmem_limit_bytes=_VMEM_LIMIT)


# ----------------------------------------------------------------------------
# Plain-JAX glue: im2col in (K, HW) layout, zero-upsampling, weight layout
# ----------------------------------------------------------------------------

# TODO(synk): build patches with shifted VMEM reads inside the Pallas kernel to
# avoid the k^2x im2col HBM blow-up, and use a polyphase decomposition for the
# ConvTranspose2d instead of zero-upsampling (75% structural zeros).

def im2col(x, k, stride, pad):
    """x: (N, C, H, W) -> (N, C*k*k, Hout*Wout); row (K) order = (C, kh, kw)."""
    N, C, H, W = x.shape
    xp = jnp.pad(x, ((0, 0), (0, 0), (pad, pad), (pad, pad)))
    Hp, Wp = H + 2 * pad, W + 2 * pad
    Hout = (Hp - k) // stride + 1
    Wout = (Wp - k) // stride + 1
    taps = []
    for kh in range(k):
        for kw in range(k):
            taps.append(
                xp[:, :, kh:kh + stride * Hout:stride, kw:kw + stride * Wout:stride])
    p = jnp.stack(taps, axis=2)                      # (N, C, k*k, Hout, Wout)
    return p.reshape(N, C * k * k, Hout * Wout), Hout, Wout


def upsample_zero(x, stride, pad_l, pad_r):
    """Zero-insert upsample + asymmetric pad (ConvTranspose2d-as-conv)."""
    N, C, H, W = x.shape
    up = jnp.zeros((N, C, (H - 1) * stride + 1, (W - 1) * stride + 1), x.dtype)
    up = up.at[:, :, ::stride, ::stride].set(x)
    return jnp.pad(up, ((0, 0), (0, 0), (pad_l, pad_r), (pad_l, pad_r)))


def dense_weight_full_T(w):
    """PyTorch Conv2d weight (Cout, Cin, k, k) -> (Cout, Cin*k*k)."""
    Cout = w.shape[0]
    return np.ascontiguousarray(w.reshape(Cout, -1))


def dense_weight_grouped_T(w, groups):
    """Grouped Conv2d weight (Cout, Cin/g, k, k) -> block-diag (Cout, Cin*k*k)."""
    Cout, Cin_g, k, _ = w.shape
    Cin = Cin_g * groups
    Cout_g = Cout // groups
    Wd = np.zeros((Cout, Cin, k, k), np.float32)
    for co in range(Cout):
        g = co // Cout_g
        Wd[co, g * Cin_g:(g + 1) * Cin_g] = w[co]
    return Wd.reshape(Cout, Cin * k * k)


def dense_weight_convT_T(w):
    """ConvTranspose2d weight (Cin, Cout, k, k) -> equivalent-conv (Cout, Cin*k*k)."""
    Cin, Cout, k, _ = w.shape
    wf = w[:, :, ::-1, ::-1]                          # spatial flip
    return np.ascontiguousarray(wf.transpose(1, 0, 2, 3)).reshape(Cout, Cin * k * k)


# ----------------------------------------------------------------------------
# Fused Pallas kernels
# ----------------------------------------------------------------------------

def _conv_ln_act_kernel(p_ref, w_ref, b_ref, g_ref, be_ref, o_ref, *, eps, act):
    # p_ref: (1, K, HW)   w_ref: (Cout, K)   b_ref: (Cout, 1)
    # g_ref / be_ref: (Cout, HW)             o_ref: (1, Cout, HW)
    y = jnp.dot(w_ref[...], p_ref[0], preferred_element_type=jnp.float32) + b_ref[...]
    # LayerNorm over all of (C, H, W) for this sample (matches nn.LayerNorm([C,H,W])).
    mean = jnp.mean(y)
    var = jnp.mean((y - mean) ** 2)
    y = (y - mean) * lax.rsqrt(var + eps)
    y = y * g_ref[...] + be_ref[...]
    if act == "relu":
        y = jnp.maximum(y, 0.0)
    elif act == "tanh":
        y = jnp.tanh(y)
    o_ref[0] = y


def conv_ln_act(x, wT, bias, gamma, beta, *, k, stride, pad, act, eps=1e-5):
    """Conv2d (via im2col matmul) + bias + LayerNorm([C,H,W]) + activation.

    x: (N, Cin, H, W) -> (N, Cout, Hout, Wout), lane-dense (Cout, HW) compute layout.
    """
    N = x.shape[0]
    patches, Hout, Wout = im2col(x, k, stride, pad)   # (N, K, HW)
    K = patches.shape[1]
    HW = Hout * Wout
    Cout = wT.shape[0]
    out = pl.pallas_call(
        functools.partial(_conv_ln_act_kernel, eps=eps, act=act),
        out_shape=jax.ShapeDtypeStruct((N, Cout, HW), jnp.float32),
        grid=(N,),
        in_specs=[
            pl.BlockSpec((1, K, HW), lambda i: (i, 0, 0)),
            pl.BlockSpec((Cout, K), lambda i: (0, 0)),
            pl.BlockSpec((Cout, 1), lambda i: (0, 0)),
            pl.BlockSpec((Cout, HW), lambda i: (0, 0)),
            pl.BlockSpec((Cout, HW), lambda i: (0, 0)),
        ],
        out_specs=pl.BlockSpec((1, Cout, HW), lambda i: (i, 0, 0)),
        compiler_params=_cparams("parallel"),
    )(patches, wT, bias.reshape(Cout, 1), gamma, beta)
    return out.reshape(N, Cout, Hout, Wout)


def _diff_pool_kernel(cur_ref, prev_ref, diff_ref, pool_ref):
    # cur/prev: (1, 1, C, HW)   diff: (1, 1, C, HW)   pool: (1, 1, 2, HW)
    d = cur_ref[...] - prev_ref[...]
    diff_ref[...] = d
    d2 = d[0, 0]                                       # (C, HW)
    mx = jnp.max(d2, axis=0, keepdims=True)
    mn = jnp.mean(d2, axis=0, keepdims=True)
    pool_ref[...] = jnp.concatenate([mx, mn], axis=0)[None, None]


def temporal_diff_pool(F1):
    """torch.diff over T fused with ChannelPool (max/mean over C).

    F1: (B, T, C, HW) -> diff (B*(T-1), C, HW), pooled (B*(T-1), 2, HW)."""
    B, T, C, HW = F1.shape
    diff, pooled = pl.pallas_call(
        _diff_pool_kernel,
        out_shape=(jax.ShapeDtypeStruct((B, T - 1, C, HW), jnp.float32),
                   jax.ShapeDtypeStruct((B, T - 1, 2, HW), jnp.float32)),
        grid=(B, T - 1),
        in_specs=[
            pl.BlockSpec((1, 1, C, HW), lambda b, t: (b, t + 1, 0, 0)),
            pl.BlockSpec((1, 1, C, HW), lambda b, t: (b, t, 0, 0)),
        ],
        out_specs=(pl.BlockSpec((1, 1, C, HW), lambda b, t: (b, t, 0, 0)),
                   pl.BlockSpec((1, 1, 2, HW), lambda b, t: (b, t, 0, 0))),
        compiler_params=_cparams("parallel", "parallel"),
    )(F1, F1)
    return diff.reshape(B * (T - 1), C, HW), pooled.reshape(B * (T - 1), 2, HW)


def _spatial_gate_kernel(p_ref, w_ref, g_ref, be_ref, f3_ref, o_ref, *, eps):
    # p_ref: (1, 98, HW)  w_ref: (1, 98)  g/be: (1, HW)  f3: (1, C, HW)  o: (1, C, HW)
    s = jnp.dot(w_ref[...], p_ref[0], preferred_element_type=jnp.float32)   # (1, HW)
    mean = jnp.mean(s)
    var = jnp.mean((s - mean) ** 2)
    s = (s - mean) * lax.rsqrt(var + eps)
    s = s * g_ref[...] + be_ref[...]
    s = jax.nn.sigmoid(jnp.maximum(s, 0.0))            # LayerNorm -> ReLU -> Sigmoid
    o_ref[0] = f3_ref[0] * s                           # gate broadcast over channels


def spatial_gate(F3, pooled4, w_spT, gamma, beta, eps=1e-5):
    """SpatialGate: 7x7 conv on channel-pooled map + LN + ReLU + Sigmoid + multiply.

    F3: (N, C, HW); pooled4: (N, 2, H, W). Returns (N, C, HW)."""
    N, C, HW = F3.shape
    patches, _, _ = im2col(pooled4, k=7, stride=1, pad=3)         # (N, 98, HW)
    K = patches.shape[1]
    return pl.pallas_call(
        functools.partial(_spatial_gate_kernel, eps=eps),
        out_shape=jax.ShapeDtypeStruct((N, C, HW), jnp.float32),
        grid=(N,),
        in_specs=[
            pl.BlockSpec((1, K, HW), lambda i: (i, 0, 0)),
            pl.BlockSpec((1, K), lambda i: (0, 0)),
            pl.BlockSpec((1, HW), lambda i: (0, 0)),
            pl.BlockSpec((1, HW), lambda i: (0, 0)),
            pl.BlockSpec((1, C, HW), lambda i: (i, 0, 0)),
        ],
        out_specs=pl.BlockSpec((1, C, HW), lambda i: (i, 0, 0)),
        compiler_params=_cparams("parallel"),
    )(patches, w_spT, gamma, beta, F3)


# ----------------------------------------------------------------------------
# CMM forward
# ----------------------------------------------------------------------------

def cmm_forward(x, params, P):
    B, T, C, H, W = x.shape
    x0 = x.reshape(B * T, C, H, W)

    # conv2d_1: grouped conv -> LN -> ReLU -> grouped strided conv -> LN -> ReLU
    y = conv_ln_act(x0, params["w1T"], params["b1"], params["ln1_g"], params["ln1_b"],
                    k=3, stride=1, pad=1, act="relu")              # (BT, P, 36, 36)
    y = conv_ln_act(y, params["w2T"], params["b2"], params["ln2_g"], params["ln2_b"],
                    k=3, stride=2, pad=0, act="relu")              # (BT, 2P, 17, 17)

    C2, H2, W2 = 2 * P, 17, 17
    HW2 = H2 * W2
    F1 = y.reshape(B, T, C2, HW2)

    # temporal diff + ChannelPool (fused)
    F3, pooled = temporal_diff_pool(F1)                            # (N3,C2,HW2),(N3,2,HW2)
    N3 = B * (T - 1)

    # SpatialGate(17, 17) (fully fused)
    F4 = spatial_gate(F3, pooled.reshape(N3, 2, H2, W2),
                      params["w_spT"], params["ln_sp_g"], params["ln_sp_b"])
    F4 = F4.reshape(N3, C2, H2, W2)

    # conv2d_2: ConvTranspose2d(2P,P,3,s=2,op=1) as zero-upsampled conv -> LN -> Tanh
    #           -> Conv2d(P,P,3,'same') -> LN -> Tanh
    up = upsample_zero(F4, stride=2, pad_l=2, pad_r=3)             # (N3, 2P, 38, 38)
    y = conv_ln_act(up, params["wTT"], params["bT"], params["ln3_g"], params["ln3_b"],
                    k=3, stride=1, pad=0, act="tanh")              # (N3, P, 36, 36)
    y = conv_ln_act(y, params["w4T"], params["b4"], params["ln4_g"], params["ln4_b"],
                    k=3, stride=1, pad=1, act="tanh")              # (N3, P, 36, 36)

    return y.reshape(B, T - 1, P, 36, 36)


# ----------------------------------------------------------------------------
# Deterministic parameter init (shapes from CMM.__init__)
# ----------------------------------------------------------------------------

def init_params(key, P):
    ks = jax.random.split(key, 10)

    def rn(k, shape, scale=0.2):
        return np.asarray(jax.random.normal(k, shape, jnp.float32)) * scale

    w1 = rn(ks[0], (P, 1, 3, 3))               # Conv2d(3, P, 3, groups=3)
    b1 = rn(ks[1], (P,), 0.1)
    w2 = rn(ks[2], (2 * P, P // 3, 3, 3))      # Conv2d(P, 2P, 3, stride=2, groups=3)
    b2 = rn(ks[3], (2 * P,), 0.1)
    wsp = rn(ks[4], (1, 2, 7, 7))              # SpatialGate Conv2d(2, 1, 7, bias=False)
    wT = rn(ks[5], (2 * P, P, 3, 3))           # ConvTranspose2d(2P, P, 3, s=2, op=1)
    bT = rn(ks[6], (P,), 0.1)
    w4 = rn(ks[7], (P, P, 3, 3))               # Conv2d(P, P, 3, padding='same')
    b4 = rn(ks[8], (P,), 0.1)

    ones2 = lambda c, hw: jnp.ones((c, hw), jnp.float32)   # LayerNorm default init
    zeros2 = lambda c, hw: jnp.zeros((c, hw), jnp.float32)

    return dict(
        w1T=jnp.asarray(dense_weight_grouped_T(w1, 3)), b1=jnp.asarray(b1),
        w2T=jnp.asarray(dense_weight_grouped_T(w2, 3)), b2=jnp.asarray(b2),
        w_spT=jnp.asarray(dense_weight_full_T(wsp)),
        wTT=jnp.asarray(dense_weight_convT_T(wT)), bT=jnp.asarray(bT),
        w4T=jnp.asarray(dense_weight_full_T(w4)), b4=jnp.asarray(b4),
        ln1_g=ones2(P, 36 * 36), ln1_b=zeros2(P, 36 * 36),
        ln2_g=ones2(2 * P, 17 * 17), ln2_b=zeros2(2 * P, 17 * 17),
        ln_sp_g=ones2(1, 17 * 17), ln_sp_b=zeros2(1, 17 * 17),
        ln3_g=ones2(P, 36 * 36), ln3_b=zeros2(P, 36 * 36),
        ln4_g=ones2(P, 36 * 36), ln4_b=zeros2(P, 36 * 36),
    )


if __name__ == "__main__":
    B, T, C, H, W = 2, 3, 3, 36, 36            # CMM hard-codes C=3, H=W=36
    in_planes = 6                              # must be divisible by 3 (groups=3)

    key = jax.random.PRNGKey(0)
    kx, kp = jax.random.split(key)
    x = jax.random.normal(kx, (B, T, C, H, W), dtype=jnp.float32)
    params = init_params(kp, in_planes)

    fwd = jax.jit(functools.partial(cmm_forward, P=in_planes))
    out = jax.block_until_ready(fwd(x, params))
    assert out.shape == (B, T - 1, in_planes, 36, 36), out.shape
    assert bool(jnp.all(jnp.isfinite(out)))
    print("KERNEL_OK")
</pallas_src>

<mosaic_0001>
module attributes {stable_mosaic.version = 11 : i64} {
  func.func @_conv_ln_act_kernel(%arg0: i32, %arg1: memref<1x27x1296xf32, #tpu.memory_space<vmem>>, %arg2: memref<6x27xf32, #tpu.memory_space<vmem>>, %arg3: memref<6x1xf32, #tpu.memory_space<vmem>>, %arg4: memref<6x1296xf32, #tpu.memory_space<vmem>>, %arg5: memref<6x1296xf32, #tpu.memory_space<vmem>>, %arg6: memref<1x6x1296xf32, #tpu.memory_space<vmem>>) attributes {dimension_semantics = [#tpu.dimension_semantics<parallel>], iteration_bounds = array<i64: 6>, scalar_prefetch = 0 : i64, scratch_operands = 0 : i64, tpu.core_type = #tpu.core_type<tc>, window_params = [{transform_indices = @transform_0, window_bounds = array<i64: 1, 27, 1296>}, {pipeline_mode = #tpu.pipeline_mode<synchronous>, transform_indices = @transform_1, window_bounds = array<i64: 6, 27>}, {pipeline_mode = #tpu.pipeline_mode<synchronous>, transform_indices = @transform_2, window_bounds = array<i64: 6, 1>}, {pipeline_mode = #tpu.pipeline_mode<synchronous>, transform_indices = @transform_3, window_bounds = array<i64: 6, 1296>}, {pipeline_mode = #tpu.pipeline_mode<synchronous>, transform_indices = @transform_4, window_bounds = array<i64: 6, 1296>}, {transform_indices = @transform_5, window_bounds = array<i64: 1, 6, 1296>}]} {
    %c0 = arith.constant 0 : index
    %c0_0 = arith.constant 0 : index
    %0 = vector.load %arg2[%c0, %c0_0] : memref<6x27xf32, #tpu.memory_space<vmem>>, vector<6x27xf32>
    %c0_1 = arith.constant 0 : index
    %c0_2 = arith.constant 0 : index
    %c0_3 = arith.constant 0 : index
    %1 = vector.load %arg1[%c0_1, %c0_2, %c0_3] : memref<1x27x1296xf32, #tpu.memory_space<vmem>>, vector<1x27x1296xf32>
    %2 = vector.shape_cast %1 : vector<1x27x1296xf32> to vector<27x1296xf32>
    %cst = arith.constant dense<0.000000e+00> : vector<6x1296xf32>
    %3 = tpu.matmul %0, %2, %cst {dimension_numbers = #tpu.dot_dimension_numbers<[1], [0], [0], [1], [0, 0, 1, 1], [], []>} : vector<6x27xf32>, vector<27x1296xf32>, vector<6x1296xf32> -> vector<6x1296xf32>
    %c0_4 = arith.constant 0 : index
    %c0_5 = arith.constant 0 : index
    %4 = vector.load %arg3[%c0_4, %c0_5] : memref<6x1xf32, #tpu.memory_space<vmem>>, vector<6x1xf32>
    %5 = vector.broadcast %4 : vector<6x1xf32> to vector<6x1296xf32>
    %6 = arith.addf %3, %5 : vector<6x1296xf32>
    %7 = vector.shape_cast %6 : vector<6x1296xf32> to vector<1x6x1296xf32>
    %cst_6 = arith.constant dense<0.000000e+00> : vector<1xf32>
    %8 = vector.multi_reduction <add>, %7, %cst_6 [1, 2] : vector<1x6x1296xf32> to vector<1xf32>
    %9 = vector.shape_cast %8 : vector<1xf32> to vector<1x1x1xf32>
    %10 = vector.extract %9[0, 0, 0] : f32 from vector<1x1x1xf32>
    %cst_7 = arith.constant 7.776000e+03 : f32
    %11 = arith.divf %10, %cst_7 : f32
    %12 = vector.broadcast %11 : f32 to vector<6x1296xf32>
    %13 = arith.subf %6, %12 : vector<6x1296xf32>
    %14 = arith.mulf %13, %13 : vector<6x1296xf32>
    %15 = vector.shape_cast %14 : vector<6x1296xf32> to vector<1x6x1296xf32>
    %cst_8 = arith.constant dense<0.000000e+00> : vector<1xf32>
    %16 = vector.multi_reduction <add>, %15, %cst_8 [1, 2] : vector<1x6x1296xf32> to vector<1xf32>
    %17 = vector.shape_cast %16 : vector<1xf32> to vector<1x1x1xf32>
    %18 = vector.extract %17[0, 0, 0] : f32 from vector<1x1x1xf32>
    %cst_9 = arith.constant 7.776000e+03 : f32
    %19 = arith.divf %18, %cst_9 : f32
    %20 = vector.broadcast %11 : f32 to vector<6x1296xf32>
    %21 = arith.subf %6, %20 : vector<6x1296xf32>
    %cst_10 = arith.constant 9.99999974E-6 : f32
    %22 = arith.addf %19, %cst_10 : f32
    %23 = math.rsqrt %22 : f32
    %24 = vector.broadcast %23 : f32 to vector<6x1296xf32>
    %25 = arith.mulf %21, %24 : vector<6x1296xf32>
    %c0_11 = arith.constant 0 : index
    %c0_12 = arith.constant 0 : index
    %26 = vector.load %arg4[%c0_11, %c0_12] : memref<6x1296xf32, #tpu.memory_space<vmem>>, vector<6x1296xf32>
    %27 = arith.mulf %25, %26 : vector<6x1296xf32>
    %c0_13 = arith.constant 0 : index
    %c0_14 = arith.constant 0 : index
    %28 = vector.load %arg5[%c0_13, %c0_14] : memref<6x1296xf32, #tpu.memory_space<vmem>>, vector<6x1296xf32>
    %29 = arith.addf %27, %28 : vector<6x1296xf32>
    %cst_15 = arith.constant 0.000000e+00 : f32
    %30 = vector.broadcast %cst_15 : f32 to vector<6x1296xf32>
    %31 = arith.maximumf %29, %30 : vector<6x1296xf32>
    %c0_16 = arith.constant 0 : index
    %c0_17 = arith.constant 0 : index
    %c0_18 = arith.constant 0 : index
    %32 = vector.load %arg6[%c0_16, %c0_17, %c0_18] : memref<1x6x1296xf32, #tpu.memory_space<vmem>>, vector<1x6x1296xf32>
    %33 = vector.shape_cast %32 : vector<1x6x1296xf32> to vector<6x1296xf32>
    %34 = vector.shape_cast %31 : vector<6x1296xf32> to vector<1x6x1296xf32>
    tpu.vector_store %arg6[%c0_16, %c0_17, %c0_18], %34 {strides = array<i32>} : memref<1x6x1296xf32, #tpu.memory_space<vmem>>, vector<1x6x1296xf32>,
    return
  }
  func.func @transform_0(%arg0: i32) -> (i32, i32, i32) {
    %c0_i32 = arith.constant 0 : i32
    %c0_i32_0 = arith.constant 0 : i32
    %c0_i32_1 = arith.constant 0 : i32
    return %arg0, %c0_i32, %c0_i32_0 : i32, i32, i32
  }
  func.func @transform_1(%arg0: i32) -> (i32, i32) {
    %c0_i32 = arith.constant 0 : i32
    %c0_i32_0 = arith.constant 0 : i32
    %c0_i32_1 = arith.constant 0 : i32
    return %c0_i32, %c0_i32_0 : i32, i32
  }
  func.func @transform_2(%arg0: i32) -> (i32, i32) {
    %c0_i32 = arith.constant 0 : i32
    %c0_i32_0 = arith.constant 0 : i32
    %c0_i32_1 = arith.constant 0 : i32
    return %c0_i32, %c0_i32_0 : i32, i32
  }
  func.func @transform_3(%arg0: i32) -> (i32, i32) {
    %c0_i32 = arith.constant 0 : i32
    %c0_i32_0 = arith.constant 0 : i32
    %c0_i32_1 = arith.constant 0 : i32
    return %c0_i32, %c0_i32_0 : i32, i32
  }
  func.func @transform_4(%arg0: i32) -> (i32, i32) {
    %c0_i32 = arith.constant 0 : i32
    %c0_i32_0 = arith.constant 0 : i32
    %c0_i32_1 = arith.constant 0 : i32
    return %c0_i32, %c0_i32_0 : i32, i32
  }
  func.func @transform_5(%arg0: i32) -> (i32, i32, i32) {
    %c0_i32 = arith.constant 0 : i32
    %c0_i32_0 = arith.constant 0 : i32
    %c0_i32_1 = arith.constant 0 : i32
    return %arg0, %c0_i32, %c0_i32_0 : i32, i32, i32
  }
}

module attributes {stable_mosaic.version = 11 : i64} {
  func.func @_diff_pool_kernel(%arg0: i32, %arg1: i32, %arg2: memref<1x1x12x289xf32, #tpu.memory_space<vmem>>, %arg3: memref<1x1x12x289xf32, #tpu.memory_space<vmem>>, %arg4: memref<1x1x12x289xf32, #tpu.memory_space<vmem>>, %arg5: memref<1x1x2x289xf32, #tpu.memory_space<vmem>>) attributes {dimension_semantics = [#tpu.dimension_semantics<parallel>, #tpu.dimension_semantics<parallel>], iteration_bounds = array<i64: 2, 2>, scalar_prefetch = 0 : i64, scratch_operands = 0 : i64, tpu.core_type = #tpu.core_type<tc>, window_params = [{transform_indices = @transform_0, window_bounds = array<i64: 1, 1, 12, 289>}, {transform_indices = @transform_1, window_bounds = array<i64: 1, 1, 12, 289>}, {transform_indices = @transform_2, window_bounds = array<i64: 1, 1, 12, 289>}, {transform_indices = @transform_3, window_bounds = array<i64: 1, 1, 2, 289>}]} {
    %c0 = arith.constant 0 : index
    %c0_0 = arith.constant 0 : index
    %c0_1 = arith.constant 0 : index
    %c0_2 = arith.constant 0 : index
    %0 = vector.load %arg2[%c0, %c0_0, %c0_1, %c0_2] : memref<1x1x12x289xf32, #tpu.memory_space<vmem>>, vector<1x1x12x289xf32>
    %c0_3 = arith.constant 0 : index
    %c0_4 = arith.constant 0 : index
    %c0_5 = arith.constant 0 : index
    %c0_6 = arith.constant 0 : index
    %1 = vector.load %arg3[%c0_3, %c0_4, %c0_5, %c0_6] : memref<1x1x12x289xf32, #tpu.memory_space<vmem>>, vector<1x1x12x289xf32>
    %2 = arith.subf %0, %1 : vector<1x1x12x289xf32>
    %c0_7 = arith.constant 0 : index
    %c0_8 = arith.constant 0 : index
    %c0_9 = arith.constant 0 : index
    %c0_10 = arith.constant 0 : index
    %3 = vector.load %arg4[%c0_7, %c0_8, %c0_9, %c0_10] : memref<1x1x12x289xf32, #tpu.memory_space<vmem>>, vector<1x1x12x289xf32>
    tpu.vector_store %arg4[%c0_7, %c0_8, %c0_9, %c0_10], %2 {strides = array<i32>} : memref<1x1x12x289xf32, #tpu.memory_space<vmem>>, vector<1x1x12x289xf32>,
    %4 = vector.shape_cast %2 : vector<1x1x12x289xf32> to vector<12x289xf32>
    %cst = arith.constant dense<0xFF800000> : vector<289xf32>
    %5 = vector.multi_reduction <maximumf>, %4, %cst [0] : vector<12x289xf32> to vector<289xf32>
    %6 = vector.shape_cast %5 : vector<289xf32> to vector<1x289xf32>
    %cst_11 = arith.constant dense<0.000000e+00> : vector<289xf32>
    %7 = vector.multi_reduction <add>, %4, %cst_11 [0] : vector<12x289xf32> to vector<289xf32>
    %8 = vector.shape_cast %7 : vector<289xf32> to vector<1x289xf32>
    %cst_12 = arith.constant 1.200000e+01 : f32
    %9 = vector.broadcast %cst_12 : f32 to vector<1x289xf32>
    %10 = arith.divf %8, %9 : vector<1x289xf32>
    %11 = tpu.concatenate %6, %10 in 0 : vector<1x289xf32>, vector<1x289xf32> -> vector<2x289xf32>
    %12 = vector.shape_cast %11 : vector<2x289xf32> to vector<1x1x2x289xf32>
    %c0_13 = arith.constant 0 : index
    %c0_14 = arith.constant 0 : index
    %c0_15 = arith.constant 0 : index
    %c0_16 = arith.constant 0 : index
    %13 = vector.load %arg5[%c0_13, %c0_14, %c0_15, %c0_16] : memref<1x1x2x289xf32, #tpu.memory_space<vmem>>, vector<1x1x2x289xf32>
    tpu.vector_store %arg5[%c0_13, %c0_14, %c0_15, %c0_16], %12 {strides = array<i32>} : memref<1x1x2x289xf32, #tpu.memory_space<vmem>>, vector<1x1x2x289xf32>,
    return
  }
  func.func @transform_0(%arg0: i32, %arg1: i32) -> (i32, i32, i32, i32) {
    %c1_i32 = arith.constant 1 : i32
    %0 = arith.addi %arg1, %c1_i32 : i32
    %c0_i32 = arith.constant 0 : i32
    %c0_i32_0 = arith.constant 0 : i32
    %c0_i32_1 = arith.constant 0 : i32
    return %arg0, %0, %c0_i32, %c0_i32_0 : i32, i32, i32, i32
  }
  func.func @transform_1(%arg0: i32, %arg1: i32) -> (i32, i32, i32, i32) {
    %c0_i32 = arith.constant 0 : i32
    %c0_i32_0 = arith.constant 0 : i32
    %c0_i32_1 = arith.constant 0 : i32
    return %arg0, %arg1, %c0_i32, %c0_i32_0 : i32, i32, i32, i32
  }
  func.func @transform_2(%arg0: i32, %arg1: i32) -> (i32, i32, i32, i32) {
    %c0_i32 = arith.constant 0 : i32
    %c0_i32_0 = arith.constant 0 : i32
    %c0_i32_1 = arith.constant 0 : i32
    return %arg0, %arg1, %c0_i32, %c0_i32_0 : i32, i32, i32, i32
  }
  func.func @transform_3(%arg0: i32, %arg1: i32) -> (i32, i32, i32, i32) {
    %c0_i32 = arith.constant 0 : i32
    %c0_i32_0 = arith.constant 0 : i32
    %c0_i32_1 = arith.constant 0 : i32
    return %arg0, %arg1, %c0_i32, %c0_i32_0 : i32, i32, i32, i32
  }
}

module attributes {stable_mosaic.version = 11 : i64} {
  func.func @_conv_ln_act_kernel(%arg0: i32, %arg1: memref<1x54x289xf32, #tpu.memory_space<vmem>>, %arg2: memref<12x54xf32, #tpu.memory_space<vmem>>, %arg3: memref<12x1xf32, #tpu.memory_space<vmem>>, %arg4: memref<12x289xf32, #tpu.memory_space<vmem>>, %arg5: memref<12x289xf32, #tpu.memory_space<vmem>>, %arg6: memref<1x12x289xf32, #tpu.memory_space<vmem>>) attributes {dimension_semantics = [#tpu.dimension_semantics<parallel>], iteration_bounds = array<i64: 6>, scalar_prefetch = 0 : i64, scratch_operands = 0 : i64, tpu.core_type = #tpu.core_type<tc>, window_params = [{transform_indices = @transform_0, window_bounds = array<i64: 1, 54, 289>}, {pipeline_mode = #tpu.pipeline_mode<synchronous>, transform_indices = @transform_1, window_bounds = array<i64: 12, 54>}, {pipeline_mode = #tpu.pipeline_mode<synchronous>, transform_indices = @transform_2, window_bounds = array<i64: 12, 1>}, {pipeline_mode = #tpu.pipeline_mode<synchronous>, transform_indices = @transform_3, window_bounds = array<i64: 12, 289>}, {pipeline_mode = #tpu.pipeline_mode<synchronous>, transform_indices = @transform_4, window_bounds = array<i64: 12, 289>}, {transform_indices = @transform_5, window_bounds = array<i64: 1, 12, 289>}]} {
    %c0 = arith.constant 0 : index
    %c0_0 = arith.constant 0 : index
    %0 = vector.load %arg2[%c0, %c0_0] : memref<12x54xf32, #tpu.memory_space<vmem>>, vector<12x54xf32>
    %c0_1 = arith.constant 0 : index
    %c0_2 = arith.constant 0 : index
    %c0_3 = arith.constant 0 : index
    %1 = vector.load %arg1[%c0_1, %c0_2, %c0_3] : memref<1x54x289xf32, #tpu.memory_space<vmem>>, vector<1x54x289xf32>
    %2 = vector.shape_cast %1 : vector<1x54x289xf32> to vector<54x289xf32>
    %cst = arith.constant dense<0.000000e+00> : vector<12x289xf32>
    %3 = tpu.matmul %0, %2, %cst {dimension_numbers = #tpu.dot_dimension_numbers<[1], [0], [0], [1], [0, 0, 1, 1], [], []>} : vector<12x54xf32>, vector<54x289xf32>, vector<12x289xf32> -> vector<12x289xf32>
    %c0_4 = arith.constant 0 : index
    %c0_5 = arith.constant 0 : index
    %4 = vector.load %arg3[%c0_4, %c0_5] : memref<12x1xf32, #tpu.memory_space<vmem>>, vector<12x1xf32>
    %5 = vector.broadcast %4 : vector<12x1xf32> to vector<12x289xf32>
    %6 = arith.addf %3, %5 : vector<12x289xf32>
    %7 = vector.shape_cast %6 : vector<12x289xf32> to vector<1x12x289xf32>
    %cst_6 = arith.constant dense<0.000000e+00> : vector<1xf32>
    %8 = vector.multi_reduction <add>, %7, %cst_6 [1, 2] : vector<1x12x289xf32> to vector<1xf32>
    %9 = vector.shape_cast %8 : vector<1xf32> to vector<1x1x1xf32>
    %10 = vector.extract %9[0, 0, 0] : f32 from vector<1x1x1xf32>
    %cst_7 = arith.constant 3.468000e+03 : f32
    %11 = arith.divf %10, %cst_7 : f32
    %12 = vector.broadcast %11 : f32 to vector<12x289xf32>
    %13 = arith.subf %6, %12 : vector<12x289xf32>
    %14 = arith.mulf %13, %13 : vector<12x289xf32>
    %15 = vector.shape_cast %14 : vector<12x289xf32> to vector<1x12x289xf32>
    %cst_8 = arith.constant dense<0.000000e+00> : vector<1xf32>
    %16 = vector.multi_reduction <add>, %15, %cst_8 [1, 2] : vector<1x12x289xf32> to vector<1xf32>
    %17 = vector.shape_cast %16 : vector<1xf32> to vector<1x1x1xf32>
    %18 = vector.extract %17[0, 0, 0] : f32 from vector<1x1x1xf32>
    %cst_9 = arith.constant 3.468000e+03 : f32
    %19 = arith.divf %18, %cst_9 : f32
    %20 = vector.broadcast %11 : f32 to vector<12x289xf32>
    %21 = arith.subf %6, %20 : vector<12x289xf32>
    %cst_10 = arith.constant 9.99999974E-6 : f32
    %22 = arith.addf %19, %cst_10 : f32
    %23 = math.rsqrt %22 : f32
    %24 = vector.broadcast %23 : f32 to vector<12x289xf32>
    %25 = arith.mulf %21, %24 : vector<12x289xf32>
    %c0_11 = arith.constant 0 : index
    %c0_12 = arith.constant 0 : index
    %26 = vector.load %arg4[%c0_11, %c0_12] : memref<12x289xf32, #tpu.memory_space<vmem>>, vector<12x289xf32>
    %27 = arith.mulf %25, %26 : vector<12x289xf32>
    %c0_13 = arith.constant 0 : index
    %c0_14 = arith.constant 0 : index
    %28 = vector.load %arg5[%c0_13, %c0_14] : memref<12x289xf32, #tpu.memory_space<vmem>>, vector<12x289xf32>
    %29 = arith.addf %27, %28 : vector<12x289xf32>
    %cst_15 = arith.constant 0.000000e+00 : f32
    %30 = vector.broadcast %cst_15 : f32 to vector<12x289xf32>
    %31 = arith.maximumf %29, %30 : vector<12x289xf32>
    %c0_16 = arith.constant 0 : index
    %c0_17 = arith.constant 0 : index
    %c0_18 = arith.constant 0 : index
    %32 = vector.load %arg6[%c0_16, %c0_17, %c0_18] : memref<1x12x289xf32, #tpu.memory_space<vmem>>, vector<1x12x289xf32>
    %33 = vector.shape_cast %32 : vector<1x12x289xf32> to vector<12x289xf32>
    %34 = vector.shape_cast %31 : vector<12x289xf32> to vector<1x12x289xf32>
    tpu.vector_store %arg6[%c0_16, %c0_17, %c0_18], %34 {strides = array<i32>} : memref<1x12x289xf32, #tpu.memory_space<vmem>>, vector<1x12x289xf32>,
    return
  }
  func.func @transform_0(%arg0: i32) -> (i32, i32, i32) {
    %c0_i32 = arith.constant 0 : i32
    %c0_i32_0 = arith.constant 0 : i32
    %c0_i32_1 = arith.constant 0 : i32
    return %arg0, %c0_i32, %c0_i32_0 : i32, i32, i32
  }
  func.func @transform_1(%arg0: i32) -> (i32, i32) {
    %c0_i32 = arith.constant 0 : i32
    %c0_i32_0 = arith.constant 0 : i32
    %c0_i32_1 = arith.constant 0 : i32
    return %c0_i32, %c0_i32_0 : i32, i32
  }
  func.func @transform_2(%arg0: i32) -> (i32, i32) {
    %c0_i32 = arith.constant 0 : i32
    %c0_i32_0 = arith.constant 0 : i32
    %c0_i32_1 = arith.constant 0 : i32
    return %c0_i32, %c0_i32_0 : i32, i32
  }
  func.func @transform_3(%arg0: i32) -> (i32, i32) {
    %c0_i32 = arith.constant 0 : i32
    %c0_i32_0 = arith.constant 0 : i32
    %c0_i32_1 = arith.constant 0 : i32
    return %c0_i32, %c0_i32_0 : i32, i32
  }
  func.func @transform_4(%arg0: i32) -> (i32, i32) {
    %c0_i32 = arith.constant 0 : i32
    %c0_i32_0 = arith.constant 0 : i32
    %c0_i32_1 = arith.constant 0 : i32
    return %c0_i32, %c0_i32_0 : i32, i32
  }
  func.func @transform_5(%arg0: i32) -> (i32, i32, i32) {
    %c0_i32 = arith.constant 0 : i32
    %c0_i32_0 = arith.constant 0 : i32
    %c0_i32_1 = arith.constant 0 : i32
    return %arg0, %c0_i32, %c0_i32_0 : i32, i32, i32
  }
}

module attributes {stable_mosaic.version = 11 : i64} {
  func.func @_spatial_gate_kernel(%arg0: i32, %arg1: memref<1x98x289xf32, #tpu.memory_space<vmem>>, %arg2: memref<1x98xf32, #tpu.memory_space<vmem>>, %arg3: memref<1x289xf32, #tpu.memory_space<vmem>>, %arg4: memref<1x289xf32, #tpu.memory_space<vmem>>, %arg5: memref<1x12x289xf32, #tpu.memory_space<vmem>>, %arg6: memref<1x12x289xf32, #tpu.memory_space<vmem>>) attributes {dimension_semantics = [#tpu.dimension_semantics<parallel>], iteration_bounds = array<i64: 4>, scalar_prefetch = 0 : i64, scratch_operands = 0 : i64, tpu.core_type = #tpu.core_type<tc>, window_params = [{transform_indices = @transform_0, window_bounds = array<i64: 1, 98, 289>}, {pipeline_mode = #tpu.pipeline_mode<synchronous>, transform_indices = @transform_1, window_bounds = array<i64: 1, 98>}, {pipeline_mode = #tpu.pipeline_mode<synchronous>, transform_indices = @transform_2, window_bounds = array<i64: 1, 289>}, {pipeline_mode = #tpu.pipeline_mode<synchronous>, transform_indices = @transform_3, window_bounds = array<i64: 1, 289>}, {transform_indices = @transform_4, window_bounds = array<i64: 1, 12, 289>}, {transform_indices = @transform_5, window_bounds = array<i64: 1, 12, 289>}]} {
    %c0 = arith.constant 0 : index
    %c0_0 = arith.constant 0 : index
    %0 = vector.load %arg2[%c0, %c0_0] : memref<1x98xf32, #tpu.memory_space<vmem>>, vector<1x98xf32>
    %c0_1 = arith.constant 0 : index
    %c0_2 = arith.constant 0 : index
    %c0_3 = arith.constant 0 : index
    %1 = vector.load %arg1[%c0_1, %c0_2, %c0_3] : memref<1x98x289xf32, #tpu.memory_space<vmem>>, vector<1x98x289xf32>
    %2 = vector.shape_cast %1 : vector<1x98x289xf32> to vector<98x289xf32>
    %cst = arith.constant dense<0.000000e+00> : vector<1x289xf32>
    %3 = tpu.matmul %0, %2, %cst {dimension_numbers = #tpu.dot_dimension_numbers<[1], [0], [0], [1], [0, 0, 1, 1], [], []>} : vector<1x98xf32>, vector<98x289xf32>, vector<1x289xf32> -> vector<1x289xf32>
    %4 = vector.shape_cast %3 : vector<1x289xf32> to vector<1x1x289xf32>
    %cst_4 = arith.constant dense<0.000000e+00> : vector<1xf32>
    %5 = vector.multi_reduction <add>, %4, %cst_4 [1, 2] : vector<1x1x289xf32> to vector<1xf32>
    %6 = vector.shape_cast %5 : vector<1xf32> to vector<1x1x1xf32>
    %7 = vector.extract %6[0, 0, 0] : f32 from vector<1x1x1xf32>
    %cst_5 = arith.constant 2.890000e+02 : f32
    %8 = arith.divf %7, %cst_5 : f32
    %9 = vector.broadcast %8 : f32 to vector<1x289xf32>
    %10 = arith.subf %3, %9 : vector<1x289xf32>
    %11 = arith.mulf %10, %10 : vector<1x289xf32>
    %12 = vector.shape_cast %11 : vector<1x289xf32> to vector<1x1x289xf32>
    %cst_6 = arith.constant dense<0.000000e+00> : vector<1xf32>
    %13 = vector.multi_reduction <add>, %12, %cst_6 [1, 2] : vector<1x1x289xf32> to vector<1xf32>
    %14 = vector.shape_cast %13 : vector<1xf32> to vector<1x1x1xf32>
    %15 = vector.extract %14[0, 0, 0] : f32 from vector<1x1x1xf32>
    %cst_7 = arith.constant 2.890000e+02 : f32
    %16 = arith.divf %15, %cst_7 : f32
    %17 = vector.broadcast %8 : f32 to vector<1x289xf32>
    %18 = arith.subf %3, %17 : vector<1x289xf32>
    %cst_8 = arith.constant 9.99999974E-6 : f32
    %19 = arith.addf %16, %cst_8 : f32
    %20 = math.rsqrt %19 : f32
    %21 = vector.broadcast %20 : f32 to vector<1x289xf32>
    %22 = arith.mulf %18, %21 : vector<1x289xf32>
    %c0_9 = arith.constant 0 : index
    %c0_10 = arith.constant 0 : index
    %23 = vector.load %arg3[%c0_9, %c0_10] : memref<1x289xf32, #tpu.memory_space<vmem>>, vector<1x289xf32>
    %24 = arith.mulf %22, %23 : vector<1x289xf32>
    %c0_11 = arith.constant 0 : index
    %c0_12 = arith.constant 0 : index
    %25 = vector.load %arg4[%c0_11, %c0_12] : memref<1x289xf32, #tpu.memory_space<vmem>>, vector<1x289xf32>
    %26 = arith.addf %24, %25 : vector<1x289xf32>
    %cst_13 = arith.constant 0.000000e+00 : f32
    %27 = vector.broadcast %cst_13 : f32 to vector<1x289xf32>
    %28 = arith.maximumf %26, %27 : vector<1x289xf32>
    %29 = arith.negf %28 : vector<1x289xf32>
    %30 = math.exp %29 : vector<1x289xf32>
    %cst_14 = arith.constant 1.000000e+00 : f32
    %31 = vector.broadcast %cst_14 : f32 to vector<1x289xf32>
    %32 = arith.addf %31, %30 : vector<1x289xf32>
    %33 = arith.divf %31, %32 : vector<1x289xf32>
    %c0_15 = arith.constant 0 : index
    %c0_16 = arith.constant 0 : index
    %c0_17 = arith.constant 0 : index
    %34 = vector.load %arg5[%c0_15, %c0_16, %c0_17] : memref<1x12x289xf32, #tpu.memory_space<vmem>>, vector<1x12x289xf32>
    %35 = vector.shape_cast %34 : vector<1x12x289xf32> to vector<12x289xf32>
    %36 = vector.broadcast %33 : vector<1x289xf32> to vector<12x289xf32>
    %37 = arith.mulf %35, %36 : vector<12x289xf32>
    %c0_18 = arith.constant 0 : index
    %c0_19 = arith.constant 0 : index
    %c0_20 = arith.constant 0 : index
    %38 = vector.load %arg6[%c0_18, %c0_19, %c0_20] : memref<1x12x289xf32, #tpu.memory_space<vmem>>, vector<1x12x289xf32>
    %39 = vector.shape_cast %38 : vector<1x12x289xf32> to vector<12x289xf32>
    %40 = vector.shape_cast %37 : vector<12x289xf32> to vector<1x12x289xf32>
    tpu.vector_store %arg6[%c0_18, %c0_19, %c0_20], %40 {strides = array<i32>} : memref<1x12x289xf32, #tpu.memory_space<vmem>>, vector<1x12x289xf32>,
    return
  }
  func.func @transform_0(%arg0: i32) -> (i32, i32, i32) {
    %c0_i32 = arith.constant 0 : i32
    %c0_i32_0 = arith.constant 0 : i32
    %c0_i32_1 = arith.constant 0 : i32
    return %arg0, %c0_i32, %c0_i32_0 : i32, i32, i32
  }
  func.func @transform_1(%arg0: i32) -> (i32, i32) {
    %c0_i32 = arith.constant 0 : i32
    %c0_i32_0 = arith.constant 0 : i32
    %c0_i32_1 = arith.constant 0 : i32
    return %c0_i32, %c0_i32_0 : i32, i32
  }
  func.func @transform_2(%arg0: i32) -> (i32, i32) {
    %c0_i32 = arith.constant 0 : i32
    %c0_i32_0 = arith.constant 0 : i32
    %c0_i32_1 = arith.constant 0 : i32
    return %c0_i32, %c0_i32_0 : i32, i32
  }
  func.func @transform_3(%arg0: i32) -> (i32, i32) {
    %c0_i32 = arith.constant 0 : i32
    %c0_i32_0 = arith.constant 0 : i32
    %c0_i32_1 = arith.constant 0 : i32
    return %c0_i32, %c0_i32_0 : i32, i32
  }
  func.func @transform_4(%arg0: i32) -> (i32, i32, i32) {
    %c0_i32 = arith.constant 0 : i32
    %c0_i32_0 = arith.constant 0 : i32
    %c0_i32_1 = arith.constant 0 : i32
    return %arg0, %c0_i32, %c0_i32_0 : i32, i32, i32
  }
  func.func @transform_5(%arg0: i32) -> (i32, i32, i32) {
    %c0_i32 = arith.constant 0 : i32
    %c0_i32_0 = arith.constant 0 : i32
    %c0_i32_1 = arith.constant 0 : i32
    return %arg0, %c0_i32, %c0_i32_0 : i32, i32, i32
  }
}

module attributes {stable_mosaic.version = 11 : i64} {
  func.func @_conv_ln_act_kernel(%arg0: i32, %arg1: memref<1x108x1296xf32, #tpu.memory_space<vmem>>, %arg2: memref<6x108xf32, #tpu.memory_space<vmem>>, %arg3: memref<6x1xf32, #tpu.memory_space<vmem>>, %arg4: memref<6x1296xf32, #tpu.memory_space<vmem>>, %arg5: memref<6x1296xf32, #tpu.memory_space<vmem>>, %arg6: memref<1x6x1296xf32, #tpu.memory_space<vmem>>) attributes {dimension_semantics = [#tpu.dimension_semantics<parallel>], iteration_bounds = array<i64: 4>, scalar_prefetch = 0 : i64, scratch_operands = 0 : i64, tpu.core_type = #tpu.core_type<tc>, window_params = [{transform_indices = @transform_0, window_bounds = array<i64: 1, 108, 1296>}, {pipeline_mode = #tpu.pipeline_mode<synchronous>, transform_indices = @transform_1, window_bounds = array<i64: 6, 108>}, {pipeline_mode = #tpu.pipeline_mode<synchronous>, transform_indices = @transform_2, window_bounds = array<i64: 6, 1>}, {pipeline_mode = #tpu.pipeline_mode<synchronous>, transform_indices = @transform_3, window_bounds = array<i64: 6, 1296>}, {pipeline_mode = #tpu.pipeline_mode<synchronous>, transform_indices = @transform_4, window_bounds = array<i64: 6, 1296>}, {transform_indices = @transform_5, window_bounds = array<i64: 1, 6, 1296>}]} {
    %c0 = arith.constant 0 : index
    %c0_0 = arith.constant 0 : index
    %0 = vector.load %arg2[%c0, %c0_0] : memref<6x108xf32, #tpu.memory_space<vmem>>, vector<6x108xf32>
    %c0_1 = arith.constant 0 : index
    %c0_2 = arith.constant 0 : index
    %c0_3 = arith.constant 0 : index
    %1 = vector.load %arg1[%c0_1, %c0_2, %c0_3] : memref<1x108x1296xf32, #tpu.memory_space<vmem>>, vector<1x108x1296xf32>
    %2 = vector.shape_cast %1 : vector<1x108x1296xf32> to vector<108x1296xf32>
    %cst = arith.constant dense<0.000000e+00> : vector<6x1296xf32>
    %3 = tpu.matmul %0, %2, %cst {dimension_numbers = #tpu.dot_dimension_numbers<[1], [0], [0], [1], [0, 0, 1, 1], [], []>} : vector<6x108xf32>, vector<108x1296xf32>, vector<6x1296xf32> -> vector<6x1296xf32>
    %c0_4 = arith.constant 0 : index
    %c0_5 = arith.constant 0 : index
    %4 = vector.load %arg3[%c0_4, %c0_5] : memref<6x1xf32, #tpu.memory_space<vmem>>, vector<6x1xf32>
    %5 = vector.broadcast %4 : vector<6x1xf32> to vector<6x1296xf32>
    %6 = arith.addf %3, %5 : vector<6x1296xf32>
    %7 = vector.shape_cast %6 : vector<6x1296xf32> to vector<1x6x1296xf32>
    %cst_6 = arith.constant dense<0.000000e+00> : vector<1xf32>
    %8 = vector.multi_reduction <add>, %7, %cst_6 [1, 2] : vector<1x6x1296xf32> to vector<1xf32>
    %9 = vector.shape_cast %8 : vector<1xf32> to vector<1x1x1xf32>
    %10 = vector.extract %9[0, 0, 0] : f32 from vector<1x1x1xf32>
    %cst_7 = arith.constant 7.776000e+03 : f32
    %11 = arith.divf %10, %cst_7 : f32
    %12 = vector.broadcast %11 : f32 to vector<6x1296xf32>
    %13 = arith.subf %6, %12 : vector<6x1296xf32>
    %14 = arith.mulf %13, %13 : vector<6x1296xf32>
    %15 = vector.shape_cast %14 : vector<6x1296xf32> to vector<1x6x1296xf32>
    %cst_8 = arith.constant dense<0.000000e+00> : vector<1xf32>
    %16 = vector.multi_reduction <add>, %15, %cst_8 [1, 2] : vector<1x6x1296xf32> to vector<1xf32>
    %17 = vector.shape_cast %16 : vector<1xf32> to vector<1x1x1xf32>
    %18 = vector.extract %17[0, 0, 0] : f32 from vector<1x1x1xf32>
    %cst_9 = arith.constant 7.776000e+03 : f32
    %19 = arith.divf %18, %cst_9 : f32
    %20 = vector.broadcast %11 : f32 to vector<6x1296xf32>
    %21 = arith.subf %6, %20 : vector<6x1296xf32>
    %cst_10 = arith.constant 9.99999974E-6 : f32
    %22 = arith.addf %19, %cst_10 : f32
    %23 = math.rsqrt %22 : f32
    %24 = vector.broadcast %23 : f32 to vector<6x1296xf32>
    %25 = arith.mulf %21, %24 : vector<6x1296xf32>
    %c0_11 = arith.constant 0 : index
    %c0_12 = arith.constant 0 : index
    %26 = vector.load %arg4[%c0_11, %c0_12] : memref<6x1296xf32, #tpu.memory_space<vmem>>, vector<6x1296xf32>
    %27 = arith.mulf %25, %26 : vector<6x1296xf32>
    %c0_13 = arith.constant 0 : index
    %c0_14 = arith.constant 0 : index
    %28 = vector.load %arg5[%c0_13, %c0_14] : memref<6x1296xf32, #tpu.memory_space<vmem>>, vector<6x1296xf32>
    %29 = arith.addf %27, %28 : vector<6x1296xf32>
    %30 = math.tanh %29 : vector<6x1296xf32>
    %c0_15 = arith.constant 0 : index
    %c0_16 = arith.constant 0 : index
    %c0_17 = arith.constant 0 : index
    %31 = vector.load %arg6[%c0_15, %c0_16, %c0_17] : memref<1x6x1296xf32, #tpu.memory_space<vmem>>, vector<1x6x1296xf32>
    %32 = vector.shape_cast %31 : vector<1x6x1296xf32> to vector<6x1296xf32>
    %33 = vector.shape_cast %30 : vector<6x1296xf32> to vector<1x6x1296xf32>
    tpu.vector_store %arg6[%c0_15, %c0_16, %c0_17], %33 {strides = array<i32>} : memref<1x6x1296xf32, #tpu.memory_space<vmem>>, vector<1x6x1296xf32>,
    return
  }
  func.func @transform_0(%arg0: i32) -> (i32, i32, i32) {
    %c0_i32 = arith.constant 0 : i32
    %c0_i32_0 = arith.constant 0 : i32
    %c0_i32_1 = arith.constant 0 : i32
    return %arg0, %c0_i32, %c0_i32_0 : i32, i32, i32
  }
  func.func @transform_1(%arg0: i32) -> (i32, i32) {
    %c0_i32 = arith.constant 0 : i32
    %c0_i32_0 = arith.constant 0 : i32
    %c0_i32_1 = arith.constant 0 : i32
    return %c0_i32, %c0_i32_0 : i32, i32
  }
  func.func @transform_2(%arg0: i32) -> (i32, i32) {
    %c0_i32 = arith.constant 0 : i32
    %c0_i32_0 = arith.constant 0 : i32
    %c0_i32_1 = arith.constant 0 : i32
    return %c0_i32, %c0_i32_0 : i32, i32
  }
  func.func @transform_3(%arg0: i32) -> (i32, i32) {
    %c0_i32 = arith.constant 0 : i32
    %c0_i32_0 = arith.constant 0 : i32
    %c0_i32_1 = arith.constant 0 : i32
    return %c0_i32, %c0_i32_0 : i32, i32
  }
  func.func @transform_4(%arg0: i32) -> (i32, i32) {
    %c0_i32 = arith.constant 0 : i32
    %c0_i32_0 = arith.constant 0 : i32
    %c0_i32_1 = arith.constant 0 : i32
    return %c0_i32, %c0_i32_0 : i32, i32
  }
  func.func @transform_5(%arg0: i32) -> (i32, i32, i32) {
    %c0_i32 = arith.constant 0 : i32
    %c0_i32_0 = arith.constant 0 : i32
    %c0_i32_1 = arith.constant 0 : i32
    return %arg0, %c0_i32, %c0_i32_0 : i32, i32, i32
  }
}

module attributes {stable_mosaic.version = 11 : i64} {
  func.func @_conv_ln_act_kernel(%arg0: i32, %arg1: memref<1x54x1296xf32, #tpu.memory_space<vmem>>, %arg2: memref<6x54xf32, #tpu.memory_space<vmem>>, %arg3: memref<6x1xf32, #tpu.memory_space<vmem>>, %arg4: memref<6x1296xf32, #tpu.memory_space<vmem>>, %arg5: memref<6x1296xf32, #tpu.memory_space<vmem>>, %arg6: memref<1x6x1296xf32, #tpu.memory_space<vmem>>) attributes {dimension_semantics = [#tpu.dimension_semantics<parallel>], iteration_bounds = array<i64: 4>, scalar_prefetch = 0 : i64, scratch_operands = 0 : i64, tpu.core_type = #tpu.core_type<tc>, window_params = [{transform_indices = @transform_0, window_bounds = array<i64: 1, 54, 1296>}, {pipeline_mode = #tpu.pipeline_mode<synchronous>, transform_indices = @transform_1, window_bounds = array<i64: 6, 54>}, {pipeline_mode = #tpu.pipeline_mode<synchronous>, transform_indices = @transform_2, window_bounds = array<i64: 6, 1>}, {pipeline_mode = #tpu.pipeline_mode<synchronous>, transform_indices = @transform_3, window_bounds = array<i64: 6, 1296>}, {pipeline_mode = #tpu.pipeline_mode<synchronous>, transform_indices = @transform_4, window_bounds = array<i64: 6, 1296>}, {transform_indices = @transform_5, window_bounds = array<i64: 1, 6, 1296>}]} {
    %c0 = arith.constant 0 : index
    %c0_0 = arith.constant 0 : index
    %0 = vector.load %arg2[%c0, %c0_0] : memref<6x54xf32, #tpu.memory_space<vmem>>, vector<6x54xf32>
    %c0_1 = arith.constant 0 : index
    %c0_2 = arith.constant 0 : index
    %c0_3 = arith.constant 0 : index
    %1 = vector.load %arg1[%c0_1, %c0_2, %c0_3] : memref<1x54x1296xf32, #tpu.memory_space<vmem>>, vector<1x54x1296xf32>
    %2 = vector.shape_cast %1 : vector<1x54x1296xf32> to vector<54x1296xf32>
    %cst = arith.constant dense<0.000000e+00> : vector<6x1296xf32>
    %3 = tpu.matmul %0, %2, %cst {dimension_numbers = #tpu.dot_dimension_numbers<[1], [0], [0], [1], [0, 0, 1, 1], [], []>} : vector<6x54xf32>, vector<54x1296xf32>, vector<6x1296xf32> -> vector<6x1296xf32>
    %c0_4 = arith.constant 0 : index
    %c0_5 = arith.constant 0 : index
    %4 = vector.load %arg3[%c0_4, %c0_5] : memref<6x1xf32, #tpu.memory_space<vmem>>, vector<6x1xf32>
    %5 = vector.broadcast %4 : vector<6x1xf32> to vector<6x1296xf32>
    %6 = arith.addf %3, %5 : vector<6x1296xf32>
    %7 = vector.shape_cast %6 : vector<6x1296xf32> to vector<1x6x1296xf32>
    %cst_6 = arith.constant dense<0.000000e+00> : vector<1xf32>
    %8 = vector.multi_reduction <add>, %7, %cst_6 [1, 2] : vector<1x6x1296xf32> to vector<1xf32>
    %9 = vector.shape_cast %8 : vector<1xf32> to vector<1x1x1xf32>
    %10 = vector.extract %9[0, 0, 0] : f32 from vector<1x1x1xf32>
    %cst_7 = arith.constant 7.776000e+03 : f32
    %11 = arith.divf %10, %cst_7 : f32
    %12 = vector.broadcast %11 : f32 to vector<6x1296xf32>
    %13 = arith.subf %6, %12 : vector<6x1296xf32>
    %14 = arith.mulf %13, %13 : vector<6x1296xf32>
    %15 = vector.shape_cast %14 : vector<6x1296xf32> to vector<1x6x1296xf32>
    %cst_8 = arith.constant dense<0.000000e+00> : vector<1xf32>
    %16 = vector.multi_reduction <add>, %15, %cst_8 [1, 2] : vector<1x6x1296xf32> to vector<1xf32>
    %17 = vector.shape_cast %16 : vector<1xf32> to vector<1x1x1xf32>
    %18 = vector.extract %17[0, 0, 0] : f32 from vector<1x1x1xf32>
    %cst_9 = arith.constant 7.776000e+03 : f32
    %19 = arith.divf %18, %cst_9 : f32
    %20 = vector.broadcast %11 : f32 to vector<6x1296xf32>
    %21 = arith.subf %6, %20 : vector<6x1296xf32>
    %cst_10 = arith.constant 9.99999974E-6 : f32
    %22 = arith.addf %19, %cst_10 : f32
    %23 = math.rsqrt %22 : f32
    %24 = vector.broadcast %23 : f32 to vector<6x1296xf32>
    %25 = arith.mulf %21, %24 : vector<6x1296xf32>
    %c0_11 = arith.constant 0 : index
    %c0_12 = arith.constant 0 : index
    %26 = vector.load %arg4[%c0_11, %c0_12] : memref<6x1296xf32, #tpu.memory_space<vmem>>, vector<6x1296xf32>
    %27 = arith.mulf %25, %26 : vector<6x1296xf32>
    %c0_13 = arith.constant 0 : index
    %c0_14 = arith.constant 0 : index
    %28 = vector.load %arg5[%c0_13, %c0_14] : memref<6x1296xf32, #tpu.memory_space<vmem>>, vector<6x1296xf32>
    %29 = arith.addf %27, %28 : vector<6x1296xf32>
    %30 = math.tanh %29 : vector<6x1296xf32>
    %c0_15 = arith.constant 0 : index
    %c0_16 = arith.constant 0 : index
    %c0_17 = arith.constant 0 : index
    %31 = vector.load %arg6[%c0_15, %c0_16, %c0_17] : memref<1x6x1296xf32, #tpu.memory_space<vmem>>, vector<1x6x1296xf32>
    %32 = vector.shape_cast %31 : vector<1x6x1296xf32> to vector<6x1296xf32>
    %33 = vector.shape_cast %30 : vector<6x1296xf32> to vector<1x6x1296xf32>
    tpu.vector_store %arg6[%c0_15, %c0_16, %c0_17], %33 {strides = array<i32>} : memref<1x6x1296xf32, #tpu.memory_space<vmem>>, vector<1x6x1296xf32>,
    return
  }
  func.func @transform_0(%arg0: i32) -> (i32, i32, i32) {
    %c0_i32 = arith.constant 0 : i32
    %c0_i32_0 = arith.constant 0 : i32
    %c0_i32_1 = arith.constant 0 : i32
    return %arg0, %c0_i32, %c0_i32_0 : i32, i32, i32
  }
  func.func @transform_1(%arg0: i32) -> (i32, i32) {
    %c0_i32 = arith.constant 0 : i32
    %c0_i32_0 = arith.constant 0 : i32
    %c0_i32_1 = arith.constant 0 : i32
    return %c0_i32, %c0_i32_0 : i32, i32
  }
  func.func @transform_2(%arg0: i32) -> (i32, i32) {
    %c0_i32 = arith.constant 0 : i32
    %c0_i32_0 = arith.constant 0 : i32
    %c0_i32_1 = arith.constant 0 : i32
    return %c0_i32, %c0_i32_0 : i32, i32
  }
  func.func @transform_3(%arg0: i32) -> (i32, i32) {
    %c0_i32 = arith.constant 0 : i32
    %c0_i32_0 = arith.constant 0 : i32
    %c0_i32_1 = arith.constant 0 : i32
    return %c0_i32, %c0_i32_0 : i32, i32
  }
  func.func @transform_4(%arg0: i32) -> (i32, i32) {
    %c0_i32 = arith.constant 0 : i32
    %c0_i32_0 = arith.constant 0 : i32
    %c0_i32_1 = arith.constant 0 : i32
    return %c0_i32, %c0_i32_0 : i32, i32
  }
  func.func @transform_5(%arg0: i32) -> (i32, i32, i32) {
    %c0_i32 = arith.constant 0 : i32
    %c0_i32_0 = arith.constant 0 : i32
    %c0_i32_1 = arith.constant 0 : i32
    return %arg0, %c0_i32, %c0_i32_0 : i32, i32, i32
  }
}

</mosaic_0001>

<bundles_post_ra>
// kernel: cmm_forward.6
= control target key start
LH: loop header
LB: loop body
LE: loop exit
PB: predicated region body
PF: predicated region fallthrough
CT: control target
= control target key end

     0   :  { %s1072_s18 = smov 0   ;;  %s1306_s0 = inlined_call_operand.vmem [shape: f32[6,27,1296], index: 0, kind: input, shape index: {}]   ;;  %s1307_s1 = inlined_call_operand.vmem [shape: f32[6,27], index: 1, kind: input, shape index: {}]   ;;  %s1308_s2 = inlined_call_operand.vmem [shape: f32[6,1], index: 2, kind: input, shape index: {}]   ;;  %s1309_s3 = inlined_call_operand.vmem [shape: f32[6,1296], index: 3, kind: input, shape index: {}]   ;;  %s1310_s4 = inlined_call_operand.vmem [shape: f32[6,1296], index: 4, kind: input, shape index: {}]   ;;  %s1311_s5 = inlined_call_operand.vmem [shape: f32[6,6,1296], index: 5, kind: output, shape index: {}]  }
   0x1 LB: > { %s967_s19 = sadd.s32 4294967295, %s1037_s18   ;;  %p971_p0 = scmp.ge.s32.totalorder %s1037_s18, 1  ;;  %s1037_s18 = sphi %s1072_s18, %s15_s18  }
   0x2   : > { %p187_p1 = scmp.lt.s32.totalorder %s1037_s18, 7 }
   0x4   : > { %p188_p2 = pnand %p971_p0, %p187_p1 }
   0x5   : > { %p215_p3 = scmp.lt.s32.totalorder (!%p188_p2), %s967_s19, 5 }
   0x6   : > { %191 = sbr.rel (%p188_p2) target bundleno = 760 (0x2f8), region = 40 }
   0xb   : > { %v1039_v0 = vmov 0.0   ;;  %v270_v1 = vld [vmem:[%s1308_s2] sm:$0x3f]  ;;  %s1313_s19 = smov (!%p215_p3, %s967_s19), 5  ;;  %v1040_v2 = vmov 0   ;;  %vm280_vm0 = vcmask 1042432  }
   0xc   : > { %378 = vmatprep.mubr.f32.mxu0 %v1039_v0  ;;  %449 = vmatprep.mubr.f32.mxu1 %v1039_v0  ;;  %s1009_s22 = smul.u32 352, %s1313_s19  ;;  %v1116_v19 = vld [vmem:[%s1307_s1] sm:$0x3f]  ;;  %vm276_vm1 = vcmask 220160   ;;  %vm1041_vm2 = vmmov 0   ;;  %vm739_vm3 = vcmask 1045504  }
   0xd   : > { %1028 = vset.pattern.permute.xlu0 %v1040_v2  ;;  %vm759_vm4 = vcmask 128000   ;;  %s1010_s8 = smul.u32 88, %s1313_s19 }
   0xe   : > { %273 = vperm.xlu0 %1028, %v270_v1   ;;  %s1091_s25 = scalar_lea.vmem %s1306_s0, %s1009_s22 }
   0xf   : > { %v260_v3 = vld [vmem:[%s1091_s25 + $0x110] sm:$0x7]  ;;  %v262_v4 = vld [vmem:[%s1091_s25 + $0x120] sm:$0x7]  ;;  %v259_v5 = vld [vmem:[%s1091_s25 + $0x108] sm:$0x7]  ;;  %s224_s12 = scalar_lea.vmem %s1311_s5, %s1010_s8 }
  0x10   : > { %974 = vmatprep.subr.msk.mxu0 %vm280_vm0, %v260_v3  ;;  %977 = vmatprep.subr.msk.mxu1 %vm280_vm0, %v262_v4  ;;  %v261_v6 = vld [vmem:[%s1091_s25 + $0x118] sm:$0x7]  ;;  %v251_v8 = vld [vmem:[%s1091_s25 + $0xc8] sm:$0xff]  ;;  %v248_v9 = vld [vmem:[%s1091_s25 + $0xb0] sm:$0xff] }
  0x11   : > { %v249_v7 = vld [vmem:[%s1091_s25 + $0xb8] sm:$0xff]  ;;  %975 = vmatpush1.msk.msra.mxu0 %vm280_vm0, %v259_v5  ;;  %978 = vmatpush1.msk.msra.mxu1 %vm280_vm0, %v261_v6  ;;  %v250_v10 = vld [vmem:[%s1091_s25 + $0xc0] sm:$0xff]  ;;  %v240_v12 = vld [vmem:[%s1091_s25 + $0x70] sm:$0xff] }
  0x12   : > { %v238_v11 = vld [vmem:[%s1091_s25 + $0x60] sm:$0xff]  ;;  %340 = vmatprep.subr.mxu0 %v249_v7  ;;  %411 = vmatprep.subr.mxu1 %v251_v8  ;;  %v237_v13 = vld [vmem:[%s1091_s25 + $0x58] sm:$0xff]  ;;  %v239_v14 = vld [vmem:[%s1091_s25 + $0x68] sm:$0xff] }
  0x13   : > { %341 = vmatpush1.msra.mxu0 %v248_v9  ;;  %412 = vmatpush1.msra.mxu1 %v250_v10  ;;  %v227_v15 = vld [vmem:[%s1091_s25 + $0x8] sm:$0xff]  ;;  %v229_v16 = vld [vmem:[%s1091_s25 + $0x18] sm:$0xff]  ;;  %v226_v17 = vld [vmem:[%s1091_s25] sm:$0xff] }
  0x14   : > { %342 = vmatprep.subr.mxu0 %v238_v11  ;;  %413 = vmatprep.subr.mxu1 %v240_v12  ;;  %v228_v18 = vld [vmem:[%s1091_s25 + $0x10] sm:$0xff]  ;;  %v266_v21 = vld [vmem:[%s1091_s25 + $0x140] sm:$0x7]  ;;  %v263_v22 = vld [vmem:[%s1091_s25 + $0x128] sm:$0x7] }
  0x15   : > { %343 = vmatpush1.msra.mxu0 %v237_v13  ;;  %414 = vmatpush1.msra.mxu1 %v239_v14  ;;  %v264_v20 = vld [vmem:[%s1091_s25 + $0x130] sm:$0x7]  ;;  %v265_v23 = vld [vmem:[%s1091_s25 + $0x138] sm:$0x7]  ;;  %v255_v25 = vld [vmem:[%s1091_s25 + $0xe8] sm:$0xff] }
  0x16   : > { %344 = vmatprep.subr.mxu0 %v227_v15  ;;  %415 = vmatprep.subr.mxu1 %v229_v16  ;;  %v253_v24 = vld [vmem:[%s1091_s25 + $0xd8] sm:$0xff]  ;;  %v252_v26 = vld [vmem:[%s1091_s25 + $0xd0] sm:$0xff]  ;;  %v254_v27 = vld [vmem:[%s1091_s25 + $0xe0] sm:$0xff] }
  0x17   : > { %345 = vmatpush1.msra.mxu0 %v226_v17  ;;  %416 = vmatpush1.msra.mxu1 %v228_v18  ;;  %v242_v28 = vld [vmem:[%s1091_s25 + $0x80] sm:$0xff]  ;;  %v244_v29 = vld [vmem:[%s1091_s25 + $0x90] sm:$0xff]  ;;  %v241_v30 = vld [vmem:[%s1091_s25 + $0x78] sm:$0xff] }
  0x18   : > { %976 = vmatmul.mubr.msk.f32.vlgmr.msra.gmra.mxu0 %vm276_vm1, %v1116_v19  ;;  %979 = vmatmul.mubr.msk.f32.vlgmr.msra.gmra.mxu1 %vm276_vm1, %v1116_v19  ;;  %v243_v31 = vld [vmem:[%s1091_s25 + $0x88] sm:$0xff]  ;;  %v233_v33 = vld [vmem:[%s1091_s25 + $0x38] sm:$0xff]  ;;  %v230_v34 = vld [vmem:[%s1091_s25 + $0x20] sm:$0xff] }
  0x19   : > { %980 = vmatprep.subr.msk.mxu0 %vm280_vm0, %v264_v20  ;;  %983 = vmatprep.subr.msk.mxu1 %vm280_vm0, %v266_v21  ;;  %v231_v32 = vld [vmem:[%s1091_s25 + $0x28] sm:$0xff]  ;;  %v232_v35 = vld [vmem:[%s1091_s25 + $0x30] sm:$0xff]  ;;  %v269_v38 = vld [vmem:[%s1091_s25 + $0x158] sm:$0x7] }
  0x1a   : > { %981 = vmatpush1.msk.msra.mxu0 %vm280_vm0, %v263_v22  ;;  %984 = vmatpush1.msk.msra.mxu1 %vm280_vm0, %v265_v23  ;;  %v268_v36 = vld [vmem:[%s1091_s25 + $0x150] sm:$0x7]  ;;  %v267_v37 = vld [vmem:[%s1091_s25 + $0x148] sm:$0x7]  ;;  %v257_v39 = vld [vmem:[%s1091_s25 + $0xf8] sm:$0xff] }
  0x1b   : > { %482 = vmatprep.subr.mxu0 %v253_v24  ;;  %553 = vmatprep.subr.mxu1 %v255_v25  ;;  %v256_v40 = vld [vmem:[%s1091_s25 + $0xf0] sm:$0xff]  ;;  %v258_v41 = vld [vmem:[%s1091_s25 + $0x100] sm:$0xff]  ;;  %v245_v43 = vld [vmem:[%s1091_s25 + $0x98] sm:$0xff] }
  0x1c   : > { %483 = vmatpush1.msra.mxu0 %v252_v26  ;;  %554 = vmatpush1.msra.mxu1 %v254_v27  ;;  %v246_v42 = vld [vmem:[%s1091_s25 + $0xa0] sm:$0xff]  ;;  %v247_v44 = vld [vmem:[%s1091_s25 + $0xa8] sm:$0xff]  ;;  %v236_v47 = vld [vmem:[%s1091_s25 + $0x50] sm:$0xff] }
  0x1d   : > { %484 = vmatprep.subr.mxu0 %v242_v28  ;;  %555 = vmatprep.subr.mxu1 %v244_v29  ;;  %v235_v45 = vld [vmem:[%s1091_s25 + $0x48] sm:$0xff]  ;;  %v234_v46 = vld [vmem:[%s1091_s25 + $0x40] sm:$0xff] }
  0x1e   : > { %485 = vmatpush1.msra.mxu0 %v241_v30  ;;  %556 = vmatpush1.msra.mxu1 %v243_v31 }
  0x1f   : > { %486 = vmatprep.subr.mxu0 %v231_v32  ;;  %557 = vmatprep.subr.mxu1 %v233_v33 }
  0x20   : > { %487 = vmatpush1.msra.mxu0 %v230_v34  ;;  %520 = vmatprep.mubr.f32.mxu0 %v1039_v0 }
  0x21   : > { %558 = vmatpush1.msra.mxu1 %v232_v35  ;;  %591 = vmatprep.mubr.f32.mxu1 %v1039_v0 }
  0x22   : > { %982 = vmatmul.mubr.msk.f32.vlgmr.msra.gmra.mxu0 %vm276_vm1, %v1116_v19  ;;  %985 = vmatmul.mubr.msk.f32.vlgmr.msra.gmra.mxu1 %vm276_vm1, %v1116_v19 }
  0x23   : > { %986 = vmatprep.subr.msk.mxu0 %vm280_vm0, %v268_v36  ;;  %998 = vmatprep.subr.mxu1 %v1039_v0 }
  0x24   : > { %987 = vmatpush1.msk.msra.mxu0 %vm280_vm0, %v267_v37  ;;  %999 = vmatpush3.msk.msra.mxu1 %vm280_vm0, %v269_v38 }
  0x25   : > { %624 = vmatprep.subr.mxu0 %v257_v39  ;;  %1000 = vmatprep.subr.mxu1 %v1039_v0 }
  0x26   : > { %625 = vmatpush1.msra.mxu0 %v256_v40  ;;  %1001 = vmatpush3.msra.mxu1 %v258_v41 }
  0x27   : > { %626 = vmatprep.subr.mxu0 %v246_v42  ;;  %1002 = vmatprep.subr.mxu1 %v1039_v0 }
  0x28   : > { %627 = vmatpush1.msra.mxu0 %v245_v43  ;;  %1003 = vmatpush3.msra.mxu1 %v247_v44 }
  0x29   : > { %628 = vmatprep.subr.mxu0 %v235_v45  ;;  %1004 = vmatprep.subr.mxu1 %v1039_v0 }
  0x2a   : > { %629 = vmatpush1.msra.mxu0 %v234_v46  ;;  %662 = vmatprep.mubr.f32.mxu0 %v1039_v0 }
  0x2b   : > { %1005 = vmatpush3.msra.mxu1 %v236_v47  ;;  %1006 = vmatprep.mubr.msk.f32.mxu1 %vm1041_vm2, %v1039_v0 }
  0x2c   : > { %988 = vmatmul.mubr.msk.f32.vlgmr.msra.gmra.mxu0 %vm276_vm1, %v1116_v19  ;;  %1007 = vmatmul.mubr.msk.f32.vlgmr.msra.gmra.mxu1 %vm276_vm1, %v1116_v19 }
  0x89   : > { %v274_v48 = vpop.permute.xlu0 %273 }
  0xd8   : > { %v380_v49 = vpop.f32.mrf.mxu0  ;;  %v451_v50 = vpop.f32.mrf.mxu1 }
  0xd9   : > { %v381_v51 = vadd.f32 %v380_v49, %v274_v48  ;;  %v452_v54 = vadd.f32 %v451_v50, %v274_v48 }
  0xda   : > { %v382_v52 = vpop.f32.mrf.mxu0  ;;  %v453_v53 = vpop.f32.mrf.mxu1 }
  0xdb   : > { %v383_v55 = vadd.f32 %v382_v52, %v274_v48  ;;  %v740_v56 = vsel %vm739_vm3, %v381_v51, 0.0  ;;  %v454_v58 = vadd.f32 %v453_v53, %v274_v48  ;;  %v743_v60 = vsel %vm739_vm3, %v452_v54, 0.0 }
  0xdd   : > { %v741_v57 = vsel %vm739_vm3, %v383_v55, 0.0  ;;  %v745_v62 = vsel %vm739_vm3, %v454_v58, 0.0 }
  0xde   : > { %v742_v59 = vadd.f32 %v741_v57, %v740_v56 }
  0xe0   : > { %v744_v61 = vadd.f32 %v743_v60, %v742_v59 }
  0xe2   : > { %v746_v63 = vadd.f32 %v745_v62, %v744_v61  ;;  %v522_v0 = vpop.f32.mrf.mxu0  ;;  %v593_v1 = vpop.f32.mrf.mxu1 }
  0xe3   : > { %v523_v2 = vadd.f32 %v522_v0, %v274_v48  ;;  %v594_v6 = vadd.f32 %v593_v1, %v274_v48 }
  0xe4   : > { %v524_v3 = vpop.f32.mrf.mxu0  ;;  %v595_v4 = vpop.f32.mrf.mxu1 }
  0xe5   : > { %v747_v5 = vsel %vm739_vm3, %v523_v2, 0.0  ;;  %v525_v7 = vadd.f32 %v524_v3, %v274_v48  ;;  %v596_v10 = vadd.f32 %v595_v4, %v274_v48  ;;  %v751_v12 = vsel %vm739_vm3, %v594_v6, 0.0 }
  0xe6   : > { %v748_v8 = vadd.f32 %v747_v5, %v746_v63 }
  0xe7   : > { %v749_v9 = vsel %vm739_vm3, %v525_v7, 0.0  ;;  %v753_v14 = vsel %vm739_vm3, %v596_v10, 0.0 }
  0xe8   : > { %v750_v11 = vadd.f32 %v749_v9, %v748_v8 }
  0xea   : > { %v752_v13 = vadd.f32 %v751_v12, %v750_v11 }
  0xec   : > { %v754_v15 = vadd.f32 %v753_v14, %v752_v13  ;;  %v664_v16 = vpop.f32.mrf.mxu0  ;;  %v735_v17 = vpop.f32.mrf.mxu1 }
  0xed   : > { %v665_v18 = vadd.f32 %v664_v16, %v274_v48  ;;  %v736_v22 = vadd.f32 %v735_v17, %v274_v48 }
  0xee   : > { %v666_v19 = vpop.f32.mrf.mxu0  ;;  %v1008_v20 = vpop.f32.mrf.mxu1 }
  0xef   : > { %v755_v21 = vsel %vm739_vm3, %v665_v18, 0.0  ;;  %v667_v23 = vadd.f32 %v666_v19, %v274_v48  ;;  %v760_v27 = vsel %vm759_vm4, %v736_v22, 0.0 }
  0xf0   : > { %v756_v24 = vadd.f32 %v755_v21, %v754_v15 }
  0xf1   : > { %v757_v25 = vsel %vm739_vm3, %v667_v23, 0.0 }
  0xf2   : > { %v758_v26 = vadd.f32 %v757_v25, %v756_v24  ;;  %v846_v25 = vld [vmem:[%s1309_s3] sm:$0x3f] }
  0xf4   : > { %v761_v28 = vadd.f32 %v760_v27, %v758_v26  ;;  %v847_v26 = vld [vmem:[%s1309_s3 + $0x8] sm:$0x3f]  ;;  %v848_v27 = vld [vmem:[%s1309_s3 + $0x10] sm:$0x3f] }
  0xf6   : > { %762 = vadd.xlane.f32.xlu0 %v761_v28 }
 0x17f   : > { %v763_v29 = vpop.xlane.xlu0 %762 }
 0x180   : > { %v764_v30 = vrot.slane %v763_v29, 4 }
 0x182   : > { %v765_v31 = vadd.f32 %v764_v30, %v763_v29  ;;  %v849_v29 = vld [vmem:[%s1309_s3 + $0x18] sm:$0x3f]  ;;  %v850_v30 = vld [vmem:[%s1309_s3 + $0x20] sm:$0x3f] }
 0x184   : > { %v766_v32 = vrot.slane %v765_v31, 2 }
 0x186   : > { %v767_v33 = vadd.f32 %v766_v32, %v765_v31  ;;  %v851_v31 = vld [vmem:[%s1309_s3 + $0x28] sm:$0x3f] }
 0x188   : > { %v768_v34 = vrot.slane %v767_v33, 1 }
 0x18a   : > { %v769_v35 = vadd.f32 %v768_v34, %v767_v33 }
 0x18c   : > { %1011 = vpush %v769_v35 }
 0x1bd   : > { %s1012_s28 = spop %1011 }
 0x1be   : > { %s773_s29 = smul.f32 0.00012860082, %s1012_s28 }
 0x1c0   : > { %v774_v36 = vstv %s773_s29 }
 0x1c1   : > { %v1184_v37 = vsub.f32 %v381_v51, %v774_v36  ;;  %v1186_v38 = vsub.f32 %v383_v55, %v774_v36  ;;  %v1188_v39 = vsub.f32 %v452_v54, %v774_v36  ;;  %v1190_v40 = vsub.f32 %v454_v58, %v774_v36 }
 0x1c2   : > { %v1194_v42 = vsub.f32 %v523_v2, %v774_v36  ;;  %v1200_v45 = vsub.f32 %v525_v7, %v774_v36  ;;  %v1206_v50 = vsub.f32 %v594_v6, %v774_v36  ;;  %v782_v54 = vsub.f32 %v596_v10, %v774_v36 }
 0x1c3   : > { %v786_v41 = vmul.f32 %v1184_v37, %v1184_v37  ;;  %v787_v43 = vmul.f32 %v1186_v38, %v1186_v38  ;;  %v788_v44 = vmul.f32 %v1188_v39, %v1188_v39  ;;  %v789_v46 = vmul.f32 %v1190_v40, %v1190_v40 }
 0x1c4   : > { %v790_v51 = vmul.f32 %v1194_v42, %v1194_v42  ;;  %v791_v55 = vmul.f32 %v1200_v45, %v1200_v45  ;;  %v783_v58 = vsub.f32 %v665_v18, %v774_v36  ;;  %v792_v59 = vmul.f32 %v1206_v50, %v1206_v50 }
 0x1c5   : > { %v797_v47 = vsel %vm739_vm3, %v786_v41, 0.0  ;;  %v798_v48 = vsel %vm739_vm3, %v787_v43, 0.0  ;;  %v800_v52 = vsel %vm739_vm3, %v788_v44, 0.0  ;;  %v802_v56 = vsel %vm739_vm3, %v789_v46, 0.0  ;;  %v853_v41 = vld [vmem:[%s1309_s3 + $0x38] sm:$0x3f] }
 0x1c6   : > { %v799_v49 = vadd.f32 %v798_v48, %v797_v47  ;;  %v804_v60 = vsel %vm739_vm3, %v790_v51, 0.0  ;;  %v784_v62 = vsub.f32 %v667_v23, %v774_v36  ;;  %v793_v63 = vmul.f32 %v782_v54, %v782_v54  ;;  %v854_v43 = vld [vmem:[%s1309_s3 + $0x40] sm:$0x3f]  ;;  %v856_v46 = vld [vmem:[%s1309_s3 + $0x50] sm:$0x3f] }
 0x1c7   : > { %v806_v0 = vsel %vm739_vm3, %v791_v55, 0.0  ;;  %v785_v2 = vsub.f32 %v736_v22, %v774_v36  ;;  %v794_v3 = vmul.f32 %v783_v58, %v783_v58  ;;  %v808_v4 = vsel %vm739_vm3, %v792_v59, 0.0  ;;  %v852_v36 = vld [vmem:[%s1309_s3 + $0x30] sm:$0x3f]  ;;  %v868_v47 = vld [vmem:[%s1310_s4] sm:$0x3f] }
 0x1c8   : > { %v801_v53 = vadd.f32 %v800_v52, %v799_v49  ;;  %v795_v6 = vmul.f32 %v784_v62, %v784_v62  ;;  %v810_v7 = vsel %vm739_vm3, %v793_v63, 0.0  ;;  %v871_v52 = vld [vmem:[%s1310_s4 + $0x18] sm:$0x3f]  ;;  %v874_v59 = vld [vmem:[%s1310_s4 + $0x30] sm:$0x3f] }
 0x1c9   : > { %v796_v9 = vmul.f32 %v785_v2, %v785_v2  ;;  %v812_v10 = vsel %vm739_vm3, %v794_v3, 0.0 }
 0x1ca   : > { %v803_v57 = vadd.f32 %v802_v56, %v801_v53  ;;  %v814_v12 = vsel %vm739_vm3, %v795_v6, 0.0 }
 0x1cb   : > { %v816_v14 = vsel %vm759_vm4, %v796_v9, 0.0 }
 0x1cc   : > { %v805_v61 = vadd.f32 %v804_v60, %v803_v57  ;;  %v872_v57 = vld [vmem:[%s1310_s4 + $0x20] sm:$0x3f] }
 0x1ce   : > { %v807_v1 = vadd.f32 %v806_v0, %v805_v61  ;;  %v875_v0 = vld [vmem:[%s1310_s4 + $0x38] sm:$0x3f] }
 0x1d0   : > { %v809_v5 = vadd.f32 %v808_v4, %v807_v1  ;;  %v876_v1 = vld [vmem:[%s1310_s4 + $0x40] sm:$0x3f] }
 0x1d2   : > { %v811_v8 = vadd.f32 %v810_v7, %v809_v5  ;;  %v878_v5 = vld [vmem:[%s1310_s4 + $0x50] sm:$0x3f] }
 0x1d4   : > { %v813_v11 = vadd.f32 %v812_v10, %v811_v8 }
 0x1d6   : > { %v815_v13 = vadd.f32 %v814_v12, %v813_v11 }
 0x1d8   : > { %v817_v15 = vadd.f32 %v816_v14, %v815_v13 }
 0x1da   : > { %818 = vadd.xlane.f32.xlu1 %v817_v15 }
 0x263   : > { %v819_v16 = vpop.xlane.xlu1 %818 }
 0x264   : > { %v820_v17 = vrot.slane %v819_v16, 4 }
 0x266   : > { %v821_v18 = vadd.f32 %v820_v17, %v819_v16 }
 0x268   : > { %v822_v19 = vrot.slane %v821_v18, 2 }
 0x26a   : > { %v823_v20 = vadd.f32 %v822_v19, %v821_v18 }
 0x26c   : > { %v824_v21 = vrot.slane %v823_v20, 1 }
 0x26e   : > { %v825_v22 = vadd.f32 %v824_v21, %v823_v20 }
 0x270   : > { %1013 = vpush %v825_v22 }
 0x2a1   : > { %s1014_s30 = spop %1013 }
 0x2a2   : > { %s829_s6 = smul.f32 0.00012860082, %s1014_s30 }
 0x2a4   : > { %s830_s7 = sadd.f32 1e-05, %s829_s6 }
 0x2a6   : > { %v831_v23 = vstv %s830_s7 }
 0x2a7   : > { %1029 = vrsqrt.f32 %v831_v23 }
 0x2b4   : > { %v1030_v24 = vpop.eup %1029 }
 0x2b5   : > { %1015 = vpush %v1030_v24 }
 0x2e6   : > { %s1016_s9 = spop %1015 }
 0x2e7   : > { %v834_v28 = vstv %s1016_s9 }
 0x2e8   : > { %v835_v32 = vmul.f32 %v834_v28, %v1184_v37  ;;  %v836_v33 = vmul.f32 %v834_v28, %v1186_v38  ;;  %v837_v34 = vmul.f32 %v834_v28, %v1188_v39  ;;  %v838_v35 = vmul.f32 %v834_v28, %v1190_v40  ;;  %v855_v40 = vld [vmem:[%s1309_s3 + $0x48] sm:$0x3f] }
 0x2e9   : > { %v839_v37 = vmul.f32 %v834_v28, %v1194_v42  ;;  %v840_v38 = vmul.f32 %v834_v28, %v1200_v45  ;;  %v841_v39 = vmul.f32 %v834_v28, %v1206_v50  ;;  %v842_v44 = vmul.f32 %v834_v28, %v782_v54  ;;  %v869_v45 = vld [vmem:[%s1310_s4 + $0x8] sm:$0x3f]  ;;  %v870_v50 = vld [vmem:[%s1310_s4 + $0x10] sm:$0x3f] }
 0x2ea   : > { %v843_v48 = vmul.f32 %v834_v28, %v783_v58  ;;  %v844_v49 = vmul.f32 %v834_v28, %v784_v62  ;;  %v845_v42 = vmul.f32 %v834_v28, %v785_v2  ;;  %v857_v51 = vmul.f32 %v846_v25, %v835_v32  ;;  %v873_v58 = vld [vmem:[%s1310_s4 + $0x28] sm:$0x3f] }
 0x2eb   : > { %v858_v53 = vmul.f32 %v847_v26, %v836_v33  ;;  %v859_v54 = vmul.f32 %v848_v27, %v837_v34  ;;  %v860_v55 = vmul.f32 %v849_v29, %v838_v35  ;;  %v861_v56 = vmul.f32 %v850_v30, %v839_v37  ;;  %v877_v2 = vld [vmem:[%s1310_s4 + $0x48] sm:$0x3f] }
 0x2ec   : > { %v862_v60 = vmul.f32 %v851_v31, %v840_v38  ;;  %v863_v61 = vmul.f32 %v852_v36, %v841_v39  ;;  %v864_v62 = vmul.f32 %v853_v41, %v842_v44  ;;  %v865_v63 = vmul.f32 %v854_v43, %v843_v48 }
 0x2ed   : > { %v866_v3 = vmul.f32 %v855_v40, %v844_v49  ;;  %v867_v4 = vmul.f32 %v856_v46, %v845_v42  ;;  %v879_v6 = vadd.f32 %v868_v47, %v857_v51  ;;  %v880_v7 = vadd.f32 %v869_v45, %v858_v53 }
 0x2ee   : > { %v881_v8 = vadd.f32 %v870_v50, %v859_v54  ;;  %v882_v9 = vadd.f32 %v871_v52, %v860_v55  ;;  %v883_v10 = vadd.f32 %v872_v57, %v861_v56  ;;  %v884_v11 = vadd.f32 %v873_v58, %v862_v60 }
 0x2ef   : > { %v885_v12 = vadd.f32 %v874_v59, %v863_v61  ;;  %v886_v13 = vadd.f32 %v875_v0, %v864_v62  ;;  %v887_v14 = vadd.f32 %v876_v1, %v865_v63  ;;  %v888_v15 = vadd.f32 %v877_v2, %v866_v3 }
 0x2f0   : > { %v889_v16 = vadd.f32 %v878_v5, %v867_v4  ;;  %v890_v17 = vmax.f32 %v879_v6, 0.0  ;;  %v891_v18 = vmax.f32 %v880_v7, 0.0  ;;  %v892_v19 = vmax.f32 %v881_v8, 0.0 }
 0x2f1   : > { %v893_v20 = vmax.f32 %v882_v9, 0.0  ;;  %v894_v21 = vmax.f32 %v883_v10, 0.0  ;;  %v895_v22 = vmax.f32 %v884_v11, 0.0  ;;  %v896_v23 = vmax.f32 %v885_v12, 0.0 }
 0x2f2   : > { %v897_v24 = vmax.f32 %v886_v13, 0.0  ;;  %v898_v25 = vmax.f32 %v887_v14, 0.0  ;;  %v899_v26 = vmax.f32 %v888_v15, 0.0  ;;  %v900_v27 = vmax.f32 %v889_v16, 0.0  ;;  %901 = vst [vmem:[%s224_s12] sm:$0x3f] %v890_v17 }
 0x2f3   : > { %902 = vst [vmem:[%s224_s12 + $0x8] sm:$0x3f] %v891_v18  ;;  %903 = vst [vmem:[%s224_s12 + $0x10] sm:$0x3f] %v892_v19 }
 0x2f4   : > { %904 = vst [vmem:[%s224_s12 + $0x18] sm:$0x3f] %v893_v20  ;;  %905 = vst [vmem:[%s224_s12 + $0x20] sm:$0x3f] %v894_v21 }
 0x2f5   : > { %906 = vst [vmem:[%s224_s12 + $0x28] sm:$0x3f] %v895_v22  ;;  %907 = vst [vmem:[%s224_s12 + $0x30] sm:$0x3f] %v896_v23 }
 0x2f6   : > { %908 = vst [vmem:[%s224_s12 + $0x38] sm:$0x3f] %v897_v24  ;;  %909 = vst [vmem:[%s224_s12 + $0x40] sm:$0x3f] %v898_v25 }
 0x2f7   : > { %910 = vst [vmem:[%s224_s12 + $0x48] sm:$0x3f] %v899_v26  ;;  %911 = vst.msk [vmem:[%s224_s12 + $0x50] sm:$0x3f] %vm759_vm4, %v900_v27 }
 0x2f8 PF: > { %s15_s18 = sadd.s32 1, %s1037_s18  }
 0x2f9   : > { %p12_p4 = scmp.ge.s32.totalorder %s15_s18, 8  }
 0x2fb   :  { %14 = sbr.rel (!%p12_p4) target bundleno = 1 (0x1), region = 70 }

// kernel: cmm_forward.8
= control target key start
LH: loop header
LB: loop body
LE: loop exit
PB: predicated region body
PF: predicated region fallthrough
CT: control target
= control target key end

     0   :  { %s671_s12 = smov 0   ;;  %s673_s13 = smov 0   ;;  %s757_s0 = inlined_call_operand.vmem [shape: f32[2,3,12,289], index: 0, kind: input, shape index: {}, may-alias: {0,1}]   ;;  %s758_s1 = inlined_call_operand.vmem [shape: f32[2,3,12,289], index: 1, kind: input, shape index: {}, may-alias: {0,1}]   ;;  %s759_s2 = inlined_call_operand.vmem [shape: f32[2,2,12,289], index: 2, kind: output, shape index: {0}]   ;;  %s760_s3 = inlined_call_operand.vmem [shape: f32[2,2,2,289], index: 3, kind: output, shape index: {1}]  }
   0x1   :  { %s675_s14 = smov 0   ;;  %s677_s15 = smov 0  }
   0x2   :  { %s679_s16 = smov 0  }
   0x3 LB: > { %s23_s17 = sadd.s32 1, %s640_s14  ;;  %s26_s18 = sadd.s32 1, %s644_s15  ;;  %s648_s16 = sphi %s679_s16, %s14_s16   ;;  %s644_s15 = sphi %s677_s15, %s764_s15   ;;  %s640_s14 = sphi %s675_s14, %s763_s14   ;;  %s636_s13 = sphi %s673_s13, %s762_s13   ;;  %s632_s12 = sphi %s671_s12, %s761_s12  }
   0x4   : > { %p24_p0 = scmp.ge.s32.totalorder %s23_s17, 2  ;;  %p555_p1 = scmp.ge.s32.totalorder %s648_s16, 1 }
   0x5   : > { %p182_p2 = scmp.lt.s32.totalorder %s648_s16, 5 }
   0x6   : > { %s766_s17 = smov (%p24_p0, %s23_s17), 0  ;;  %s768_s18 = smov (!%p24_p0, %s26_s18), %s644_s15 }
   0x7   : > { %p183_p3 = pnand %p555_p1, %p182_p2  ;;  %p28_p4 = scmp.ge.s32.totalorder %s768_s18, 2 }
   0x8   : > { %s233_s19 = sadd.s32 (!%p183_p3), 1, %s632_s12  ;;  %p234_p5 = scmp.lt.s32.totalorder (!%p183_p3), %s636_s13, 1 }
   0x9   : > { %s770_s18 = smov (%p28_p4, %s768_s18), 0  ;;  %186 = sbr.rel (%p183_p3) target bundleno = 54 (0x36), region = 28 }
   0xa   : > { %p236_p6 = scmp.lt.s32.totalorder (!%p183_p3), %s233_s19, 2  ;;  %p246_p7 = scmp.lt.s32.totalorder (!%p183_p3), %s632_s12, 2 }
   0xb   : > { %p255_p8 = scmp.lt.s32.totalorder (!%p183_p3), %s632_s12, 1 }
   0xe   : > { %s772_s13 = smov (!%p234_p5, %s636_s13), 1  ;;  %s774_s19 = smov (!%p236_p6, %s233_s19), 2  ;;  %vm291_vm0 = vcmask 269312   ;;  %vm297_vm1 = vcmask 1043456   ;;  %vm295_vm2 = vcmask 265216   ;;  %v363_v50 = vlaneseq }
   0xf   : > { %s563_s20 = smul.u32 18, %s772_s13  ;;  %v650_v48 = vmov 1983009808   ;;  %vm352_vm3 = vcmask 1040384   ;;  %vm376_vm4 = vcmask 1041408   ;;  %vm377_vm5 = vcmask 1043458  }
  0x10   : > { %s562_s21 = smul.u32 6, %s774_s19  ;;  %v361_v49 = vunpack.c.l.s4 %v650_v48  ;;  %vm378_vm6 = vmor %vm377_vm5, %vm376_vm4  ;;  %vm379_vm7 = vcmask 267268  }
  0x11   : > { %s247_s22 = scalar_select %p246_p7, %s632_s12, 2  ;;  %vm380_vm8 = vmor %vm379_vm7, %vm378_vm6 }
  0x12   : > { %s240_s23 = sadd.s32 %s563_s20, %s562_s21  ;;  %s566_s4 = smul.u32 12, %s772_s13  ;;  %v362_v63 = vunpack.c.0.s8 %v361_v49 }
  0x13   : > { %s556_s24 = sshll.u32 %s240_s23, 3  ;;  %s564_s25 = smul.u32 6, %s247_s22 }
  0x14   : > { %s242_s28 = scalar_lea.vmem %s757_s0, %s556_s24  ;;  %s776_s12 = smov (!%p255_p8, %s632_s12), 1 }
  0x15   : > { %s250_s29 = sadd.s32 %s564_s25, %s563_s20  ;;  %v271_v0 = vld [vmem:[%s242_s28] sm:$0xff]  ;;  %v272_v1 = vld [vmem:[%s242_s28 + $0x8] sm:$0xff]  ;;  %v273_v2 = vld [vmem:[%s242_s28 + $0x10] sm:$0xff]  ;;  %s565_s8 = smul.u32 6, %s776_s12 }
  0x16   : > { %s557_s30 = sshll.u32 %s250_s29, 3  ;;  %v274_v3 = vld [vmem:[%s242_s28 + $0x18] sm:$0xf]  ;;  %v275_v4 = vld [vmem:[%s242_s28 + $0x20] sm:$0xf]  ;;  %s568_s21 = smul.u32 6, %s772_s13 }
  0x17   : > { %s252_s7 = scalar_lea.vmem %s758_s1, %s557_s30  ;;  %v276_v5 = vld [vmem:[%s242_s28 + $0x28] sm:$0xf]  ;;  %s259_s9 = sadd.s32 %s566_s4, %s565_s8 }
  0x18   : > { %v277_v6 = vld [vmem:[%s252_s7] sm:$0xff]  ;;  %v278_v7 = vld [vmem:[%s252_s7 + $0x8] sm:$0xff]  ;;  %v279_v8 = vld [vmem:[%s252_s7 + $0x10] sm:$0xff]  ;;  %s558_s10 = sshll.u32 %s259_s9, 3  ;;  %s567_s22 = smul.u32 3, %s776_s12 }
  0x19   : > { %v283_v9 = vsub.f32 %v271_v0, %v277_v6  ;;  %v284_v10 = vsub.f32 %v272_v1, %v278_v7  ;;  %v285_v11 = vsub.f32 %v273_v2, %v279_v8  ;;  %v280_v12 = vld [vmem:[%s252_s7 + $0x18] sm:$0xf]  ;;  %v281_v13 = vld [vmem:[%s252_s7 + $0x20] sm:$0xf]  ;;  %v282_v14 = vld [vmem:[%s252_s7 + $0x28] sm:$0xf]  ;;  %s261_s20 = scalar_lea.vmem %s759_s2, %s558_s10 }
  0x1a   : > { %v286_v15 = vsub.f32 %v274_v3, %v280_v12  ;;  %v287_v16 = vsub.f32 %v275_v4, %v281_v13  ;;  %v288_v17 = vsub.f32 %v276_v5, %v282_v14  ;;  %v364_v0 = vshrl.u32 %v363_v50, 7  ;;  %s268_s13 = sadd.s32 %s568_s21, %s567_s22 }
  0x1b   : > { %v314_v18 = vsel %vm291_vm0, %v285_v11, -inf  ;;  %v339_v19 = vsel %vm291_vm0, %v285_v11, 0.0  ;;  %289 = vst [vmem:[%s261_s20] sm:$0xff] %v283_v9  ;;  %290 = vst [vmem:[%s261_s20 + $0x8] sm:$0xff] %v284_v10  ;;  %s559_s12 = sshll.u32 %s268_s13, 1 }
  0x1c   : > { %v298_v20 = vsel %vm297_vm1, %v286_v15, -inf  ;;  %v323_v21 = vsel %vm297_vm1, %v286_v15, 0.0  ;;  %v306_v22 = vsel %vm297_vm1, %v287_v16, -inf  ;;  %v331_v23 = vsel %vm297_vm1, %v287_v16, 0.0  ;;  %292 = vst.msk [vmem:[%s261_s20 + $0x10] sm:$0xff] %vm291_vm0, %v285_v11  ;;  %s270_s25 = scalar_lea.vmem %s760_s3, %s559_s12 }
  0x1d   : > { %v299_v24 = vmax.f32 %v283_v9, %v298_v20  ;;  %v324_v25 = vadd.f32 %v323_v21, %v283_v9  ;;  %v307_v26 = vmax.f32 %v284_v10, %v306_v22  ;;  %v332_v27 = vadd.f32 %v331_v23, %v284_v10  ;;  %293 = vst [vmem:[%s261_s20 + $0x18] sm:$0xf] %v286_v15 }
  0x1e   : > { %v315_v28 = vsel %vm295_vm2, %v288_v17, -inf  ;;  %v340_v29 = vsel %vm295_vm2, %v288_v17, 0.0  ;;  %294 = vst [vmem:[%s261_s20 + $0x20] sm:$0xf] %v287_v16  ;;  %296 = vst.msk [vmem:[%s261_s20 + $0x28] sm:$0xf] %vm295_vm2, %v288_v17  ;;  %v365_v11 = vsub.s32 %v362_v63, %v364_v0 }
  0x1f   : > { %v300_v30 = vrot.slane %v299_v24, 4  ;;  %v325_v31 = vrot.slane %v324_v25, 4  ;;  %v308_v32 = vrot.slane %v307_v26, 4  ;;  %v333_v33 = vrot.slane %v332_v27, 4 }
  0x20   : > { %v316_v34 = vmax.f32 %v314_v18, %v315_v28  ;;  %v341_v35 = vadd.f32 %v340_v29, %v339_v19 }
  0x21   : > { %v301_v36 = vmax.f32 %v299_v24, %v300_v30  ;;  %v326_v37 = vadd.f32 %v325_v31, %v324_v25  ;;  %v309_v38 = vmax.f32 %v307_v26, %v308_v32  ;;  %v334_v39 = vadd.f32 %v333_v33, %v332_v27 }
  0x22   : > { %v317_v40 = vrot.slane %v316_v34, 4  ;;  %v342_v41 = vrot.slane %v341_v35, 4 }
  0x23   : > { %v302_v42 = vrot.slane %v301_v36, 2  ;;  %v327_v43 = vrot.slane %v326_v37, 2  ;;  %v310_v44 = vrot.slane %v309_v38, 2  ;;  %v335_v45 = vrot.slane %v334_v39, 2 }
  0x24   : > { %v318_v46 = vmax.f32 %v316_v34, %v317_v40  ;;  %v343_v47 = vadd.f32 %v342_v41, %v341_v35 }
  0x25   : > { %v303_v51 = vmax.f32 %v301_v36, %v302_v42  ;;  %v328_v52 = vadd.f32 %v327_v43, %v326_v37  ;;  %v311_v53 = vmax.f32 %v309_v38, %v310_v44  ;;  %v336_v54 = vadd.f32 %v335_v45, %v334_v39 }
  0x26   : > { %v319_v55 = vrot.slane %v318_v46, 2  ;;  %v344_v56 = vrot.slane %v343_v47, 2 }
  0x27   : > { %v329_v57 = vrot.slane %v328_v52, 1  ;;  %v337_v58 = vrot.slane %v336_v54, 1  ;;  %v304_v59 = vrot.slane %v303_v51, 1  ;;  %v312_v60 = vrot.slane %v311_v53, 1 }
  0x28   : > { %v320_v61 = vmax.f32 %v318_v46, %v319_v55  ;;  %v345_v62 = vadd.f32 %v344_v56, %v343_v47 }
  0x29   : > { %v305_v1 = vmax.f32 %v303_v51, %v304_v59  ;;  %v313_v2 = vmax.f32 %v311_v53, %v312_v60  ;;  %v330_v3 = vadd.f32 %v329_v57, %v328_v52  ;;  %v338_v4 = vadd.f32 %v337_v58, %v336_v54 }
  0x2a   : > { %v321_v5 = vrot.slane %v320_v61, 1  ;;  %v346_v6 = vrot.slane %v345_v62, 1 }
  0x2b   : > { %v349_v7 = vmul.f32 0.083333336, %v330_v3  ;;  %v350_v8 = vmul.f32 0.083333336, %v338_v4 }
  0x2c   : > { %v322_v9 = vmax.f32 %v320_v61, %v321_v5  ;;  %v347_v10 = vadd.f32 %v346_v6, %v345_v62 }
  0x2d   : > { %v353_v12 = vsel %vm352_vm3, %v305_v1, %v349_v7  ;;  %v354_v13 = vsel %vm352_vm3, %v313_v2, %v350_v8 }
  0x2e   : > { %v351_v14 = vmul.f32 0.083333336, %v347_v10  ;;  %v359_v15 = vcombine.low %v353_v12, %v354_v13 }
  0x30   : > { %v355_v16 = vsel %vm352_vm3, %v322_v9, %v351_v14  ;;  %v366_v17 = vrot.slane %v359_v15, %v365_v11 }
  0x31   : > { %v373_v18 = vrot.slane %v355_v16, %v365_v11 }
  0x33   : > { %v374_v19 = vcombine.low %v366_v17, %v373_v18 }
  0x35   : > { %381 = vst.msk [vmem:[%s270_s25] sm:$0x3f] %vm380_vm8, %v374_v19 }
  0x36 PF: > { %s14_s16 = sadd.s32 1, %s648_s16   ;;  %s761_s12 = smov %s640_s14 }
  0x37   : > { %p11_p9 = scmp.ge.s32.totalorder %s14_s16, 6   ;;  %s762_s13 = smov %s644_s15 }
  0x38   : > { %s763_s14 = smov %s766_s17  ;;  %s764_s15 = smov %s770_s18 }
  0x39   :  { %13 = sbr.rel (!%p11_p9) target bundleno = 3 (0x3), region = 73 }

// kernel: cmm_forward.7
= control target key start
LH: loop header
LB: loop body
LE: loop exit
PB: predicated region body
PF: predicated region fallthrough
CT: control target
= control target key end

     0   :  { %s692_s18 = smov 0   ;;  %s804_s0 = inlined_call_operand.vmem [shape: f32[6,54,289], index: 0, kind: input, shape index: {}]   ;;  %s805_s1 = inlined_call_operand.vmem [shape: f32[12,54], index: 1, kind: input, shape index: {}]   ;;  %s806_s2 = inlined_call_operand.vmem [shape: f32[12,1], index: 2, kind: input, shape index: {}]   ;;  %s807_s3 = inlined_call_operand.vmem [shape: f32[12,289], index: 3, kind: input, shape index: {}]   ;;  %s808_s4 = inlined_call_operand.vmem [shape: f32[12,289], index: 4, kind: input, shape index: {}]   ;;  %s809_s5 = inlined_call_operand.vmem [shape: f32[6,12,289], index: 5, kind: output, shape index: {}]  }
   0x1 LB: > { %s589_s19 = sadd.s32 4294967295, %s658_s18   ;;  %p593_p0 = scmp.ge.s32.totalorder %s658_s18, 1  ;;  %s658_s18 = sphi %s692_s18, %s15_s18  }
   0x2   : > { %p187_p1 = scmp.lt.s32.totalorder %s658_s18, 7 }
   0x4   : > { %p188_p2 = pnand %p593_p0, %p187_p1 }
   0x5   : > { %p215_p3 = scmp.lt.s32.totalorder (!%p188_p2), %s589_s19, 5 }
   0x6   : > { %191 = sbr.rel (%p188_p2) target bundleno = 735 (0x2df), region = 40 }
   0xb   : > { %v703_v0 = vld [vmem:[%s805_s1] sm:$0xff]  ;;  %vm260_vm0 = vcmask 441344   ;;  %v660_v1 = vmov 0.0   ;;  %s811_s19 = smov (!%p215_p3, %s589_s19), 5  ;;  %v661_v3 = vmov 0   ;;  %vm267_vm1 = vcmask 1045504  }
   0xc   : > { %341 = vmatprep.mubr.f32.mxu0 %v660_v1  ;;  %628 = vmatprep.mubr.msk.f32.mxu1 %vm260_vm0, %v703_v0  ;;  %v248_v2 = vld [vmem:[%s806_s2] sm:$0xff]  ;;  %s631_s24 = smul.u32 168, %s811_s19  ;;  %v249_v4 = vld [vmem:[%s806_s2 + $0x8] sm:$0xf]  ;;  %vm430_vm2 = vcmask 269312   ;;  %vm433_vm3 = vcmask 1043456  }
   0xd   : > { %649 = vset.pattern.permute.xlu0 %v661_v3  ;;  %v226_v26 = vld [vmem:[%s805_s1 + $0x8] sm:$0xf]  ;;  %vm438_vm4 = vcmask 265216  }
   0xe   : > { %252 = vperm.xlu0 %649, %v248_v2   ;;  %s720_s29 = scalar_lea.vmem %s804_s0, %s631_s24 }
   0xf   : > { %v246_v5 = vld [vmem:[%s720_s29 + $0x98] sm:$0x3f]  ;;  %v247_v6 = vld [vmem:[%s720_s29 + $0xa0] sm:$0x3f]  ;;  %v245_v7 = vld [vmem:[%s720_s29 + $0x90] sm:$0x3f] }
  0x10   : > { %596 = vmatprep.subr.msk.mxu0 %vm267_vm1, %v246_v5  ;;  %614 = vmatprep.subr.msk.mxu1 %vm267_vm1, %v247_v6  ;;  %v243_v8 = vld [vmem:[%s720_s29 + $0x80] sm:$0xff]  ;;  %v244_v9 = vld [vmem:[%s720_s29 + $0x88] sm:$0xff]  ;;  %v242_v10 = vld [vmem:[%s720_s29 + $0x78] sm:$0xff] }
  0x11   : > { %597 = vmatpush1.msk.msra.mxu0 %vm267_vm1, %v245_v7  ;;  %615 = vmatpush3.msk.msra.mxu1 %vm267_vm1, %v247_v6  ;;  %v240_v11 = vld [vmem:[%s720_s29 + $0x68] sm:$0xff]  ;;  %v241_v12 = vld [vmem:[%s720_s29 + $0x70] sm:$0xff]  ;;  %v239_v13 = vld [vmem:[%s720_s29 + $0x60] sm:$0xff] }
  0x12   : > { %257 = vperm.xlu0 %649, %v249_v4   ;;  %297 = vmatprep.subr.mxu0 %v243_v8  ;;  %v237_v14 = vld [vmem:[%s720_s29 + $0x50] sm:$0xff]  ;;  %v238_v15 = vld [vmem:[%s720_s29 + $0x58] sm:$0xff]  ;;  %v236_v16 = vld [vmem:[%s720_s29 + $0x48] sm:$0xff] }
  0x13   : > { %616 = vmatprep.subr.mxu1 %v244_v9  ;;  %298 = vmatpush1.msra.mxu0 %v242_v10  ;;  %v234_v17 = vld [vmem:[%s720_s29 + $0x38] sm:$0xff]  ;;  %v235_v18 = vld [vmem:[%s720_s29 + $0x40] sm:$0xff]  ;;  %v233_v19 = vld [vmem:[%s720_s29 + $0x30] sm:$0xff] }
  0x14   : > { %617 = vmatpush3.msra.mxu1 %v244_v9  ;;  %299 = vmatprep.subr.mxu0 %v240_v11  ;;  %v231_v20 = vld [vmem:[%s720_s29 + $0x20] sm:$0xff]  ;;  %v232_v21 = vld [vmem:[%s720_s29 + $0x28] sm:$0xff]  ;;  %v230_v22 = vld [vmem:[%s720_s29 + $0x18] sm:$0xff] }
  0x15   : > { %618 = vmatprep.subr.mxu1 %v241_v12  ;;  %300 = vmatpush1.msra.mxu0 %v239_v13  ;;  %v228_v23 = vld [vmem:[%s720_s29 + $0x8] sm:$0xff]  ;;  %v229_v24 = vld [vmem:[%s720_s29 + $0x10] sm:$0xff]  ;;  %v227_v25 = vld [vmem:[%s720_s29] sm:$0xff]  ;;  %s632_s29 = smul.u32 48, %s811_s19 }
  0x16   : > { %619 = vmatpush3.msra.mxu1 %v241_v12  ;;  %301 = vmatprep.subr.mxu0 %v237_v14 }
  0x17   : > { %620 = vmatprep.subr.mxu1 %v238_v15  ;;  %302 = vmatpush1.msra.mxu0 %v236_v16  ;;  %s224_s16 = scalar_lea.vmem %s809_s5, %s632_s29 }
  0x18   : > { %621 = vmatpush3.msra.mxu1 %v238_v15  ;;  %303 = vmatprep.subr.mxu0 %v234_v17 }
  0x19   : > { %622 = vmatprep.subr.mxu1 %v235_v18  ;;  %304 = vmatpush1.msra.mxu0 %v233_v19 }
  0x1a   : > { %623 = vmatpush3.msra.mxu1 %v235_v18  ;;  %305 = vmatprep.subr.mxu0 %v231_v20 }
  0x1b   : > { %624 = vmatprep.subr.mxu1 %v232_v21  ;;  %306 = vmatpush1.msra.mxu0 %v230_v22 }
  0x1c   : > { %625 = vmatpush3.msra.mxu1 %v232_v21  ;;  %307 = vmatprep.subr.mxu0 %v228_v23 }
  0x1d   : > { %626 = vmatprep.subr.mxu1 %v229_v24  ;;  %308 = vmatpush1.msra.mxu0 %v227_v25 }
  0x1e   : > { %627 = vmatpush3.msra.mxu1 %v229_v24  ;;  %598 = vmatmul.mubr.msk.f32.vlgmr.msra.gmra.mxu0 %vm260_vm0, %v703_v0  ;;  %v498_v24 = vld [vmem:[%s807_s3] sm:$0xff] }
  0x1f   : > { %629 = vmatmul.mubr.msk.f32.vlgmr.msra.gmra.mxu1 %vm260_vm0, %v226_v26  ;;  %347 = vmatprep.mubr.f32.mxu0 %v660_v1 }
  0x22   : > { %599 = vmatmul.mubr.msk.f32.gmra.mxu0 %vm260_vm0, %v226_v26  ;;  %v499_v26 = vld [vmem:[%s807_s3 + $0x8] sm:$0xff] }
  0x89   : > { %v253_v27 = vpop.permute.xlu0 %252 }
  0x8d   : > { %v258_v35 = vpop.permute.xlu0 %257 }
  0xde   : > { %v343_v28 = vpop.f32.mrf.mxu0 }
  0xdf   : > { %v630_v29 = vpop.f32.mrf.mxu1  ;;  %v344_v32 = vadd.f32 %v343_v28, %v253_v27  ;;  %v501_v28 = vld [vmem:[%s807_s3 + $0x18] sm:$0xf] }
  0xe0   : > { %v345_v30 = vpop.f32.mrf.mxu0  ;;  %v426_v44 = vadd.f32 %v630_v29, %v258_v35 }
  0xe1   : > { %v420_v31 = vpop.f32.mrf.mxu1  ;;  %v346_v33 = vadd.f32 %v345_v30, %v253_v27 }
  0xe2   : > { %v421_v34 = vadd.f32 %v420_v31, %v253_v27  ;;  %v349_v36 = vpop.f32.mrf.mxu0  ;;  %v439_v48 = vsel %vm438_vm4, %v426_v44, 0.0  ;;  %v500_v27 = vld [vmem:[%s807_s3 + $0x10] sm:$0xff] }
  0xe3   : > { %v429_v37 = vadd.f32 %v346_v33, %v344_v32  ;;  %v350_v39 = vadd.f32 %v349_v36, %v258_v35 }
  0xe4   : > { %v431_v38 = vsel %vm430_vm2, %v421_v34, 0.0  ;;  %v351_v40 = vpop.f32.mrf.mxu0 }
  0xe5   : > { %v432_v41 = vadd.f32 %v431_v38, %v429_v37  ;;  %v434_v42 = vsel %vm433_vm3, %v350_v39, 0.0  ;;  %v352_v43 = vadd.f32 %v351_v40, %v258_v35  ;;  %v510_v35 = vld [vmem:[%s808_s4] sm:$0xff]  ;;  %v511_v38 = vld [vmem:[%s808_s4 + $0x8] sm:$0xff]  ;;  %v513_v40 = vld [vmem:[%s808_s4 + $0x18] sm:$0xf] }
  0xe7   : > { %v435_v45 = vadd.f32 %v434_v42, %v432_v41  ;;  %v436_v46 = vsel %vm433_vm3, %v352_v43, 0.0 }
  0xe9   : > { %v437_v47 = vadd.f32 %v436_v46, %v435_v45  ;;  %v514_v45 = vld [vmem:[%s808_s4 + $0x20] sm:$0xf]  ;;  %v515_v46 = vld [vmem:[%s808_s4 + $0x28] sm:$0xf] }
  0xeb   : > { %v440_v49 = vadd.f32 %v439_v48, %v437_v47 }
  0xed   : > { %441 = vadd.xlane.f32.xlu1 %v440_v49 }
 0x176   : > { %v442_v50 = vpop.xlane.xlu1 %441 }
 0x177   : > { %v443_v51 = vrot.slane %v442_v50, 4 }
 0x179   : > { %v444_v52 = vadd.f32 %v443_v51, %v442_v50 }
 0x17b   : > { %v445_v53 = vrot.slane %v444_v52, 2 }
 0x17d   : > { %v446_v54 = vadd.f32 %v445_v53, %v444_v52 }
 0x17f   : > { %v447_v55 = vrot.slane %v446_v54, 1 }
 0x181   : > { %v448_v56 = vadd.f32 %v447_v55, %v446_v54 }
 0x183   : > { %633 = vpush %v448_v56 }
 0x1b4   : > { %s634_s7 = spop %633 }
 0x1b5   : > { %s452_s8 = smul.f32 0.00028835062, %s634_s7 }
 0x1b7   : > { %v453_v57 = vstv %s452_s8 }
 0x1b8   : > { %v454_v58 = vsub.f32 %v344_v32, %v453_v57  ;;  %v455_v59 = vsub.f32 %v346_v33, %v453_v57  ;;  %v456_v60 = vsub.f32 %v421_v34, %v453_v57  ;;  %v457_v61 = vsub.f32 %v350_v39, %v453_v57  ;;  %v502_v33 = vld [vmem:[%s807_s3 + $0x20] sm:$0xf]  ;;  %v503_v34 = vld [vmem:[%s807_s3 + $0x28] sm:$0xf]  ;;  %v512_v39 = vld [vmem:[%s808_s4 + $0x10] sm:$0xff] }
 0x1b9   : > { %v458_v62 = vsub.f32 %v352_v43, %v453_v57  ;;  %v459_v2 = vsub.f32 %v426_v44, %v453_v57 }
 0x1ba   : > { %v460_v63 = vmul.f32 %v454_v58, %v454_v58  ;;  %v461_v0 = vmul.f32 %v455_v59, %v455_v59  ;;  %v462_v1 = vmul.f32 %v456_v60, %v456_v60  ;;  %v463_v3 = vmul.f32 %v457_v61, %v457_v61 }
 0x1bb   : > { %v464_v6 = vmul.f32 %v458_v62, %v458_v62  ;;  %v465_v8 = vmul.f32 %v459_v2, %v459_v2 }
 0x1bc   : > { %v466_v4 = vadd.f32 %v461_v0, %v460_v63  ;;  %v467_v5 = vsel %vm430_vm2, %v462_v1, 0.0  ;;  %v469_v9 = vsel %vm433_vm3, %v463_v3, 0.0 }
 0x1bd   : > { %v471_v11 = vsel %vm433_vm3, %v464_v6, 0.0  ;;  %v473_v13 = vsel %vm438_vm4, %v465_v8, 0.0 }
 0x1be   : > { %v468_v7 = vadd.f32 %v467_v5, %v466_v4 }
 0x1c0   : > { %v470_v10 = vadd.f32 %v469_v9, %v468_v7 }
 0x1c2   : > { %v472_v12 = vadd.f32 %v471_v11, %v470_v10 }
 0x1c4   : > { %v474_v14 = vadd.f32 %v473_v13, %v472_v12 }
 0x1c6   : > { %475 = vadd.xlane.f32.xlu1 %v474_v14 }
 0x24f   : > { %v476_v15 = vpop.xlane.xlu1 %475 }
 0x250   : > { %v477_v16 = vrot.slane %v476_v15, 4 }
 0x252   : > { %v478_v17 = vadd.f32 %v477_v16, %v476_v15 }
 0x254   : > { %v479_v18 = vrot.slane %v478_v17, 2 }
 0x256   : > { %v480_v19 = vadd.f32 %v479_v18, %v478_v17 }
 0x258   : > { %v481_v20 = vrot.slane %v480_v19, 1 }
 0x25a   : > { %v482_v21 = vadd.f32 %v481_v20, %v480_v19 }
 0x25c   : > { %635 = vpush %v482_v21 }
 0x28d   : > { %s636_s9 = spop %635 }
 0x28e   : > { %s486_s10 = smul.f32 0.00028835062, %s636_s9 }
 0x290   : > { %s487_s11 = sadd.f32 1e-05, %s486_s10 }
 0x292   : > { %v488_v22 = vstv %s487_s11 }
 0x293   : > { %650 = vrsqrt.f32 %v488_v22 }
 0x2a0   : > { %v651_v23 = vpop.eup %650 }
 0x2a1   : > { %637 = vpush %v651_v23 }
 0x2d2   : > { %s638_s12 = spop %637 }
 0x2d3   : > { %v491_v25 = vstv %s638_s12 }
 0x2d4   : > { %v492_v29 = vmul.f32 %v491_v25, %v454_v58  ;;  %v493_v30 = vmul.f32 %v491_v25, %v455_v59  ;;  %v494_v31 = vmul.f32 %v491_v25, %v456_v60  ;;  %v495_v32 = vmul.f32 %v491_v25, %v457_v61 }
 0x2d5   : > { %v496_v36 = vmul.f32 %v491_v25, %v458_v62  ;;  %v497_v37 = vmul.f32 %v491_v25, %v459_v2 }
 0x2d6   : > { %v504_v41 = vmul.f32 %v498_v24, %v492_v29  ;;  %v505_v42 = vmul.f32 %v499_v26, %v493_v30  ;;  %v506_v43 = vmul.f32 %v500_v27, %v494_v31  ;;  %v507_v44 = vmul.f32 %v501_v28, %v495_v32 }
 0x2d7   : > { %v508_v47 = vmul.f32 %v502_v33, %v496_v36  ;;  %v509_v48 = vmul.f32 %v503_v34, %v497_v37 }
 0x2d8   : > { %v516_v49 = vadd.f32 %v510_v35, %v504_v41  ;;  %v517_v50 = vadd.f32 %v511_v38, %v505_v42  ;;  %v518_v51 = vadd.f32 %v512_v39, %v506_v43  ;;  %v519_v52 = vadd.f32 %v513_v40, %v507_v44 }
 0x2d9   : > { %v520_v53 = vadd.f32 %v514_v45, %v508_v47  ;;  %v521_v54 = vadd.f32 %v515_v46, %v509_v48 }
 0x2da   : > { %v522_v55 = vmax.f32 %v516_v49, 0.0  ;;  %v523_v56 = vmax.f32 %v517_v50, 0.0  ;;  %v524_v57 = vmax.f32 %v518_v51, 0.0  ;;  %v525_v58 = vmax.f32 %v519_v52, 0.0 }
 0x2db   : > { %v526_v59 = vmax.f32 %v520_v53, 0.0  ;;  %v527_v60 = vmax.f32 %v521_v54, 0.0 }
 0x2dc   : > { %528 = vst [vmem:[%s224_s16] sm:$0xff] %v522_v55  ;;  %529 = vst [vmem:[%s224_s16 + $0x8] sm:$0xff] %v523_v56 }
 0x2dd   : > { %530 = vst.msk [vmem:[%s224_s16 + $0x10] sm:$0xff] %vm430_vm2, %v524_v57  ;;  %531 = vst [vmem:[%s224_s16 + $0x18] sm:$0xf] %v525_v58 }
 0x2de   : > { %532 = vst [vmem:[%s224_s16 + $0x20] sm:$0xf] %v526_v59  ;;  %533 = vst.msk [vmem:[%s224_s16 + $0x28] sm:$0xf] %vm438_vm4, %v527_v60 }
 0x2df PF: > { %s15_s18 = sadd.s32 1, %s658_s18  }
 0x2e0   : > { %p12_p4 = scmp.ge.s32.totalorder %s15_s18, 8  }
 0x2e2   :  { %14 = sbr.rel (!%p12_p4) target bundleno = 1 (0x1), region = 70 }

// kernel: cmm_forward.9
= control target key start
LH: loop header
LB: loop body
LE: loop exit
PB: predicated region body
PF: predicated region fallthrough
CT: control target
= control target key end

     0   :  { %s784_s18 = smov 0   ;;  %s879_s0 = inlined_call_operand.vmem [shape: f32[4,98,289], index: 0, kind: input, shape index: {}]   ;;  %s880_s1 = inlined_call_operand.vmem [shape: f32[1,98], index: 1, kind: input, shape index: {}]   ;;  %s881_s2 = inlined_call_operand.vmem [shape: f32[1,289], index: 2, kind: input, shape index: {}]   ;;  %s882_s3 = inlined_call_operand.vmem [shape: f32[1,289], index: 3, kind: input, shape index: {}]   ;;  %s883_s4 = inlined_call_operand.vmem [shape: f32[4,12,289], index: 4, kind: input, shape index: {}]   ;;  %s884_s5 = inlined_call_operand.vmem [shape: f32[4,12,289], index: 5, kind: output, shape index: {}]  }
   0x1 LB: > { %s651_s19 = sadd.s32 4294967295, %s750_s18   ;;  %p655_p0 = scmp.ge.s32.totalorder %s750_s18, 1  ;;  %s750_s18 = sphi %s784_s18, %s15_s18  }
   0x2   : > { %p197_p1 = scmp.lt.s32.totalorder %s750_s18, 5 }
   0x4   : > { %p198_p2 = pnand %p655_p0, %p197_p1 }
   0x5   : > { %p230_p3 = scmp.lt.s32.totalorder (!%p198_p2), %s651_s19, 3 }
   0x6   : > { %201 = sbr.rel (%p198_p2) target bundleno = 772 (0x304), region = 40 }
   0xb   : > { %v752_v0 = vmov 0.0   ;;  %s886_s19 = smov (!%p230_p3, %s651_s19), 3  ;;  %vm753_vm0 = vmmov 0   ;;  %vm289_vm1 = vcmask 1041408   ;;  %v245_v40 = vld [vmem:[%s880_s1] sm:$0x1] }
   0xc   : > { %683 = vmatprep.subr.mxu1 %v752_v0  ;;  %363 = vmatprep.mubr.f32.mxu0 %v752_v0  ;;  %s712_s20 = smul.u32 312, %s886_s19  ;;  %vm285_vm2 = vcmask 801792   ;;  %vm440_vm3 = vcmask 1040384   ;;  %vm444_vm4 = vcmask 262144   ;;  %vm578_vm5 = vcmask 269312  }
   0xd   : > { %709 = vmatprep.mubr.msk.f32.mxu1 %vm753_vm0, %v752_v0  ;;  %s713_s11 = smul.u32 48, %s886_s19  ;;  %vm582_vm6 = vcmask 265216  }
   0xe   : > { %s801_s23 = scalar_lea.vmem %s879_s0, %s712_s20 }
   0xf   : > { %v283_v1 = vld [vmem:[%s801_s23 + $0x128] sm:$0x3]  ;;  %v282_v2 = vld [vmem:[%s801_s23 + $0x120] sm:$0x3]  ;;  %v280_v3 = vld [vmem:[%s801_s23 + $0x110] sm:$0xff]  ;;  %s239_s14 = scalar_lea.vmem %s883_s4, %s713_s11  ;;  %s244_s17 = scalar_lea.vmem %s884_s5, %s713_s11 }
  0x10   : > { %659 = vmatprep.subr.msk.mxu0 %vm289_vm1, %v283_v1  ;;  %v279_v4 = vld [vmem:[%s801_s23 + $0x108] sm:$0xff]  ;;  %v284_v5 = vld [vmem:[%s801_s23 + $0x130] sm:$0x3]  ;;  %v277_v6 = vld [vmem:[%s801_s23 + $0xf8] sm:$0xff] }
  0x11   : > { %660 = vmatpush1.msk.msra.mxu0 %vm289_vm1, %v282_v2  ;;  %684 = vmatpush3.msk.msra.mxu1 %vm289_vm1, %v284_v5  ;;  %v281_v7 = vld [vmem:[%s801_s23 + $0x118] sm:$0xff]  ;;  %v276_v8 = vld [vmem:[%s801_s23 + $0xf0] sm:$0xff]  ;;  %v278_v9 = vld [vmem:[%s801_s23 + $0x100] sm:$0xff] }
  0x12   : > { %307 = vmatprep.subr.mxu0 %v280_v3  ;;  %685 = vmatprep.subr.mxu1 %v752_v0  ;;  %v274_v10 = vld [vmem:[%s801_s23 + $0xe0] sm:$0xff]  ;;  %v273_v11 = vld [vmem:[%s801_s23 + $0xd8] sm:$0xff]  ;;  %v275_v12 = vld [vmem:[%s801_s23 + $0xe8] sm:$0xff] }
  0x13   : > { %308 = vmatpush1.msra.mxu0 %v279_v4  ;;  %686 = vmatpush3.msra.mxu1 %v281_v7  ;;  %v271_v13 = vld [vmem:[%s801_s23 + $0xc8] sm:$0xff]  ;;  %v270_v14 = vld [vmem:[%s801_s23 + $0xc0] sm:$0xff]  ;;  %v272_v15 = vld [vmem:[%s801_s23 + $0xd0] sm:$0xff] }
  0x14   : > { %309 = vmatprep.subr.mxu0 %v277_v6  ;;  %687 = vmatprep.subr.mxu1 %v752_v0  ;;  %v268_v16 = vld [vmem:[%s801_s23 + $0xb0] sm:$0xff]  ;;  %v267_v17 = vld [vmem:[%s801_s23 + $0xa8] sm:$0xff]  ;;  %v269_v18 = vld [vmem:[%s801_s23 + $0xb8] sm:$0xff] }
  0x15   : > { %310 = vmatpush1.msra.mxu0 %v276_v8  ;;  %688 = vmatpush3.msra.mxu1 %v278_v9  ;;  %v265_v19 = vld [vmem:[%s801_s23 + $0x98] sm:$0xff]  ;;  %v264_v20 = vld [vmem:[%s801_s23 + $0x90] sm:$0xff]  ;;  %v266_v21 = vld [vmem:[%s801_s23 + $0xa0] sm:$0xff] }
  0x16   : > { %311 = vmatprep.subr.mxu0 %v274_v10  ;;  %689 = vmatprep.subr.mxu1 %v752_v0  ;;  %v262_v22 = vld [vmem:[%s801_s23 + $0x80] sm:$0xff]  ;;  %v261_v23 = vld [vmem:[%s801_s23 + $0x78] sm:$0xff]  ;;  %v263_v24 = vld [vmem:[%s801_s23 + $0x88] sm:$0xff] }
  0x17   : > { %312 = vmatpush1.msra.mxu0 %v273_v11  ;;  %690 = vmatpush3.msra.mxu1 %v275_v12  ;;  %v259_v25 = vld [vmem:[%s801_s23 + $0x68] sm:$0xff]  ;;  %v258_v26 = vld [vmem:[%s801_s23 + $0x60] sm:$0xff]  ;;  %v260_v27 = vld [vmem:[%s801_s23 + $0x70] sm:$0xff] }
  0x18   : > { %313 = vmatprep.subr.mxu0 %v271_v13  ;;  %691 = vmatprep.subr.mxu1 %v752_v0  ;;  %v256_v28 = vld [vmem:[%s801_s23 + $0x50] sm:$0xff]  ;;  %v255_v29 = vld [vmem:[%s801_s23 + $0x48] sm:$0xff]  ;;  %v257_v30 = vld [vmem:[%s801_s23 + $0x58] sm:$0xff] }
  0x19   : > { %314 = vmatpush1.msra.mxu0 %v270_v14  ;;  %692 = vmatpush3.msra.mxu1 %v272_v15  ;;  %v253_v31 = vld [vmem:[%s801_s23 + $0x38] sm:$0xff]  ;;  %v252_v32 = vld [vmem:[%s801_s23 + $0x30] sm:$0xff]  ;;  %v254_v33 = vld [vmem:[%s801_s23 + $0x40] sm:$0xff]  ;;  %v493_v14 = vlaneseq }
  0x1a   : > { %315 = vmatprep.subr.mxu0 %v268_v16  ;;  %693 = vmatprep.subr.mxu1 %v752_v0  ;;  %v250_v34 = vld [vmem:[%s801_s23 + $0x20] sm:$0xff]  ;;  %v249_v35 = vld [vmem:[%s801_s23 + $0x18] sm:$0xff]  ;;  %v251_v36 = vld [vmem:[%s801_s23 + $0x28] sm:$0xff] }
  0x1b   : > { %316 = vmatpush1.msra.mxu0 %v267_v17  ;;  %694 = vmatpush3.msra.mxu1 %v269_v18  ;;  %v247_v37 = vld [vmem:[%s801_s23 + $0x8] sm:$0xff]  ;;  %v246_v38 = vld [vmem:[%s801_s23] sm:$0xff]  ;;  %v248_v39 = vld [vmem:[%s801_s23 + $0x10] sm:$0xff]  ;;  %v494_v15 = vshrl.u32 %v493_v14, 7 }
  0x1c   : > { %317 = vmatprep.subr.mxu0 %v265_v19  ;;  %695 = vmatprep.subr.mxu1 %v752_v0  ;;  %v491_v19 = vld [vmem:[%s881_s2] sm:$0x7] }
  0x1d   : > { %318 = vmatpush1.msra.mxu0 %v264_v20  ;;  %696 = vmatpush3.msra.mxu1 %v266_v21  ;;  %v495_v16 = vsub.s32 0, %v494_v15  ;;  %v499_v17 = vsub.s32 1, %v494_v15  ;;  %v503_v18 = vsub.s32 2, %v494_v15  ;;  %v511_v20 = vld [vmem:[%s882_s3] sm:$0x7] }
  0x1e   : > { %319 = vmatprep.subr.mxu0 %v262_v22  ;;  %697 = vmatprep.subr.mxu1 %v752_v0 }
  0x1f   : > { %320 = vmatpush1.msra.mxu0 %v261_v23  ;;  %698 = vmatpush3.msra.mxu1 %v263_v24  ;;  %v496_v21 = vrot.slane %v491_v19, %v495_v16  ;;  %v500_v22 = vrot.slane %v491_v19, %v499_v17  ;;  %v504_v23 = vrot.slane %v491_v19, %v503_v18 }
  0x20   : > { %321 = vmatprep.subr.mxu0 %v259_v25  ;;  %699 = vmatprep.subr.mxu1 %v752_v0  ;;  %v516_v25 = vrot.slane %v511_v20, %v495_v16 }
  0x21   : > { %322 = vmatpush1.msra.mxu0 %v258_v26  ;;  %700 = vmatpush3.msra.mxu1 %v260_v27  ;;  %v520_v26 = vrot.slane %v511_v20, %v499_v17 }
  0x22   : > { %323 = vmatprep.subr.mxu0 %v256_v28  ;;  %701 = vmatprep.subr.mxu1 %v752_v0 }
  0x23   : > { %324 = vmatpush1.msra.mxu0 %v255_v29  ;;  %702 = vmatpush3.msra.mxu1 %v257_v30  ;;  %v524_v30 = vrot.slane %v511_v20, %v503_v18 }
  0x24   : > { %325 = vmatprep.subr.mxu0 %v253_v31  ;;  %703 = vmatprep.subr.mxu1 %v752_v0 }
  0x25   : > { %326 = vmatpush1.msra.mxu0 %v252_v32  ;;  %704 = vmatpush3.msra.mxu1 %v254_v33 }
  0x26   : > { %327 = vmatprep.subr.mxu0 %v250_v34  ;;  %705 = vmatprep.subr.mxu1 %v752_v0 }
  0x27   : > { %328 = vmatpush1.msra.mxu0 %v249_v35  ;;  %706 = vmatpush3.msra.mxu1 %v251_v36 }
  0x28   : > { %329 = vmatprep.subr.mxu0 %v247_v37  ;;  %707 = vmatprep.subr.mxu1 %v752_v0 }
  0x29   : > { %330 = vmatpush1.msra.mxu0 %v246_v38  ;;  %708 = vmatpush3.msra.mxu1 %v248_v39 }
  0x2a   : > { %661 = vmatmul.mubr.msk.f32.vlgmr.msra.gmra.mxu0 %vm285_vm2, %v245_v40  ;;  %710 = vmatmul.mubr.msk.f32.vlgmr.msra.gmra.mxu1 %vm285_vm2, %v245_v40 }
  0xea   : > { %v365_v41 = vpop.f32.mrf.mxu0  ;;  %v436_v42 = vpop.f32.mrf.mxu1 }
  0xeb   : > { %v441_v45 = vsel %vm440_vm3, %v365_v41, 0.0  ;;  %v445_v47 = vsel %vm444_vm4, %v436_v42, 0.0 }
  0xec   : > { %v367_v43 = vpop.f32.mrf.mxu0  ;;  %v711_v44 = vpop.f32.mrf.mxu1 }
  0xed   : > { %v442_v46 = vsel %vm440_vm3, %v367_v43, 0.0 }
  0xee   : > { %v443_v48 = vadd.f32 %v442_v46, %v441_v45 }
  0xf0   : > { %v446_v49 = vadd.f32 %v445_v47, %v443_v48 }
  0xf2   : > { %447 = vadd.xlane.f32.xlu0 %v446_v49 }
 0x17b   : > { %v448_v50 = vpop.xlane.xlu0 %447 }
 0x17c   : > { %v449_v51 = vrot.slane %v448_v50, 4 }
 0x17e   : > { %v450_v52 = vadd.f32 %v449_v51, %v448_v50  ;;  %v552_v50 = vld [vmem:[%s239_s14] sm:$0xff]  ;;  %v555_v51 = vld [vmem:[%s239_s14 + $0x18] sm:$0xf] }
 0x180   : > { %v451_v53 = vrot.slane %v450_v52, 2 }
 0x182   : > { %v452_v54 = vadd.f32 %v451_v53, %v450_v52  ;;  %v553_v53 = vld [vmem:[%s239_s14 + $0x8] sm:$0xff] }
 0x184   : > { %v453_v55 = vrot.slane %v452_v54, 1 }
 0x186   : > { %v454_v56 = vadd.f32 %v453_v55, %v452_v54  ;;  %v556_v54 = vld [vmem:[%s239_s14 + $0x20] sm:$0xf] }
 0x188   : > { %714 = vpush %v454_v56 }
 0x1b9   : > { %s715_s26 = spop %714 }
 0x1ba   : > { %s458_s27 = smul.f32 0.0034602077, %s715_s26 }
 0x1bc   : > { %v459_v57 = vstv %s458_s27 }
 0x1bd   : > { %v460_v58 = vsub.f32 %v365_v41, %v459_v57  ;;  %v461_v59 = vsub.f32 %v367_v43, %v459_v57  ;;  %v462_v60 = vsub.f32 %v436_v42, %v459_v57  ;;  %v554_v57 = vld [vmem:[%s239_s14 + $0x10] sm:$0xff] }
 0x1bf   : > { %v463_v61 = vmul.f32 %v460_v58, %v460_v58  ;;  %v464_v62 = vmul.f32 %v461_v59, %v461_v59  ;;  %v465_v63 = vmul.f32 %v462_v60, %v462_v60 }
 0x1c1   : > { %v466_v0 = vsel %vm440_vm3, %v463_v61, 0.0  ;;  %v467_v1 = vsel %vm440_vm3, %v464_v62, 0.0  ;;  %v469_v3 = vsel %vm444_vm4, %v465_v63, 0.0 }
 0x1c2   : > { %v468_v2 = vadd.f32 %v467_v1, %v466_v0 }
 0x1c4   : > { %v470_v4 = vadd.f32 %v469_v3, %v468_v2 }
 0x1c6   : > { %471 = vadd.xlane.f32.xlu0 %v470_v4 }
 0x24f   : > { %v472_v5 = vpop.xlane.xlu0 %471 }
 0x250   : > { %v473_v6 = vrot.slane %v472_v5, 4 }
 0x252   : > { %v474_v7 = vadd.f32 %v473_v6, %v472_v5 }
 0x254   : > { %v475_v8 = vrot.slane %v474_v7, 2 }
 0x256   : > { %v476_v9 = vadd.f32 %v475_v8, %v474_v7 }
 0x258   : > { %v477_v10 = vrot.slane %v476_v9, 1 }
 0x25a   : > { %v478_v11 = vadd.f32 %v477_v10, %v476_v9 }
 0x25c   : > { %716 = vpush %v478_v11 }
 0x28d   : > { %s717_s28 = spop %716 }
 0x28e   : > { %s482_s29 = smul.f32 0.0034602077, %s717_s28 }
 0x290   : > { %s483_s30 = sadd.f32 1e-05, %s482_s29 }
 0x292   : > { %v484_v12 = vstv %s483_s30 }
 0x293   : > { %730 = vrsqrt.f32 %v484_v12 }
 0x2a0   : > { %v731_v13 = vpop.eup %730 }
 0x2a1   : > { %718 = vpush %v731_v13 }
 0x2d2   : > { %s719_s10 = spop %718 }
 0x2d3   : > { %v487_v24 = vstv %s719_s10 }
 0x2d4   : > { %v488_v27 = vmul.f32 %v487_v24, %v460_v58  ;;  %v489_v28 = vmul.f32 %v487_v24, %v461_v59  ;;  %v490_v29 = vmul.f32 %v487_v24, %v462_v60  ;;  %v557_v58 = vld [vmem:[%s239_s14 + $0x28] sm:$0xf] }
 0x2d6   : > { %v508_v31 = vmul.f32 %v496_v21, %v488_v27  ;;  %v509_v32 = vmul.f32 %v500_v22, %v489_v28  ;;  %v510_v33 = vmul.f32 %v504_v23, %v490_v29 }
 0x2d8   : > { %v528_v34 = vadd.f32 %v516_v25, %v508_v31  ;;  %v529_v35 = vadd.f32 %v520_v26, %v509_v32  ;;  %v530_v36 = vadd.f32 %v524_v30, %v510_v33 }
 0x2da   : > { %v531_v37 = vmax.f32 %v528_v34, 0.0  ;;  %v532_v38 = vmax.f32 %v529_v35, 0.0  ;;  %v533_v39 = vmax.f32 %v530_v36, 0.0 }
 0x2dc   : > { %v664_v40 = vmul.f32 -1.442695, %v531_v37  ;;  %v665_v41 = vmul.f32 -1.442695, %v532_v38  ;;  %v666_v42 = vmul.f32 -1.442695, %v533_v39 }
 0x2de   : > { %732 = vpow2.f32 %v664_v40 }
 0x2df   : > { %734 = vpow2.f32 %v665_v41 }
 0x2e0   : > { %736 = vpow2.f32 %v666_v42 }
 0x2eb   : > { %v733_v43 = vpop.eup %732 }
 0x2ec   : > { %v735_v44 = vpop.eup %734  ;;  %v543_v45 = vadd.f32 1.0, %v733_v43 }
 0x2ed   : > { %v737_v46 = vpop.eup %736  ;;  %v544_v47 = vadd.f32 1.0, %v735_v44 }
 0x2ee   : > { %v545_v48 = vadd.f32 1.0, %v737_v46  ;;  %738 = vrcp.f32 %v543_v45 }
 0x2ef   : > { %740 = vrcp.f32 %v544_v47 }
 0x2f0   : > { %742 = vrcp.f32 %v545_v48 }
 0x2fb   : > { %v739_v49 = vpop.eup %738 }
 0x2fc   : > { %v741_v52 = vpop.eup %740  ;;  %v561_v55 = vrot.slane %v739_v49, %v495_v16 }
 0x2fd   : > { %v743_v56 = vpop.eup %742  ;;  %v565_v59 = vrot.slane %v741_v52, %v495_v16 }
 0x2fe   : > { %v569_v60 = vrot.slane %v743_v56, %v495_v16  ;;  %v570_v61 = vmul.f32 %v561_v55, %v552_v50  ;;  %v573_v62 = vmul.f32 %v561_v55, %v555_v51 }
 0x2ff   : > { %v571_v63 = vmul.f32 %v565_v59, %v553_v53  ;;  %v574_v0 = vmul.f32 %v565_v59, %v556_v54 }
 0x300   : > { %v572_v1 = vmul.f32 %v569_v60, %v554_v57  ;;  %v575_v2 = vmul.f32 %v569_v60, %v557_v58  ;;  %576 = vst [vmem:[%s244_s17] sm:$0xff] %v570_v61  ;;  %580 = vst [vmem:[%s244_s17 + $0x18] sm:$0xf] %v573_v62 }
 0x301   : > { %577 = vst [vmem:[%s244_s17 + $0x8] sm:$0xff] %v571_v63  ;;  %581 = vst [vmem:[%s244_s17 + $0x20] sm:$0xf] %v574_v0 }
 0x302   : > { %579 = vst.msk [vmem:[%s244_s17 + $0x10] sm:$0xff] %vm578_vm5, %v572_v1 }
 0x303   : > { %583 = vst.msk [vmem:[%s244_s17 + $0x28] sm:$0xf] %vm582_vm6, %v575_v2 }
 0x304 PF: > { %s15_s18 = sadd.s32 1, %s750_s18  }
 0x305   : > { %p12_p4 = scmp.ge.s32.totalorder %s15_s18, 6  }
 0x307   :  { %14 = sbr.rel (!%p12_p4) target bundleno = 1 (0x1), region = 73 }

// kernel: cmm_forward.10
= control target key start
LH: loop header
LB: loop body
LE: loop exit
PB: predicated region body
PF: predicated region fallthrough
CT: control target
= control target key end

     0   :  { %s1234_s18 = smov 0   ;;  %s1561_s0 = inlined_call_operand.vmem [shape: f32[4,108,1296], index: 0, kind: input, shape index: {}]   ;;  %s1562_s1 = inlined_call_operand.vmem [shape: f32[6,108], index: 1, kind: input, shape index: {}]   ;;  %s1563_s2 = inlined_call_operand.vmem [shape: f32[6,1], index: 2, kind: input, shape index: {}]   ;;  %s1564_s3 = inlined_call_operand.vmem [shape: f32[6,1296], index: 3, kind: input, shape index: {}]   ;;  %s1565_s4 = inlined_call_operand.vmem [shape: f32[6,1296], index: 4, kind: input, shape index: {}]   ;;  %s1566_s5 = inlined_call_operand.vmem [shape: f32[4,6,1296], index: 5, kind: output, shape index: {}]  }
   0x1 LB: > { %s1077_s19 = sadd.s32 4294967295, %s1199_s18   ;;  %p1081_p0 = scmp.ge.s32.totalorder %s1199_s18, 1  ;;  %s1199_s18 = sphi %s1234_s18, %s15_s18  }
   0x2   : > { %p187_p1 = scmp.lt.s32.totalorder %s1199_s18, 5 }
   0x4   : > { %p188_p2 = pnand %p1081_p0, %p187_p1 }
   0x5   : > { %p215_p3 = scmp.lt.s32.totalorder (!%p188_p2), %s1077_s19, 3 }
   0x6   : > { %191 = sbr.rel (%p188_p2) target bundleno = 835 (0x343), region = 40 }
   0xb   : > { %v1201_v0 = vmov 0.0   ;;  %v380_v1 = vld [vmem:[%s1563_s2] sm:$0x3f]  ;;  %s1568_s19 = smov (!%p215_p3, %s1077_s19), 3  ;;  %v1202_v2 = vmov 0   ;;  %vm390_vm0 = vcmask 1043456  }
   0xc   : > { %488 = vmatprep.mubr.f32.mxu0 %v1201_v0  ;;  %559 = vmatprep.mubr.f32.mxu1 %v1201_v0  ;;  %s1149_s22 = smul.u32 1232, %s1568_s19  ;;  %v1318_v59 = vld [vmem:[%s1562_s1] sm:$0x3f]  ;;  %vm386_vm1 = vcmask 883712   ;;  %vm1203_vm2 = vmmov 0   ;;  %vm849_vm3 = vcmask 1045504  }
   0xd   : > { %1168 = vset.pattern.permute.xlu0 %v1202_v2  ;;  %vm869_vm4 = vcmask 128000  }
   0xe   : > { %383 = vperm.xlu0 %1168, %v380_v1   ;;  %s1253_s25 = scalar_lea.vmem %s1561_s0, %s1149_s22 }
   0xf   : > { %v370_v3 = vld [vmem:[%s1253_s25 + $0x480] sm:$0xf]  ;;  %v372_v4 = vld [vmem:[%s1253_s25 + $0x490] sm:$0xf]  ;;  %v369_v5 = vld [vmem:[%s1253_s25 + $0x478] sm:$0xf] }
  0x10   : > { %1084 = vmatprep.subr.msk.mxu0 %vm390_vm0, %v370_v3  ;;  %1087 = vmatprep.subr.msk.mxu1 %vm390_vm0, %v372_v4  ;;  %v371_v6 = vld [vmem:[%s1253_s25 + $0x488] sm:$0xf]  ;;  %v361_v8 = vld [vmem:[%s1253_s25 + $0x438] sm:$0xff]  ;;  %v358_v9 = vld [vmem:[%s1253_s25 + $0x420] sm:$0xff] }
  0x11   : > { %v359_v7 = vld [vmem:[%s1253_s25 + $0x428] sm:$0xff]  ;;  %1085 = vmatpush1.msk.msra.mxu0 %vm390_vm0, %v369_v5  ;;  %1088 = vmatpush1.msk.msra.mxu1 %vm390_vm0, %v371_v6  ;;  %v360_v10 = vld [vmem:[%s1253_s25 + $0x430] sm:$0xff]  ;;  %v350_v12 = vld [vmem:[%s1253_s25 + $0x3e0] sm:$0xff] }
  0x12   : > { %v348_v11 = vld [vmem:[%s1253_s25 + $0x3d0] sm:$0xff]  ;;  %430 = vmatprep.subr.mxu0 %v359_v7  ;;  %501 = vmatprep.subr.mxu1 %v361_v8  ;;  %v347_v13 = vld [vmem:[%s1253_s25 + $0x3c8] sm:$0xff]  ;;  %v349_v14 = vld [vmem:[%s1253_s25 + $0x3d8] sm:$0xff] }
  0x13   : > { %431 = vmatpush1.msra.mxu0 %v358_v9  ;;  %502 = vmatpush1.msra.mxu1 %v360_v10  ;;  %v337_v15 = vld [vmem:[%s1253_s25 + $0x378] sm:$0xff]  ;;  %v339_v16 = vld [vmem:[%s1253_s25 + $0x388] sm:$0xff]  ;;  %v336_v17 = vld [vmem:[%s1253_s25 + $0x370] sm:$0xff] }
  0x14   : > { %432 = vmatprep.subr.mxu0 %v348_v11  ;;  %503 = vmatprep.subr.mxu1 %v350_v12  ;;  %v338_v18 = vld [vmem:[%s1253_s25 + $0x380] sm:$0xff]  ;;  %v328_v20 = vld [vmem:[%s1253_s25 + $0x330] sm:$0xff]  ;;  %v325_v21 = vld [vmem:[%s1253_s25 + $0x318] sm:$0xff] }
  0x15   : > { %433 = vmatpush1.msra.mxu0 %v347_v13  ;;  %504 = vmatpush1.msra.mxu1 %v349_v14  ;;  %v326_v19 = vld [vmem:[%s1253_s25 + $0x320] sm:$0xff]  ;;  %v327_v22 = vld [vmem:[%s1253_s25 + $0x328] sm:$0xff]  ;;  %v317_v24 = vld [vmem:[%s1253_s25 + $0x2d8] sm:$0xff] }
  0x16   : > { %434 = vmatprep.subr.mxu0 %v337_v15  ;;  %505 = vmatprep.subr.mxu1 %v339_v16  ;;  %v315_v23 = vld [vmem:[%s1253_s25 + $0x2c8] sm:$0xff]  ;;  %v314_v25 = vld [vmem:[%s1253_s25 + $0x2c0] sm:$0xff]  ;;  %v316_v26 = vld [vmem:[%s1253_s25 + $0x2d0] sm:$0xff] }
  0x17   : > { %435 = vmatpush1.msra.mxu0 %v336_v17  ;;  %506 = vmatpush1.msra.mxu1 %v338_v18  ;;  %v304_v27 = vld [vmem:[%s1253_s25 + $0x270] sm:$0xff]  ;;  %v306_v28 = vld [vmem:[%s1253_s25 + $0x280] sm:$0xff]  ;;  %v303_v29 = vld [vmem:[%s1253_s25 + $0x268] sm:$0xff] }
  0x18   : > { %436 = vmatprep.subr.mxu0 %v326_v19  ;;  %507 = vmatprep.subr.mxu1 %v328_v20  ;;  %v305_v30 = vld [vmem:[%s1253_s25 + $0x278] sm:$0xff]  ;;  %v295_v32 = vld [vmem:[%s1253_s25 + $0x228] sm:$0xff]  ;;  %v292_v33 = vld [vmem:[%s1253_s25 + $0x210] sm:$0xff] }
  0x19   : > { %437 = vmatpush1.msra.mxu0 %v325_v21  ;;  %508 = vmatpush1.msra.mxu1 %v327_v22  ;;  %v293_v31 = vld [vmem:[%s1253_s25 + $0x218] sm:$0xff]  ;;  %v294_v34 = vld [vmem:[%s1253_s25 + $0x220] sm:$0xff]  ;;  %v284_v36 = vld [vmem:[%s1253_s25 + $0x1d0] sm:$0xff] }
  0x1a   : > { %438 = vmatprep.subr.mxu0 %v315_v23  ;;  %509 = vmatprep.subr.mxu1 %v317_v24  ;;  %v282_v35 = vld [vmem:[%s1253_s25 + $0x1c0] sm:$0xff]  ;;  %v281_v37 = vld [vmem:[%s1253_s25 + $0x1b8] sm:$0xff]  ;;  %v283_v38 = vld [vmem:[%s1253_s25 + $0x1c8] sm:$0xff] }
  0x1b   : > { %439 = vmatpush1.msra.mxu0 %v314_v25  ;;  %510 = vmatpush1.msra.mxu1 %v316_v26  ;;  %v271_v39 = vld [vmem:[%s1253_s25 + $0x168] sm:$0xff]  ;;  %v273_v40 = vld [vmem:[%s1253_s25 + $0x178] sm:$0xff]  ;;  %v270_v41 = vld [vmem:[%s1253_s25 + $0x160] sm:$0xff] }
  0x1c   : > { %440 = vmatprep.subr.mxu0 %v304_v27  ;;  %511 = vmatprep.subr.mxu1 %v306_v28  ;;  %v272_v42 = vld [vmem:[%s1253_s25 + $0x170] sm:$0xff]  ;;  %v262_v44 = vld [vmem:[%s1253_s25 + $0x120] sm:$0xff]  ;;  %v259_v45 = vld [vmem:[%s1253_s25 + $0x108] sm:$0xff] }
  0x1d   : > { %441 = vmatpush1.msra.mxu0 %v303_v29  ;;  %512 = vmatpush1.msra.mxu1 %v305_v30  ;;  %v260_v43 = vld [vmem:[%s1253_s25 + $0x110] sm:$0xff]  ;;  %v261_v46 = vld [vmem:[%s1253_s25 + $0x118] sm:$0xff]  ;;  %v251_v48 = vld [vmem:[%s1253_s25 + $0xc8] sm:$0xff] }
  0x1e   : > { %442 = vmatprep.subr.mxu0 %v293_v31  ;;  %513 = vmatprep.subr.mxu1 %v295_v32  ;;  %v249_v47 = vld [vmem:[%s1253_s25 + $0xb8] sm:$0xff]  ;;  %v248_v49 = vld [vmem:[%s1253_s25 + $0xb0] sm:$0xff]  ;;  %v250_v50 = vld [vmem:[%s1253_s25 + $0xc0] sm:$0xff] }
  0x1f   : > { %443 = vmatpush1.msra.mxu0 %v292_v33  ;;  %514 = vmatpush1.msra.mxu1 %v294_v34  ;;  %v238_v51 = vld [vmem:[%s1253_s25 + $0x60] sm:$0xff]  ;;  %v240_v52 = vld [vmem:[%s1253_s25 + $0x70] sm:$0xff]  ;;  %v237_v53 = vld [vmem:[%s1253_s25 + $0x58] sm:$0xff] }
  0x20   : > { %444 = vmatprep.subr.mxu0 %v282_v35  ;;  %515 = vmatprep.subr.mxu1 %v284_v36  ;;  %v239_v54 = vld [vmem:[%s1253_s25 + $0x68] sm:$0xff]  ;;  %v229_v56 = vld [vmem:[%s1253_s25 + $0x18] sm:$0xff]  ;;  %v226_v57 = vld [vmem:[%s1253_s25] sm:$0xff] }
  0x21   : > { %445 = vmatpush1.msra.mxu0 %v281_v37  ;;  %516 = vmatpush1.msra.mxu1 %v283_v38  ;;  %v227_v55 = vld [vmem:[%s1253_s25 + $0x8] sm:$0xff]  ;;  %v228_v58 = vld [vmem:[%s1253_s25 + $0x10] sm:$0xff]  ;;  %v374_v60 = vld [vmem:[%s1253_s25 + $0x4a0] sm:$0xf] }
  0x22   : > { %446 = vmatprep.subr.mxu0 %v271_v39  ;;  %517 = vmatprep.subr.mxu1 %v273_v40  ;;  %v376_v61 = vld [vmem:[%s1253_s25 + $0x4b0] sm:$0xf]  ;;  %v373_v62 = vld [vmem:[%s1253_s25 + $0x498] sm:$0xf]  ;;  %v375_v63 = vld [vmem:[%s1253_s25 + $0x4a8] sm:$0xf] }
  0x23   : > { %447 = vmatpush1.msra.mxu0 %v270_v41  ;;  %518 = vmatpush1.msra.mxu1 %v272_v42  ;;  %v363_v1 = vld [vmem:[%s1253_s25 + $0x448] sm:$0xff]  ;;  %v365_v2 = vld [vmem:[%s1253_s25 + $0x458] sm:$0xff]  ;;  %v362_v3 = vld [vmem:[%s1253_s25 + $0x440] sm:$0xff] }
  0x24   : > { %448 = vmatprep.subr.mxu0 %v260_v43  ;;  %519 = vmatprep.subr.mxu1 %v262_v44  ;;  %v364_v4 = vld [vmem:[%s1253_s25 + $0x450] sm:$0xff]  ;;  %v354_v6 = vld [vmem:[%s1253_s25 + $0x400] sm:$0xff]  ;;  %v351_v7 = vld [vmem:[%s1253_s25 + $0x3e8] sm:$0xff] }
  0x25   : > { %449 = vmatpush1.msra.mxu0 %v259_v45  ;;  %520 = vmatpush1.msra.mxu1 %v261_v46  ;;  %v352_v5 = vld [vmem:[%s1253_s25 + $0x3f0] sm:$0xff]  ;;  %v353_v8 = vld [vmem:[%s1253_s25 + $0x3f8] sm:$0xff]  ;;  %v343_v10 = vld [vmem:[%s1253_s25 + $0x3a8] sm:$0xff] }
  0x26   : > { %450 = vmatprep.subr.mxu0 %v249_v47  ;;  %521 = vmatprep.subr.mxu1 %v251_v48  ;;  %v341_v9 = vld [vmem:[%s1253_s25 + $0x398] sm:$0xff]  ;;  %v340_v11 = vld [vmem:[%s1253_s25 + $0x390] sm:$0xff]  ;;  %v342_v12 = vld [vmem:[%s1253_s25 + $0x3a0] sm:$0xff] }
  0x27   : > { %451 = vmatpush1.msra.mxu0 %v248_v49  ;;  %522 = vmatpush1.msra.mxu1 %v250_v50  ;;  %v330_v13 = vld [vmem:[%s1253_s25 + $0x340] sm:$0xff]  ;;  %v332_v14 = vld [vmem:[%s1253_s25 + $0x350] sm:$0xff]  ;;  %v329_v15 = vld [vmem:[%s1253_s25 + $0x338] sm:$0xff] }
  0x28   : > { %452 = vmatprep.subr.mxu0 %v238_v51  ;;  %523 = vmatprep.subr.mxu1 %v240_v52  ;;  %v331_v16 = vld [vmem:[%s1253_s25 + $0x348] sm:$0xff]  ;;  %v321_v18 = vld [vmem:[%s1253_s25 + $0x2f8] sm:$0xff]  ;;  %v318_v19 = vld [vmem:[%s1253_s25 + $0x2e0] sm:$0xff] }
  0x29   : > { %453 = vmatpush1.msra.mxu0 %v237_v53  ;;  %524 = vmatpush1.msra.mxu1 %v239_v54  ;;  %v319_v17 = vld [vmem:[%s1253_s25 + $0x2e8] sm:$0xff]  ;;  %v320_v20 = vld [vmem:[%s1253_s25 + $0x2f0] sm:$0xff]  ;;  %v310_v22 = vld [vmem:[%s1253_s25 + $0x2a0] sm:$0xff] }
  0x2a   : > { %454 = vmatprep.subr.mxu0 %v227_v55  ;;  %525 = vmatprep.subr.mxu1 %v229_v56  ;;  %v308_v21 = vld [vmem:[%s1253_s25 + $0x290] sm:$0xff]  ;;  %v307_v23 = vld [vmem:[%s1253_s25 + $0x288] sm:$0xff]  ;;  %v309_v24 = vld [vmem:[%s1253_s25 + $0x298] sm:$0xff] }
  0x2b   : > { %455 = vmatpush1.msra.mxu0 %v226_v57  ;;  %526 = vmatpush1.msra.mxu1 %v228_v58  ;;  %v297_v25 = vld [vmem:[%s1253_s25 + $0x238] sm:$0xff]  ;;  %v299_v26 = vld [vmem:[%s1253_s25 + $0x248] sm:$0xff]  ;;  %v296_v27 = vld [vmem:[%s1253_s25 + $0x230] sm:$0xff] }
  0x2c   : > { %1086 = vmatmul.mubr.msk.f32.vlgmr.msra.gmra.mxu0 %vm386_vm1, %v1318_v59  ;;  %1090 = vmatprep.subr.msk.mxu0 %vm390_vm0, %v374_v60  ;;  %v298_v28 = vld [vmem:[%s1253_s25 + $0x240] sm:$0xff]  ;;  %v288_v30 = vld [vmem:[%s1253_s25 + $0x1f0] sm:$0xff]  ;;  %v285_v31 = vld [vmem:[%s1253_s25 + $0x1d8] sm:$0xff] }
  0x2d   : > { %1093 = vmatprep.subr.msk.mxu1 %vm390_vm0, %v376_v61  ;;  %1089 = vmatmul.mubr.msk.f32.vlgmr.msra.gmra.mxu1 %vm386_vm1, %v1318_v59  ;;  %v286_v29 = vld [vmem:[%s1253_s25 + $0x1e0] sm:$0xff]  ;;  %v287_v32 = vld [vmem:[%s1253_s25 + $0x1e8] sm:$0xff]  ;;  %v277_v34 = vld [vmem:[%s1253_s25 + $0x198] sm:$0xff] }
  0x2e   : > { %1091 = vmatpush1.msk.msra.mxu0 %vm390_vm0, %v373_v62  ;;  %1094 = vmatpush1.msk.msra.mxu1 %vm390_vm0, %v375_v63  ;;  %v275_v33 = vld [vmem:[%s1253_s25 + $0x188] sm:$0xff]  ;;  %v274_v35 = vld [vmem:[%s1253_s25 + $0x180] sm:$0xff]  ;;  %v276_v36 = vld [vmem:[%s1253_s25 + $0x190] sm:$0xff] }
  0x2f   : > { %572 = vmatprep.subr.mxu0 %v363_v1  ;;  %643 = vmatprep.subr.mxu1 %v365_v2  ;;  %v264_v37 = vld [vmem:[%s1253_s25 + $0x130] sm:$0xff]  ;;  %v266_v38 = vld [vmem:[%s1253_s25 + $0x140] sm:$0xff]  ;;  %v263_v39 = vld [vmem:[%s1253_s25 + $0x128] sm:$0xff] }
  0x30   : > { %573 = vmatpush1.msra.mxu0 %v362_v3  ;;  %644 = vmatpush1.msra.mxu1 %v364_v4  ;;  %v265_v40 = vld [vmem:[%s1253_s25 + $0x138] sm:$0xff]  ;;  %v255_v42 = vld [vmem:[%s1253_s25 + $0xe8] sm:$0xff]  ;;  %v252_v43 = vld [vmem:[%s1253_s25 + $0xd0] sm:$0xff] }
  0x31   : > { %574 = vmatprep.subr.mxu0 %v352_v5  ;;  %645 = vmatprep.subr.mxu1 %v354_v6  ;;  %v253_v41 = vld [vmem:[%s1253_s25 + $0xd8] sm:$0xff]  ;;  %v254_v44 = vld [vmem:[%s1253_s25 + $0xe0] sm:$0xff]  ;;  %v244_v46 = vld [vmem:[%s1253_s25 + $0x90] sm:$0xff] }
  0x32   : > { %575 = vmatpush1.msra.mxu0 %v351_v7  ;;  %646 = vmatpush1.msra.mxu1 %v353_v8  ;;  %v242_v45 = vld [vmem:[%s1253_s25 + $0x80] sm:$0xff]  ;;  %v241_v47 = vld [vmem:[%s1253_s25 + $0x78] sm:$0xff]  ;;  %v243_v48 = vld [vmem:[%s1253_s25 + $0x88] sm:$0xff] }
  0x33   : > { %576 = vmatprep.subr.mxu0 %v341_v9  ;;  %647 = vmatprep.subr.mxu1 %v343_v10  ;;  %v231_v49 = vld [vmem:[%s1253_s25 + $0x28] sm:$0xff]  ;;  %v233_v50 = vld [vmem:[%s1253_s25 + $0x38] sm:$0xff]  ;;  %v230_v51 = vld [vmem:[%s1253_s25 + $0x20] sm:$0xff] }
  0x34   : > { %577 = vmatpush1.msra.mxu0 %v340_v11  ;;  %648 = vmatpush1.msra.mxu1 %v342_v12  ;;  %v232_v52 = vld [vmem:[%s1253_s25 + $0x30] sm:$0xff]  ;;  %v378_v53 = vld [vmem:[%s1253_s25 + $0x4c0] sm:$0xf]  ;;  %v377_v54 = vld [vmem:[%s1253_s25 + $0x4b8] sm:$0xf] }
  0x35   : > { %578 = vmatprep.subr.mxu0 %v330_v13  ;;  %649 = vmatprep.subr.mxu1 %v332_v14  ;;  %v379_v55 = vld [vmem:[%s1253_s25 + $0x4c8] sm:$0xf]  ;;  %v366_v57 = vld [vmem:[%s1253_s25 + $0x460] sm:$0xff]  ;;  %v368_v58 = vld [vmem:[%s1253_s25 + $0x470] sm:$0xff] }
  0x36   : > { %579 = vmatpush1.msra.mxu0 %v329_v15  ;;  %650 = vmatpush1.msra.mxu1 %v331_v16  ;;  %v367_v56 = vld [vmem:[%s1253_s25 + $0x468] sm:$0xff]  ;;  %v356_v60 = vld [vmem:[%s1253_s25 + $0x410] sm:$0xff]  ;;  %v357_v62 = vld [vmem:[%s1253_s25 + $0x418] sm:$0xff] }
  0x37   : > { %580 = vmatprep.subr.mxu0 %v319_v17  ;;  %651 = vmatprep.subr.mxu1 %v321_v18  ;;  %v355_v61 = vld [vmem:[%s1253_s25 + $0x408] sm:$0xff]  ;;  %v345_v63 = vld [vmem:[%s1253_s25 + $0x3b8] sm:$0xff]  ;;  %v344_v1 = vld [vmem:[%s1253_s25 + $0x3b0] sm:$0xff] }
  0x38   : > { %581 = vmatpush1.msra.mxu0 %v318_v19  ;;  %652 = vmatpush1.msra.mxu1 %v320_v20  ;;  %v346_v2 = vld [vmem:[%s1253_s25 + $0x3c0] sm:$0xff]  ;;  %v333_v4 = vld [vmem:[%s1253_s25 + $0x358] sm:$0xff]  ;;  %v335_v5 = vld [vmem:[%s1253_s25 + $0x368] sm:$0xff] }
  0x39   : > { %582 = vmatprep.subr.mxu0 %v308_v21  ;;  %653 = vmatprep.subr.mxu1 %v310_v22  ;;  %v334_v3 = vld [vmem:[%s1253_s25 + $0x360] sm:$0xff]  ;;  %v323_v6 = vld [vmem:[%s1253_s25 + $0x308] sm:$0xff]  ;;  %v324_v8 = vld [vmem:[%s1253_s25 + $0x310] sm:$0xff] }
  0x3a   : > { %583 = vmatpush1.msra.mxu0 %v307_v23  ;;  %654 = vmatpush1.msra.mxu1 %v309_v24  ;;  %v322_v7 = vld [vmem:[%s1253_s25 + $0x300] sm:$0xff]  ;;  %v312_v9 = vld [vmem:[%s1253_s25 + $0x2b0] sm:$0xff]  ;;  %v311_v10 = vld [vmem:[%s1253_s25 + $0x2a8] sm:$0xff] }
  0x3b   : > { %584 = vmatprep.subr.mxu0 %v297_v25  ;;  %655 = vmatprep.subr.mxu1 %v299_v26  ;;  %v313_v11 = vld [vmem:[%s1253_s25 + $0x2b8] sm:$0xff]  ;;  %v300_v13 = vld [vmem:[%s1253_s25 + $0x250] sm:$0xff]  ;;  %v302_v14 = vld [vmem:[%s1253_s25 + $0x260] sm:$0xff] }
  0x3c   : > { %585 = vmatpush1.msra.mxu0 %v296_v27  ;;  %656 = vmatpush1.msra.mxu1 %v298_v28  ;;  %v301_v12 = vld [vmem:[%s1253_s25 + $0x258] sm:$0xff]  ;;  %v290_v15 = vld [vmem:[%s1253_s25 + $0x200] sm:$0xff]  ;;  %v291_v17 = vld [vmem:[%s1253_s25 + $0x208] sm:$0xff] }
  0x3d   : > { %586 = vmatprep.subr.mxu0 %v286_v29  ;;  %657 = vmatprep.subr.mxu1 %v288_v30  ;;  %v289_v16 = vld [vmem:[%s1253_s25 + $0x1f8] sm:$0xff]  ;;  %v279_v18 = vld [vmem:[%s1253_s25 + $0x1a8] sm:$0xff]  ;;  %v278_v19 = vld [vmem:[%s1253_s25 + $0x1a0] sm:$0xff] }
  0x3e   : > { %587 = vmatpush1.msra.mxu0 %v285_v31  ;;  %658 = vmatpush1.msra.mxu1 %v287_v32  ;;  %v280_v20 = vld [vmem:[%s1253_s25 + $0x1b0] sm:$0xff]  ;;  %v267_v22 = vld [vmem:[%s1253_s25 + $0x148] sm:$0xff]  ;;  %v269_v23 = vld [vmem:[%s1253_s25 + $0x158] sm:$0xff] }
  0x3f   : > { %588 = vmatprep.subr.mxu0 %v275_v33  ;;  %659 = vmatprep.subr.mxu1 %v277_v34  ;;  %v268_v21 = vld [vmem:[%s1253_s25 + $0x150] sm:$0xff]  ;;  %v257_v24 = vld [vmem:[%s1253_s25 + $0xf8] sm:$0xff]  ;;  %v258_v26 = vld [vmem:[%s1253_s25 + $0x100] sm:$0xff] }
  0x40   : > { %589 = vmatpush1.msra.mxu0 %v274_v35  ;;  %660 = vmatpush1.msra.mxu1 %v276_v36  ;;  %v256_v25 = vld [vmem:[%s1253_s25 + $0xf0] sm:$0xff]  ;;  %v246_v27 = vld [vmem:[%s1253_s25 + $0xa0] sm:$0xff]  ;;  %v245_v28 = vld [vmem:[%s1253_s25 + $0x98] sm:$0xff] }
  0x41   : > { %590 = vmatprep.subr.mxu0 %v264_v37  ;;  %661 = vmatprep.subr.mxu1 %v266_v38  ;;  %v247_v29 = vld [vmem:[%s1253_s25 + $0xa8] sm:$0xff]  ;;  %v234_v31 = vld [vmem:[%s1253_s25 + $0x40] sm:$0xff]  ;;  %v236_v32 = vld [vmem:[%s1253_s25 + $0x50] sm:$0xff] }
  0x42   : > { %591 = vmatpush1.msra.mxu0 %v263_v39  ;;  %662 = vmatpush1.msra.mxu1 %v265_v40  ;;  %v235_v30 = vld [vmem:[%s1253_s25 + $0x48] sm:$0xff] }
  0x43   : > { %592 = vmatprep.subr.mxu0 %v253_v41  ;;  %663 = vmatprep.subr.mxu1 %v255_v42 }
  0x44   : > { %593 = vmatpush1.msra.mxu0 %v252_v43  ;;  %664 = vmatpush1.msra.mxu1 %v254_v44 }
  0x45   : > { %594 = vmatprep.subr.mxu0 %v242_v45  ;;  %665 = vmatprep.subr.mxu1 %v244_v46 }
  0x46   : > { %595 = vmatpush1.msra.mxu0 %v241_v47  ;;  %666 = vmatpush1.msra.mxu1 %v243_v48 }
  0x47   : > { %596 = vmatprep.subr.mxu0 %v231_v49  ;;  %667 = vmatprep.subr.mxu1 %v233_v50 }
  0x48   : > { %597 = vmatpush1.msra.mxu0 %v230_v51  ;;  %630 = vmatprep.mubr.f32.mxu0 %v1201_v0 }
  0x49   : > { %668 = vmatpush1.msra.mxu1 %v232_v52  ;;  %1092 = vmatmul.mubr.msk.f32.vlgmr.msra.gmra.mxu0 %vm386_vm1, %v1318_v59 }
  0x4a   : > { %701 = vmatprep.mubr.f32.mxu1 %v1201_v0  ;;  %1096 = vmatprep.subr.msk.mxu0 %vm390_vm0, %v378_v53 }
  0x4b   : > { %1118 = vmatprep.subr.mxu1 %v1201_v0  ;;  %1095 = vmatmul.mubr.msk.f32.vlgmr.msra.gmra.mxu1 %vm386_vm1, %v1318_v59 }
  0x4c   : > { %1097 = vmatpush1.msk.msra.mxu0 %vm390_vm0, %v377_v54  ;;  %1119 = vmatpush3.msk.msra.mxu1 %vm390_vm0, %v379_v55 }
  0x4d   : > { %714 = vmatprep.subr.mxu0 %v367_v56  ;;  %1120 = vmatprep.subr.mxu1 %v1201_v0 }
  0x4e   : > { %715 = vmatpush1.msra.mxu0 %v366_v57  ;;  %1121 = vmatpush3.msra.mxu1 %v368_v58 }
  0x4f   : > { %716 = vmatprep.subr.mxu0 %v356_v60  ;;  %1122 = vmatprep.subr.mxu1 %v1201_v0 }
  0x50   : > { %717 = vmatpush1.msra.mxu0 %v355_v61  ;;  %1123 = vmatpush3.msra.mxu1 %v357_v62 }
  0x51   : > { %718 = vmatprep.subr.mxu0 %v345_v63  ;;  %1124 = vmatprep.subr.mxu1 %v1201_v0 }
  0x52   : > { %719 = vmatpush1.msra.mxu0 %v344_v1  ;;  %1125 = vmatpush3.msra.mxu1 %v346_v2 }
  0x53   : > { %720 = vmatprep.subr.mxu0 %v334_v3  ;;  %1126 = vmatprep.subr.mxu1 %v1201_v0 }
  0x54   : > { %721 = vmatpush1.msra.mxu0 %v333_v4  ;;  %1127 = vmatpush3.msra.mxu1 %v335_v5 }
  0x55   : > { %722 = vmatprep.subr.mxu0 %v323_v6  ;;  %1128 = vmatprep.subr.mxu1 %v1201_v0 }
  0x56   : > { %723 = vmatpush1.msra.mxu0 %v322_v7  ;;  %1129 = vmatpush3.msra.mxu1 %v324_v8 }
  0x57   : > { %724 = vmatprep.subr.mxu0 %v312_v9  ;;  %1130 = vmatprep.subr.mxu1 %v1201_v0 }
  0x58   : > { %725 = vmatpush1.msra.mxu0 %v311_v10  ;;  %1131 = vmatpush3.msra.mxu1 %v313_v11 }
  0x59   : > { %726 = vmatprep.subr.mxu0 %v301_v12  ;;  %1132 = vmatprep.subr.mxu1 %v1201_v0 }
  0x5a   : > { %727 = vmatpush1.msra.mxu0 %v300_v13  ;;  %1133 = vmatpush3.msra.mxu1 %v302_v14 }
  0x5b   : > { %728 = vmatprep.subr.mxu0 %v290_v15  ;;  %1134 = vmatprep.subr.mxu1 %v1201_v0 }
  0x5c   : > { %729 = vmatpush1.msra.mxu0 %v289_v16  ;;  %1135 = vmatpush3.msra.mxu1 %v291_v17 }
  0x5d   : > { %730 = vmatprep.subr.mxu0 %v279_v18  ;;  %1136 = vmatprep.subr.mxu1 %v1201_v0 }
  0x5e   : > { %731 = vmatpush1.msra.mxu0 %v278_v19  ;;  %1137 = vmatpush3.msra.mxu1 %v280_v20 }
  0x5f   : > { %732 = vmatprep.subr.mxu0 %v268_v21  ;;  %1138 = vmatprep.subr.mxu1 %v1201_v0 }
  0x60   : > { %733 = vmatpush1.msra.mxu0 %v267_v22  ;;  %1139 = vmatpush3.msra.mxu1 %v269_v23 }
  0x61   : > { %734 = vmatprep.subr.mxu0 %v257_v24  ;;  %1140 = vmatprep.subr.mxu1 %v1201_v0 }
  0x62   : > { %735 = vmatpush1.msra.mxu0 %v256_v25  ;;  %1141 = vmatpush3.msra.mxu1 %v258_v26 }
  0x63   : > { %736 = vmatprep.subr.mxu0 %v246_v27  ;;  %1142 = vmatprep.subr.mxu1 %v1201_v0 }
  0x64   : > { %737 = vmatpush1.msra.mxu0 %v245_v28  ;;  %1143 = vmatpush3.msra.mxu1 %v247_v29 }
  0x65   : > { %738 = vmatprep.subr.mxu0 %v235_v30  ;;  %1144 = vmatprep.subr.mxu1 %v1201_v0 }
  0x66   : > { %739 = vmatpush1.msra.mxu0 %v234_v31  ;;  %772 = vmatprep.mubr.f32.mxu0 %v1201_v0 }
  0x67   : > { %1145 = vmatpush3.msra.mxu1 %v236_v32  ;;  %1146 = vmatprep.mubr.msk.f32.mxu1 %vm1203_vm2, %v1201_v0 }
  0x68   : > { %1098 = vmatmul.mubr.msk.f32.vlgmr.msra.gmra.mxu0 %vm386_vm1, %v1318_v59  ;;  %1147 = vmatmul.mubr.msk.f32.vlgmr.msra.gmra.mxu1 %vm386_vm1, %v1318_v59 }
  0x89   : > { %v384_v34 = vpop.permute.xlu0 %383 }
  0xec   : > { %v490_v33 = vpop.f32.mrf.mxu0 }
  0xed   : > { %v491_v36 = vadd.f32 %v490_v33, %v384_v34  ;;  %v561_v38 = vpop.f32.mrf.mxu1 }
  0xee   : > { %v492_v35 = vpop.f32.mrf.mxu0  ;;  %v562_v41 = vadd.f32 %v561_v38, %v384_v34 }
  0xef   : > { %v493_v37 = vadd.f32 %v492_v35, %v384_v34  ;;  %v850_v39 = vsel %vm849_vm3, %v491_v36, 0.0  ;;  %v563_v42 = vpop.f32.mrf.mxu1 }
  0xf0   : > { %v853_v44 = vsel %vm849_vm3, %v562_v41, 0.0  ;;  %v564_v45 = vadd.f32 %v563_v42, %v384_v34 }
  0xf1   : > { %v851_v40 = vsel %vm849_vm3, %v493_v37, 0.0 }
  0xf2   : > { %v852_v0 = vadd.f32 %v851_v40, %v850_v39  ;;  %v855_v48 = vsel %vm849_vm3, %v564_v45, 0.0 }
  0xf4   : > { %v854_v59 = vadd.f32 %v853_v44, %v852_v0 }
  0xf6   : > { %v856_v51 = vadd.f32 %v855_v48, %v854_v59 }
 0x109   : > { %v632_v43 = vpop.f32.mrf.mxu0 }
 0x10a   : > { %v633_v46 = vadd.f32 %v632_v43, %v384_v34 }
 0x10b   : > { %v634_v47 = vpop.f32.mrf.mxu0  ;;  %v703_v52 = vpop.f32.mrf.mxu1 }
 0x10c   : > { %v857_v49 = vsel %vm849_vm3, %v633_v46, 0.0  ;;  %v635_v50 = vadd.f32 %v634_v47, %v384_v34  ;;  %v704_v55 = vadd.f32 %v703_v52, %v384_v34 }
 0x10d   : > { %v858_v53 = vadd.f32 %v857_v49, %v856_v51  ;;  %v705_v56 = vpop.f32.mrf.mxu1 }
 0x10e   : > { %v859_v54 = vsel %vm849_vm3, %v635_v50, 0.0  ;;  %v861_v58 = vsel %vm849_vm3, %v704_v55, 0.0  ;;  %v706_v60 = vadd.f32 %v705_v56, %v384_v34 }
 0x10f   : > { %v860_v57 = vadd.f32 %v859_v54, %v858_v53 }
 0x110   : > { %v863_v62 = vsel %vm849_vm3, %v706_v60, 0.0 }
 0x111   : > { %v862_v61 = vadd.f32 %v861_v58, %v860_v57 }
 0x113   : > { %v864_v3 = vadd.f32 %v863_v62, %v862_v61 }
 0x128   : > { %v774_v63 = vpop.f32.mrf.mxu0  ;;  %v845_v1 = vpop.f32.mrf.mxu1 }
 0x129   : > { %v775_v2 = vadd.f32 %v774_v63, %v384_v34  ;;  %v846_v7 = vadd.f32 %v845_v1, %v384_v34 }
 0x12a   : > { %v776_v4 = vpop.f32.mrf.mxu0  ;;  %v1148_v5 = vpop.f32.mrf.mxu1 }
 0x12b   : > { %v865_v6 = vsel %vm849_vm3, %v775_v2, 0.0  ;;  %v777_v8 = vadd.f32 %v776_v4, %v384_v34  ;;  %v870_v12 = vsel %vm869_vm4, %v846_v7, 0.0 }
 0x12c   : > { %v866_v9 = vadd.f32 %v865_v6, %v864_v3 }
 0x12d   : > { %v867_v10 = vsel %vm849_vm3, %v777_v8, 0.0 }
 0x12e   : > { %v868_v11 = vadd.f32 %v867_v10, %v866_v9 }
 0x130   : > { %v871_v13 = vadd.f32 %v870_v12, %v868_v11  ;;  %v956_v11 = vld [vmem:[%s1564_s3] sm:$0x3f] }
 0x132   : > { %872 = vadd.xlane.f32.xlu0 %v871_v13 }
 0x1bb   : > { %v873_v14 = vpop.xlane.xlu0 %872 }
 0x1bc   : > { %v874_v15 = vrot.slane %v873_v14, 4 }
 0x1be   : > { %v875_v16 = vadd.f32 %v874_v15, %v873_v14 }
 0x1c0   : > { %v876_v17 = vrot.slane %v875_v16, 2 }
 0x1c2   : > { %v877_v18 = vadd.f32 %v876_v17, %v875_v16  ;;  %v957_v16 = vld [vmem:[%s1564_s3 + $0x8] sm:$0x3f]  ;;  %v958_v17 = vld [vmem:[%s1564_s3 + $0x10] sm:$0x3f] }
 0x1c4   : > { %v878_v19 = vrot.slane %v877_v18, 1 }
 0x1c6   : > { %v879_v20 = vadd.f32 %v878_v19, %v877_v18  ;;  %v959_v18 = vld [vmem:[%s1564_s3 + $0x18] sm:$0x3f] }
 0x1c8   : > { %1151 = vpush %v879_v20 }
 0x1f9   : > { %s1152_s28 = spop %1151 }
 0x1fa   : > { %s883_s29 = smul.f32 0.00012860082, %s1152_s28 }
 0x1fc   : > { %v884_v21 = vstv %s883_s29 }
 0x1fd   : > { %v885_v22 = vsub.f32 %v491_v36, %v884_v21  ;;  %v886_v23 = vsub.f32 %v493_v37, %v884_v21  ;;  %v887_v24 = vsub.f32 %v562_v41, %v884_v21  ;;  %v888_v25 = vsub.f32 %v564_v45, %v884_v21 }
 0x1fe   : > { %v1466_v27 = vsub.f32 %v633_v46, %v884_v21  ;;  %v890_v30 = vsub.f32 %v635_v50, %v884_v21  ;;  %v891_v35 = vsub.f32 %v704_v55, %v884_v21  ;;  %v892_v39 = vsub.f32 %v706_v60, %v884_v21 }
 0x1ff   : > { %v896_v26 = vmul.f32 %v885_v22, %v885_v22  ;;  %v897_v28 = vmul.f32 %v886_v23, %v886_v23  ;;  %v898_v29 = vmul.f32 %v887_v24, %v887_v24  ;;  %v899_v31 = vmul.f32 %v888_v25, %v888_v25 }
 0x200   : > { %v900_v38 = vmul.f32 %v1466_v27, %v1466_v27  ;;  %v901_v40 = vmul.f32 %v890_v30, %v890_v30  ;;  %v893_v0 = vsub.f32 %v775_v2, %v884_v21  ;;  %v902_v43 = vmul.f32 %v891_v35, %v891_v35 }
 0x201   : > { %v907_v32 = vsel %vm849_vm3, %v896_v26, 0.0  ;;  %v908_v33 = vsel %vm849_vm3, %v897_v28, 0.0  ;;  %v910_v36 = vsel %vm849_vm3, %v898_v29, 0.0  ;;  %v912_v41 = vsel %vm849_vm3, %v899_v31, 0.0  ;;  %v979_v26 = vld [vmem:[%s1565_s4 + $0x8] sm:$0x3f] }
 0x202   : > { %v909_v34 = vadd.f32 %v908_v33, %v907_v32  ;;  %v914_v44 = vsel %vm849_vm3, %v900_v38, 0.0  ;;  %v894_v46 = vsub.f32 %v777_v8, %v884_v21  ;;  %v903_v59 = vmul.f32 %v892_v39, %v892_v39  ;;  %v962_v28 = vld [vmem:[%s1564_s3 + $0x30] sm:$0x3f]  ;;  %v981_v38 = vld [vmem:[%s1565_s4 + $0x18] sm:$0x3f] }
 0x203   : > { %v916_v47 = vsel %vm849_vm3, %v901_v40, 0.0  ;;  %v1476_v49 = vsub.f32 %v846_v7, %v884_v21  ;;  %v904_v50 = vmul.f32 %v893_v0, %v893_v0  ;;  %v918_v51 = vsel %vm849_vm3, %v902_v43, 0.0  ;;  %v960_v21 = vld [vmem:[%s1564_s3 + $0x20] sm:$0x3f]  ;;  %v980_v32 = vld [vmem:[%s1565_s4 + $0x10] sm:$0x3f] }
 0x204   : > { %v911_v37 = vadd.f32 %v910_v36, %v909_v34  ;;  %v905_v53 = vmul.f32 %v894_v46, %v894_v46  ;;  %v920_v54 = vsel %vm849_vm3, %v903_v59, 0.0  ;;  %v963_v34 = vld [vmem:[%s1564_s3 + $0x38] sm:$0x3f]  ;;  %v982_v40 = vld [vmem:[%s1565_s4 + $0x20] sm:$0x3f] }
 0x205   : > { %v906_v56 = vmul.f32 %v1476_v49, %v1476_v49  ;;  %v922_v57 = vsel %vm849_vm3, %v904_v50, 0.0  ;;  %v965_v43 = vld [vmem:[%s1564_s3 + $0x48] sm:$0x3f]  ;;  %v966_v59 = vld [vmem:[%s1564_s3 + $0x50] sm:$0x3f] }
 0x206   : > { %v913_v42 = vadd.f32 %v912_v41, %v911_v37  ;;  %v924_v60 = vsel %vm849_vm3, %v905_v53, 0.0  ;;  %v964_v37 = vld [vmem:[%s1564_s3 + $0x40] sm:$0x3f] }
 0x207   : > { %v926_v62 = vsel %vm869_vm4, %v906_v56, 0.0 }
 0x208   : > { %v915_v45 = vadd.f32 %v914_v44, %v913_v42 }
 0x20a   : > { %v917_v48 = vadd.f32 %v916_v47, %v915_v45  ;;  %v983_v45 = vld [vmem:[%s1565_s4 + $0x28] sm:$0x3f] }
 0x20c   : > { %v919_v52 = vadd.f32 %v918_v51, %v917_v48  ;;  %v984_v48 = vld [vmem:[%s1565_s4 + $0x30] sm:$0x3f]  ;;  %v985_v51 = vld [vmem:[%s1565_s4 + $0x38] sm:$0x3f] }
 0x20e   : > { %v921_v55 = vadd.f32 %v920_v54, %v919_v52  ;;  %v986_v54 = vld [vmem:[%s1565_s4 + $0x40] sm:$0x3f] }
 0x210   : > { %v923_v58 = vadd.f32 %v922_v57, %v921_v55  ;;  %v987_v57 = vld [vmem:[%s1565_s4 + $0x48] sm:$0x3f] }
 0x212   : > { %v925_v61 = vadd.f32 %v924_v60, %v923_v58  ;;  %v988_v60 = vld [vmem:[%s1565_s4 + $0x50] sm:$0x3f] }
 0x214   : > { %v927_v63 = vadd.f32 %v926_v62, %v925_v61 }
 0x216   : > { %928 = vadd.xlane.f32.xlu1 %v927_v63 }
 0x29f   : > { %v929_v1 = vpop.xlane.xlu1 %928 }
 0x2a0   : > { %v930_v2 = vrot.slane %v929_v1, 4 }
 0x2a2   : > { %v931_v3 = vadd.f32 %v930_v2, %v929_v1 }
 0x2a4   : > { %v932_v4 = vrot.slane %v931_v3, 2 }
 0x2a6   : > { %v933_v5 = vadd.f32 %v932_v4, %v931_v3 }
 0x2a8   : > { %v934_v6 = vrot.slane %v933_v5, 1 }
 0x2aa   : > { %v935_v7 = vadd.f32 %v934_v6, %v933_v5 }
 0x2ac   : > { %1153 = vpush %v935_v7 }
 0x2dd   : > { %s1154_s30 = spop %1153 }
 0x2de   : > { %s939_s6 = smul.f32 0.00012860082, %s1154_s30 }
 0x2e0   : > { %s940_s7 = sadd.f32 1e-05, %s939_s6 }
 0x2e2   : > { %v941_v8 = vstv %s940_s7  ;;  %s1150_s7 = smul.u32 88, %s1568_s19 }
 0x2e3   : > { %1169 = vrsqrt.f32 %v941_v8 }
 0x2e4   : > { %s224_s10 = scalar_lea.vmem %s1566_s5, %s1150_s7 }
 0x2f0   : > { %v1170_v9 = vpop.eup %1169 }
 0x2f1   : > { %1155 = vpush %v1170_v9 }
 0x322   : > { %s1156_s8 = spop %1155 }
 0x323   : > { %v944_v10 = vstv %s1156_s8 }
 0x324   : > { %v945_v12 = vmul.f32 %v944_v10, %v885_v22  ;;  %v946_v13 = vmul.f32 %v944_v10, %v886_v23  ;;  %v947_v14 = vmul.f32 %v944_v10, %v887_v24  ;;  %v948_v15 = vmul.f32 %v944_v10, %v888_v25  ;;  %v961_v23 = vld [vmem:[%s1564_s3 + $0x28] sm:$0x3f]  ;;  %v978_v25 = vld [vmem:[%s1565_s4] sm:$0x3f] }
 0x325   : > { %v949_v19 = vmul.f32 %v944_v10, %v1466_v27  ;;  %v950_v20 = vmul.f32 %v944_v10, %v890_v30  ;;  %v951_v22 = vmul.f32 %v944_v10, %v891_v35  ;;  %v952_v27 = vmul.f32 %v944_v10, %v892_v39 }
 0x326   : > { %v967_v24 = vmul.f32 %v956_v11, %v945_v12  ;;  %v968_v29 = vmul.f32 %v957_v16, %v946_v13  ;;  %v969_v30 = vmul.f32 %v958_v17, %v947_v14  ;;  %v970_v31 = vmul.f32 %v959_v18, %v948_v15 }
 0x327   : > { %v953_v33 = vmul.f32 %v944_v10, %v893_v0  ;;  %v971_v35 = vmul.f32 %v960_v21, %v949_v19  ;;  %v954_v36 = vmul.f32 %v944_v10, %v894_v46  ;;  %v972_v39 = vmul.f32 %v961_v23, %v950_v20 }
 0x328   : > { %v989_v41 = vadd.f32 %v978_v25, %v967_v24  ;;  %v990_v42 = vadd.f32 %v979_v26, %v968_v29  ;;  %v955_v0 = vmul.f32 %v944_v10, %v1476_v49  ;;  %v973_v44 = vmul.f32 %v962_v28, %v951_v22 }
 0x329   : > { %v991_v46 = vadd.f32 %v980_v32, %v969_v30  ;;  %v974_v47 = vmul.f32 %v963_v34, %v952_v27  ;;  %v992_v49 = vadd.f32 %v981_v38, %v970_v31  ;;  %v975_v50 = vmul.f32 %v964_v37, %v953_v33 }
 0x32a   : > { %v993_v52 = vadd.f32 %v982_v40, %v971_v35  ;;  %1171 = vtanh.f32 %v989_v41  ;;  %v976_v53 = vmul.f32 %v965_v43, %v954_v36  ;;  %v994_v55 = vadd.f32 %v983_v45, %v972_v39 }
 0x32b   : > { %1173 = vtanh.f32 %v990_v42  ;;  %v977_v56 = vmul.f32 %v966_v59, %v955_v0  ;;  %v995_v58 = vadd.f32 %v984_v48, %v973_v44  ;;  %v996_v61 = vadd.f32 %v985_v51, %v974_v47 }
 0x32c   : > { %1175 = vtanh.f32 %v991_v46  ;;  %v997_v62 = vadd.f32 %v986_v54, %v975_v50  ;;  %v998_v63 = vadd.f32 %v987_v57, %v976_v53 }
 0x32d   : > { %1177 = vtanh.f32 %v992_v49  ;;  %v999_v1 = vadd.f32 %v988_v60, %v977_v56 }
 0x32e   : > { %1179 = vtanh.f32 %v993_v52 }
 0x32f   : > { %1181 = vtanh.f32 %v994_v55 }
 0x330   : > { %1183 = vtanh.f32 %v995_v58 }
 0x331   : > { %1185 = vtanh.f32 %v996_v61 }
 0x332   : > { %1187 = vtanh.f32 %v997_v62 }
 0x333   : > { %1189 = vtanh.f32 %v998_v63 }
 0x334   : > { %1191 = vtanh.f32 %v999_v1 }
 0x337   : > { %v1172_v2 = vpop.eup %1171 }
 0x338   : > { %v1174_v3 = vpop.eup %1173  ;;  %1011 = vst [vmem:[%s224_s10] sm:$0x3f] %v1172_v2 }
 0x339   : > { %v1176_v4 = vpop.eup %1175  ;;  %1012 = vst [vmem:[%s224_s10 + $0x8] sm:$0x3f] %v1174_v3 }
 0x33a   : > { %v1178_v5 = vpop.eup %1177  ;;  %1013 = vst [vmem:[%s224_s10 + $0x10] sm:$0x3f] %v1176_v4 }
 0x33b   : > { %v1180_v6 = vpop.eup %1179  ;;  %1014 = vst [vmem:[%s224_s10 + $0x18] sm:$0x3f] %v1178_v5 }
 0x33c   : > { %v1182_v7 = vpop.eup %1181  ;;  %1015 = vst [vmem:[%s224_s10 + $0x20] sm:$0x3f] %v1180_v6 }
 0x33d   : > { %v1184_v8 = vpop.eup %1183  ;;  %1016 = vst [vmem:[%s224_s10 + $0x28] sm:$0x3f] %v1182_v7 }
 0x33e   : > { %v1186_v9 = vpop.eup %1185  ;;  %1017 = vst [vmem:[%s224_s10 + $0x30] sm:$0x3f] %v1184_v8 }
 0x33f   : > { %v1188_v10 = vpop.eup %1187  ;;  %1018 = vst [vmem:[%s224_s10 + $0x38] sm:$0x3f] %v1186_v9 }
 0x340   : > { %v1190_v11 = vpop.eup %1189  ;;  %1019 = vst [vmem:[%s224_s10 + $0x40] sm:$0x3f] %v1188_v10 }
 0x341   : > { %v1192_v12 = vpop.eup %1191  ;;  %1020 = vst [vmem:[%s224_s10 + $0x48] sm:$0x3f] %v1190_v11 }
 0x342   : > { %1021 = vst.msk [vmem:[%s224_s10 + $0x50] sm:$0x3f] %vm869_vm4, %v1192_v12 }
 0x343 PF: > { %s15_s18 = sadd.s32 1, %s1199_s18  }
 0x344   : > { %p12_p4 = scmp.ge.s32.totalorder %s15_s18, 6  }
 0x346   :  { %14 = sbr.rel (!%p12_p4) target bundleno = 1 (0x1), region = 70 }

// kernel: cmm_forward.11
= control target key start
LH: loop header
LB: loop body
LE: loop exit
PB: predicated region body
PF: predicated region fallthrough
CT: control target
= control target key end

     0   :  { %s1135_s18 = smov 0   ;;  %s1378_s0 = inlined_call_operand.vmem [shape: f32[4,54,1296], index: 0, kind: input, shape index: {}]   ;;  %s1379_s1 = inlined_call_operand.vmem [shape: f32[6,54], index: 1, kind: input, shape index: {}]   ;;  %s1380_s2 = inlined_call_operand.vmem [shape: f32[6,1], index: 2, kind: input, shape index: {}]   ;;  %s1381_s3 = inlined_call_operand.vmem [shape: f32[6,1296], index: 3, kind: input, shape index: {}]   ;;  %s1382_s4 = inlined_call_operand.vmem [shape: f32[6,1296], index: 4, kind: input, shape index: {}]   ;;  %s1383_s5 = inlined_call_operand.vmem [shape: f32[4,6,1296], index: 5, kind: output, shape index: {}]  }
   0x1 LB: > { %s999_s19 = sadd.s32 4294967295, %s1100_s18   ;;  %p1003_p0 = scmp.ge.s32.totalorder %s1100_s18, 1  ;;  %s1100_s18 = sphi %s1135_s18, %s15_s18  }
   0x2   : > { %p187_p1 = scmp.lt.s32.totalorder %s1100_s18, 5 }
   0x4   : > { %p188_p2 = pnand %p1003_p0, %p187_p1 }
   0x5   : > { %p215_p3 = scmp.lt.s32.totalorder (!%p188_p2), %s999_s19, 3 }
   0x6   : > { %191 = sbr.rel (%p188_p2) target bundleno = 793 (0x319), region = 40 }
   0xb   : > { %v1102_v0 = vmov 0.0   ;;  %v303_v1 = vld [vmem:[%s1380_s2] sm:$0x3f]  ;;  %s1385_s19 = smov (!%p215_p3, %s999_s19), 3  ;;  %v1103_v2 = vmov 0   ;;  %vm313_vm0 = vcmask 1045504  }
   0xc   : > { %411 = vmatprep.mubr.f32.mxu0 %v1102_v0  ;;  %482 = vmatprep.mubr.f32.mxu1 %v1102_v0  ;;  %s1050_s22 = smul.u32 616, %s1385_s19  ;;  %v1191_v31 = vld [vmem:[%s1379_s1] sm:$0x3f]  ;;  %vm309_vm1 = vcmask 441344   ;;  %vm1104_vm2 = vmmov 0   ;;  %vm791_vm3 = vcmask 128000  }
   0xd   : > { %1069 = vset.pattern.permute.xlu0 %v1103_v2 }
   0xe   : > { %306 = vperm.xlu0 %1069, %v303_v1   ;;  %s1154_s25 = scalar_lea.vmem %s1378_s0, %s1050_s22 }
   0xf   : > { %v293_v3 = vld [vmem:[%s1154_s25 + $0x218] sm:$0x3f]  ;;  %v295_v4 = vld [vmem:[%s1154_s25 + $0x228] sm:$0x3f]  ;;  %v292_v5 = vld [vmem:[%s1154_s25 + $0x210] sm:$0x3f] }
  0x10   : > { %1006 = vmatprep.subr.msk.mxu0 %vm313_vm0, %v293_v3  ;;  %1009 = vmatprep.subr.msk.mxu1 %vm313_vm0, %v295_v4  ;;  %v294_v6 = vld [vmem:[%s1154_s25 + $0x220] sm:$0x3f]  ;;  %v284_v8 = vld [vmem:[%s1154_s25 + $0x1d0] sm:$0xff]  ;;  %v281_v9 = vld [vmem:[%s1154_s25 + $0x1b8] sm:$0xff] }
  0x11   : > { %v282_v7 = vld [vmem:[%s1154_s25 + $0x1c0] sm:$0xff]  ;;  %1007 = vmatpush1.msk.msra.mxu0 %vm313_vm0, %v292_v5  ;;  %1010 = vmatpush1.msk.msra.mxu1 %vm313_vm0, %v294_v6  ;;  %v283_v10 = vld [vmem:[%s1154_s25 + $0x1c8] sm:$0xff]  ;;  %v273_v12 = vld [vmem:[%s1154_s25 + $0x178] sm:$0xff] }
  0x12   : > { %v271_v11 = vld [vmem:[%s1154_s25 + $0x168] sm:$0xff]  ;;  %367 = vmatprep.subr.mxu0 %v282_v7  ;;  %438 = vmatprep.subr.mxu1 %v284_v8  ;;  %v270_v13 = vld [vmem:[%s1154_s25 + $0x160] sm:$0xff]  ;;  %v272_v14 = vld [vmem:[%s1154_s25 + $0x170] sm:$0xff] }
  0x13   : > { %368 = vmatpush1.msra.mxu0 %v281_v9  ;;  %439 = vmatpush1.msra.mxu1 %v283_v10  ;;  %v260_v15 = vld [vmem:[%s1154_s25 + $0x110] sm:$0xff]  ;;  %v262_v16 = vld [vmem:[%s1154_s25 + $0x120] sm:$0xff]  ;;  %v259_v17 = vld [vmem:[%s1154_s25 + $0x108] sm:$0xff] }
  0x14   : > { %369 = vmatprep.subr.mxu0 %v271_v11  ;;  %440 = vmatprep.subr.mxu1 %v273_v12  ;;  %v261_v18 = vld [vmem:[%s1154_s25 + $0x118] sm:$0xff]  ;;  %v251_v20 = vld [vmem:[%s1154_s25 + $0xc8] sm:$0xff]  ;;  %v248_v21 = vld [vmem:[%s1154_s25 + $0xb0] sm:$0xff] }
  0x15   : > { %370 = vmatpush1.msra.mxu0 %v270_v13  ;;  %441 = vmatpush1.msra.mxu1 %v272_v14  ;;  %v249_v19 = vld [vmem:[%s1154_s25 + $0xb8] sm:$0xff]  ;;  %v250_v22 = vld [vmem:[%s1154_s25 + $0xc0] sm:$0xff]  ;;  %v240_v24 = vld [vmem:[%s1154_s25 + $0x70] sm:$0xff] }
  0x16   : > { %371 = vmatprep.subr.mxu0 %v260_v15  ;;  %442 = vmatprep.subr.mxu1 %v262_v16  ;;  %v238_v23 = vld [vmem:[%s1154_s25 + $0x60] sm:$0xff]  ;;  %v237_v25 = vld [vmem:[%s1154_s25 + $0x58] sm:$0xff]  ;;  %v239_v26 = vld [vmem:[%s1154_s25 + $0x68] sm:$0xff] }
  0x17   : > { %372 = vmatpush1.msra.mxu0 %v259_v17  ;;  %443 = vmatpush1.msra.mxu1 %v261_v18  ;;  %v227_v27 = vld [vmem:[%s1154_s25 + $0x8] sm:$0xff]  ;;  %v229_v28 = vld [vmem:[%s1154_s25 + $0x18] sm:$0xff]  ;;  %v226_v29 = vld [vmem:[%s1154_s25] sm:$0xff] }
  0x18   : > { %373 = vmatprep.subr.mxu0 %v249_v19  ;;  %444 = vmatprep.subr.mxu1 %v251_v20  ;;  %v228_v30 = vld [vmem:[%s1154_s25 + $0x10] sm:$0xff]  ;;  %v297_v32 = vld [vmem:[%s1154_s25 + $0x238] sm:$0x3f]  ;;  %v299_v33 = vld [vmem:[%s1154_s25 + $0x248] sm:$0x3f] }
  0x19   : > { %374 = vmatpush1.msra.mxu0 %v248_v21  ;;  %445 = vmatpush1.msra.mxu1 %v250_v22  ;;  %v296_v34 = vld [vmem:[%s1154_s25 + $0x230] sm:$0x3f]  ;;  %v298_v35 = vld [vmem:[%s1154_s25 + $0x240] sm:$0x3f]  ;;  %v285_v38 = vld [vmem:[%s1154_s25 + $0x1d8] sm:$0xff] }
  0x1a   : > { %375 = vmatprep.subr.mxu0 %v238_v23  ;;  %446 = vmatprep.subr.mxu1 %v240_v24  ;;  %v286_v36 = vld [vmem:[%s1154_s25 + $0x1e0] sm:$0xff]  ;;  %v288_v37 = vld [vmem:[%s1154_s25 + $0x1f0] sm:$0xff]  ;;  %v287_v39 = vld [vmem:[%s1154_s25 + $0x1e8] sm:$0xff] }
  0x1b   : > { %376 = vmatpush1.msra.mxu0 %v237_v25  ;;  %447 = vmatpush1.msra.mxu1 %v239_v26  ;;  %v275_v40 = vld [vmem:[%s1154_s25 + $0x188] sm:$0xff]  ;;  %v277_v41 = vld [vmem:[%s1154_s25 + $0x198] sm:$0xff]  ;;  %v274_v42 = vld [vmem:[%s1154_s25 + $0x180] sm:$0xff] }
  0x1c   : > { %377 = vmatprep.subr.mxu0 %v227_v27  ;;  %448 = vmatprep.subr.mxu1 %v229_v28  ;;  %v276_v43 = vld [vmem:[%s1154_s25 + $0x190] sm:$0xff]  ;;  %v266_v45 = vld [vmem:[%s1154_s25 + $0x140] sm:$0xff]  ;;  %v263_v46 = vld [vmem:[%s1154_s25 + $0x128] sm:$0xff] }
  0x1d   : > { %378 = vmatpush1.msra.mxu0 %v226_v29  ;;  %449 = vmatpush1.msra.mxu1 %v228_v30  ;;  %v264_v44 = vld [vmem:[%s1154_s25 + $0x130] sm:$0xff]  ;;  %v265_v47 = vld [vmem:[%s1154_s25 + $0x138] sm:$0xff]  ;;  %v255_v49 = vld [vmem:[%s1154_s25 + $0xe8] sm:$0xff] }
  0x1e   : > { %1008 = vmatmul.mubr.msk.f32.vlgmr.msra.gmra.mxu0 %vm309_vm1, %v1191_v31  ;;  %1012 = vmatprep.subr.msk.mxu0 %vm313_vm0, %v297_v32  ;;  %v253_v48 = vld [vmem:[%s1154_s25 + $0xd8] sm:$0xff]  ;;  %v252_v50 = vld [vmem:[%s1154_s25 + $0xd0] sm:$0xff]  ;;  %v254_v51 = vld [vmem:[%s1154_s25 + $0xe0] sm:$0xff] }
  0x1f   : > { %1015 = vmatprep.subr.msk.mxu1 %vm313_vm0, %v299_v33  ;;  %1011 = vmatmul.mubr.msk.f32.vlgmr.msra.gmra.mxu1 %vm309_vm1, %v1191_v31  ;;  %v242_v52 = vld [vmem:[%s1154_s25 + $0x80] sm:$0xff]  ;;  %v244_v53 = vld [vmem:[%s1154_s25 + $0x90] sm:$0xff]  ;;  %v241_v54 = vld [vmem:[%s1154_s25 + $0x78] sm:$0xff] }
  0x20   : > { %1013 = vmatpush1.msk.msra.mxu0 %vm313_vm0, %v296_v34  ;;  %1016 = vmatpush1.msk.msra.mxu1 %vm313_vm0, %v298_v35  ;;  %v243_v55 = vld [vmem:[%s1154_s25 + $0x88] sm:$0xff]  ;;  %v233_v57 = vld [vmem:[%s1154_s25 + $0x38] sm:$0xff]  ;;  %v230_v58 = vld [vmem:[%s1154_s25 + $0x20] sm:$0xff] }
  0x21   : > { %509 = vmatprep.subr.mxu0 %v286_v36  ;;  %580 = vmatprep.subr.mxu1 %v288_v37  ;;  %v231_v56 = vld [vmem:[%s1154_s25 + $0x28] sm:$0xff]  ;;  %v232_v59 = vld [vmem:[%s1154_s25 + $0x30] sm:$0xff]  ;;  %v301_v60 = vld [vmem:[%s1154_s25 + $0x258] sm:$0x3f] }
  0x22   : > { %510 = vmatpush1.msra.mxu0 %v285_v38  ;;  %581 = vmatpush1.msra.mxu1 %v287_v39  ;;  %v300_v61 = vld [vmem:[%s1154_s25 + $0x250] sm:$0x3f]  ;;  %v302_v62 = vld [vmem:[%s1154_s25 + $0x260] sm:$0x3f]  ;;  %v289_v1 = vld [vmem:[%s1154_s25 + $0x1f8] sm:$0xff] }
  0x23   : > { %511 = vmatprep.subr.mxu0 %v275_v40  ;;  %582 = vmatprep.subr.mxu1 %v277_v41  ;;  %v290_v63 = vld [vmem:[%s1154_s25 + $0x200] sm:$0xff]  ;;  %v291_v2 = vld [vmem:[%s1154_s25 + $0x208] sm:$0xff]  ;;  %v280_v5 = vld [vmem:[%s1154_s25 + $0x1b0] sm:$0xff] }
  0x24   : > { %512 = vmatpush1.msra.mxu0 %v274_v42  ;;  %583 = vmatpush1.msra.mxu1 %v276_v43  ;;  %v279_v3 = vld [vmem:[%s1154_s25 + $0x1a8] sm:$0xff]  ;;  %v278_v4 = vld [vmem:[%s1154_s25 + $0x1a0] sm:$0xff]  ;;  %v268_v6 = vld [vmem:[%s1154_s25 + $0x150] sm:$0xff] }
  0x25   : > { %513 = vmatprep.subr.mxu0 %v264_v44  ;;  %584 = vmatprep.subr.mxu1 %v266_v45  ;;  %v267_v7 = vld [vmem:[%s1154_s25 + $0x148] sm:$0xff]  ;;  %v269_v8 = vld [vmem:[%s1154_s25 + $0x158] sm:$0xff]  ;;  %v256_v10 = vld [vmem:[%s1154_s25 + $0xf0] sm:$0xff] }
  0x26   : > { %514 = vmatpush1.msra.mxu0 %v263_v46  ;;  %585 = vmatpush1.msra.mxu1 %v265_v47  ;;  %v257_v9 = vld [vmem:[%s1154_s25 + $0xf8] sm:$0xff]  ;;  %v258_v11 = vld [vmem:[%s1154_s25 + $0x100] sm:$0xff]  ;;  %v247_v14 = vld [vmem:[%s1154_s25 + $0xa8] sm:$0xff] }
  0x27   : > { %515 = vmatprep.subr.mxu0 %v253_v48  ;;  %586 = vmatprep.subr.mxu1 %v255_v49  ;;  %v246_v12 = vld [vmem:[%s1154_s25 + $0xa0] sm:$0xff]  ;;  %v245_v13 = vld [vmem:[%s1154_s25 + $0x98] sm:$0xff]  ;;  %v235_v15 = vld [vmem:[%s1154_s25 + $0x48] sm:$0xff] }
  0x28   : > { %516 = vmatpush1.msra.mxu0 %v252_v50  ;;  %587 = vmatpush1.msra.mxu1 %v254_v51  ;;  %v234_v16 = vld [vmem:[%s1154_s25 + $0x40] sm:$0xff]  ;;  %v236_v17 = vld [vmem:[%s1154_s25 + $0x50] sm:$0xff] }
  0x29   : > { %517 = vmatprep.subr.mxu0 %v242_v52  ;;  %588 = vmatprep.subr.mxu1 %v244_v53 }
  0x2a   : > { %518 = vmatpush1.msra.mxu0 %v241_v54  ;;  %589 = vmatpush1.msra.mxu1 %v243_v55 }
  0x2b   : > { %519 = vmatprep.subr.mxu0 %v231_v56  ;;  %590 = vmatprep.subr.mxu1 %v233_v57 }
  0x2c   : > { %520 = vmatpush1.msra.mxu0 %v230_v58  ;;  %553 = vmatprep.mubr.f32.mxu0 %v1102_v0 }
  0x2d   : > { %591 = vmatpush1.msra.mxu1 %v232_v59  ;;  %624 = vmatprep.mubr.f32.mxu1 %v1102_v0 }
  0x2e   : > { %1014 = vmatmul.mubr.msk.f32.vlgmr.msra.gmra.mxu0 %vm309_vm1, %v1191_v31  ;;  %1017 = vmatmul.mubr.msk.f32.vlgmr.msra.gmra.mxu1 %vm309_vm1, %v1191_v31 }
  0x2f   : > { %1018 = vmatprep.subr.msk.mxu0 %vm313_vm0, %v301_v60  ;;  %1033 = vmatprep.subr.mxu1 %v1102_v0 }
  0x30   : > { %1019 = vmatpush1.msk.msra.mxu0 %vm313_vm0, %v300_v61  ;;  %1034 = vmatpush3.msk.msra.mxu1 %vm313_vm0, %v302_v62 }
  0x31   : > { %651 = vmatprep.subr.mxu0 %v290_v63  ;;  %1035 = vmatprep.subr.mxu1 %v1102_v0 }
  0x32   : > { %652 = vmatpush1.msra.mxu0 %v289_v1  ;;  %1036 = vmatpush3.msra.mxu1 %v291_v2 }
  0x33   : > { %653 = vmatprep.subr.mxu0 %v279_v3  ;;  %1037 = vmatprep.subr.mxu1 %v1102_v0 }
  0x34   : > { %654 = vmatpush1.msra.mxu0 %v278_v4  ;;  %1038 = vmatpush3.msra.mxu1 %v280_v5 }
  0x35   : > { %655 = vmatprep.subr.mxu0 %v268_v6  ;;  %1039 = vmatprep.subr.mxu1 %v1102_v0 }
  0x36   : > { %656 = vmatpush1.msra.mxu0 %v267_v7  ;;  %1040 = vmatpush3.msra.mxu1 %v269_v8 }
  0x37   : > { %657 = vmatprep.subr.mxu0 %v257_v9  ;;  %1041 = vmatprep.subr.mxu1 %v1102_v0 }
  0x38   : > { %658 = vmatpush1.msra.mxu0 %v256_v10  ;;  %1042 = vmatpush3.msra.mxu1 %v258_v11 }
  0x39   : > { %659 = vmatprep.subr.mxu0 %v246_v12  ;;  %1043 = vmatprep.subr.mxu1 %v1102_v0 }
  0x3a   : > { %660 = vmatpush1.msra.mxu0 %v245_v13  ;;  %1044 = vmatpush3.msra.mxu1 %v247_v14 }
  0x3b   : > { %661 = vmatprep.subr.mxu0 %v235_v15  ;;  %1045 = vmatprep.subr.mxu1 %v1102_v0 }
  0x3c   : > { %662 = vmatpush1.msra.mxu0 %v234_v16  ;;  %695 = vmatprep.mubr.f32.mxu0 %v1102_v0 }
  0x3d   : > { %1046 = vmatpush3.msra.mxu1 %v236_v17  ;;  %1047 = vmatprep.mubr.msk.f32.mxu1 %vm1104_vm2, %v1102_v0 }
  0x3e   : > { %1020 = vmatmul.mubr.msk.f32.vlgmr.msra.gmra.mxu0 %vm309_vm1, %v1191_v31  ;;  %1048 = vmatmul.mubr.msk.f32.vlgmr.msra.gmra.mxu1 %vm309_vm1, %v1191_v31 }
  0x89   : > { %v307_v19 = vpop.permute.xlu0 %306 }
  0xde   : > { %v413_v18 = vpop.f32.mrf.mxu0 }
  0xdf   : > { %v414_v21 = vadd.f32 %v413_v18, %v307_v19  ;;  %v484_v23 = vpop.f32.mrf.mxu1 }
  0xe0   : > { %v415_v20 = vpop.f32.mrf.mxu0  ;;  %v485_v26 = vadd.f32 %v484_v23, %v307_v19 }
  0xe1   : > { %v416_v22 = vadd.f32 %v415_v20, %v307_v19  ;;  %v772_v24 = vsel %vm313_vm0, %v414_v21, 0.0  ;;  %v486_v27 = vpop.f32.mrf.mxu1 }
  0xe2   : > { %v775_v0 = vsel %vm313_vm0, %v485_v26, 0.0  ;;  %v487_v29 = vadd.f32 %v486_v27, %v307_v19 }
  0xe3   : > { %v773_v25 = vsel %vm313_vm0, %v416_v22, 0.0 }
  0xe4   : > { %v774_v28 = vadd.f32 %v773_v25, %v772_v24  ;;  %v777_v31 = vsel %vm313_vm0, %v487_v29, 0.0 }
  0xe6   : > { %v776_v30 = vadd.f32 %v775_v0, %v774_v28 }
  0xe8   : > { %v778_v37 = vadd.f32 %v777_v31, %v776_v30 }
  0xee   : > { %v555_v32 = vpop.f32.mrf.mxu0  ;;  %v626_v39 = vpop.f32.mrf.mxu1 }
  0xef   : > { %v556_v33 = vadd.f32 %v555_v32, %v307_v19  ;;  %v627_v41 = vadd.f32 %v626_v39, %v307_v19 }
  0xf0   : > { %v557_v34 = vpop.f32.mrf.mxu0  ;;  %v628_v43 = vpop.f32.mrf.mxu1 }
  0xf1   : > { %v779_v35 = vsel %vm313_vm0, %v556_v33, 0.0  ;;  %v558_v36 = vadd.f32 %v557_v34, %v307_v19  ;;  %v783_v44 = vsel %vm313_vm0, %v627_v41, 0.0  ;;  %v629_v45 = vadd.f32 %v628_v43, %v307_v19 }
  0xf2   : > { %v780_v38 = vadd.f32 %v779_v35, %v778_v37 }
  0xf3   : > { %v781_v40 = vsel %vm313_vm0, %v558_v36, 0.0  ;;  %v785_v49 = vsel %vm313_vm0, %v629_v45, 0.0 }
  0xf4   : > { %v782_v42 = vadd.f32 %v781_v40, %v780_v38 }
  0xf6   : > { %v784_v46 = vadd.f32 %v783_v44, %v782_v42 }
  0xf8   : > { %v786_v51 = vadd.f32 %v785_v49, %v784_v46 }
  0xfe   : > { %v697_v47 = vpop.f32.mrf.mxu0  ;;  %v768_v48 = vpop.f32.mrf.mxu1 }
  0xff   : > { %v698_v50 = vadd.f32 %v697_v47, %v307_v19  ;;  %v769_v55 = vadd.f32 %v768_v48, %v307_v19 }
 0x100   : > { %v699_v52 = vpop.f32.mrf.mxu0  ;;  %v1049_v53 = vpop.f32.mrf.mxu1 }
 0x101   : > { %v787_v54 = vsel %vm313_vm0, %v698_v50, 0.0  ;;  %v700_v56 = vadd.f32 %v699_v52, %v307_v19  ;;  %v792_v60 = vsel %vm791_vm3, %v769_v55, 0.0 }
 0x102   : > { %v788_v57 = vadd.f32 %v787_v54, %v786_v51 }
 0x103   : > { %v789_v58 = vsel %vm313_vm0, %v700_v56, 0.0 }
 0x104   : > { %v790_v59 = vadd.f32 %v789_v58, %v788_v57 }
 0x106   : > { %v793_v61 = vadd.f32 %v792_v60, %v790_v59  ;;  %v878_v59 = vld [vmem:[%s1381_s3] sm:$0x3f] }
 0x108   : > { %794 = vadd.xlane.f32.xlu0 %v793_v61 }
 0x191   : > { %v795_v62 = vpop.xlane.xlu0 %794 }
 0x192   : > { %v796_v63 = vrot.slane %v795_v62, 4 }
 0x194   : > { %v797_v1 = vadd.f32 %v796_v63, %v795_v62 }
 0x196   : > { %v798_v2 = vrot.slane %v797_v1, 2 }
 0x198   : > { %v799_v3 = vadd.f32 %v798_v2, %v797_v1  ;;  %v879_v1 = vld [vmem:[%s1381_s3 + $0x8] sm:$0x3f]  ;;  %v880_v2 = vld [vmem:[%s1381_s3 + $0x10] sm:$0x3f] }
 0x19a   : > { %v800_v4 = vrot.slane %v799_v3, 1 }
 0x19c   : > { %v801_v5 = vadd.f32 %v800_v4, %v799_v3  ;;  %v881_v3 = vld [vmem:[%s1381_s3 + $0x18] sm:$0x3f] }
 0x19e   : > { %1052 = vpush %v801_v5 }
 0x1cf   : > { %s1053_s28 = spop %1052 }
 0x1d0   : > { %s805_s29 = smul.f32 0.00012860082, %s1053_s28 }
 0x1d2   : > { %v806_v6 = vstv %s805_s29 }
 0x1d3   : > { %v807_v7 = vsub.f32 %v414_v21, %v806_v6  ;;  %v808_v8 = vsub.f32 %v416_v22, %v806_v6  ;;  %v809_v9 = vsub.f32 %v485_v26, %v806_v6  ;;  %v810_v10 = vsub.f32 %v487_v29, %v806_v6 }
 0x1d4   : > { %v1283_v12 = vsub.f32 %v556_v33, %v806_v6  ;;  %v812_v15 = vsub.f32 %v558_v36, %v806_v6  ;;  %v813_v20 = vsub.f32 %v627_v41, %v806_v6  ;;  %v814_v24 = vsub.f32 %v629_v45, %v806_v6 }
 0x1d5   : > { %v818_v11 = vmul.f32 %v807_v7, %v807_v7  ;;  %v819_v13 = vmul.f32 %v808_v8, %v808_v8  ;;  %v820_v14 = vmul.f32 %v809_v9, %v809_v9  ;;  %v821_v16 = vmul.f32 %v810_v10, %v810_v10 }
 0x1d6   : > { %v822_v23 = vmul.f32 %v1283_v12, %v1283_v12  ;;  %v823_v25 = vmul.f32 %v812_v15, %v812_v15  ;;  %v815_v28 = vsub.f32 %v698_v50, %v806_v6  ;;  %v824_v0 = vmul.f32 %v813_v20, %v813_v20 }
 0x1d7   : > { %v829_v17 = vsel %vm313_vm0, %v818_v11, 0.0  ;;  %v830_v18 = vsel %vm313_vm0, %v819_v13, 0.0  ;;  %v832_v21 = vsel %vm313_vm0, %v820_v14, 0.0  ;;  %v834_v26 = vsel %vm313_vm0, %v821_v16, 0.0  ;;  %v901_v11 = vld [vmem:[%s1382_s4 + $0x8] sm:$0x3f] }
 0x1d8   : > { %v831_v19 = vadd.f32 %v830_v18, %v829_v17  ;;  %v836_v29 = vsel %vm313_vm0, %v822_v23, 0.0  ;;  %v816_v32 = vsub.f32 %v700_v56, %v806_v6  ;;  %v825_v31 = vmul.f32 %v814_v24, %v814_v24  ;;  %v884_v13 = vld [vmem:[%s1381_s3 + $0x30] sm:$0x3f]  ;;  %v903_v23 = vld [vmem:[%s1382_s4 + $0x18] sm:$0x3f] }
 0x1d9   : > { %v838_v33 = vsel %vm313_vm0, %v823_v25, 0.0  ;;  %v1293_v35 = vsub.f32 %v769_v55, %v806_v6  ;;  %v826_v36 = vmul.f32 %v815_v28, %v815_v28  ;;  %v840_v37 = vsel %vm313_vm0, %v824_v0, 0.0  ;;  %v882_v6 = vld [vmem:[%s1381_s3 + $0x20] sm:$0x3f]  ;;  %v902_v17 = vld [vmem:[%s1382_s4 + $0x10] sm:$0x3f] }
 0x1da   : > { %v833_v22 = vadd.f32 %v832_v21, %v831_v19  ;;  %v827_v39 = vmul.f32 %v816_v32, %v816_v32  ;;  %v842_v40 = vsel %vm313_vm0, %v825_v31, 0.0  ;;  %v885_v19 = vld [vmem:[%s1381_s3 + $0x38] sm:$0x3f]  ;;  %v904_v25 = vld [vmem:[%s1382_s4 + $0x20] sm:$0x3f] }
 0x1db   : > { %v828_v42 = vmul.f32 %v1293_v35, %v1293_v35  ;;  %v844_v43 = vsel %vm313_vm0, %v826_v36, 0.0  ;;  %v887_v0 = vld [vmem:[%s1381_s3 + $0x48] sm:$0x3f]  ;;  %v888_v31 = vld [vmem:[%s1381_s3 + $0x50] sm:$0x3f] }
 0x1dc   : > { %v835_v27 = vadd.f32 %v834_v26, %v833_v22  ;;  %v846_v45 = vsel %vm313_vm0, %v827_v39, 0.0  ;;  %v886_v22 = vld [vmem:[%s1381_s3 + $0x40] sm:$0x3f] }
 0x1dd   : > { %v848_v47 = vsel %vm791_vm3, %v828_v42, 0.0 }
 0x1de   : > { %v837_v30 = vadd.f32 %v836_v29, %v835_v27 }
 0x1e0   : > { %v839_v34 = vadd.f32 %v838_v33, %v837_v30  ;;  %v905_v30 = vld [vmem:[%s1382_s4 + $0x28] sm:$0x3f] }
 0x1e2   : > { %v841_v38 = vadd.f32 %v840_v37, %v839_v34  ;;  %v906_v34 = vld [vmem:[%s1382_s4 + $0x30] sm:$0x3f]  ;;  %v907_v37 = vld [vmem:[%s1382_s4 + $0x38] sm:$0x3f] }
 0x1e4   : > { %v843_v41 = vadd.f32 %v842_v40, %v841_v38  ;;  %v908_v40 = vld [vmem:[%s1382_s4 + $0x40] sm:$0x3f] }
 0x1e6   : > { %v845_v44 = vadd.f32 %v844_v43, %v843_v41  ;;  %v909_v43 = vld [vmem:[%s1382_s4 + $0x48] sm:$0x3f] }
 0x1e8   : > { %v847_v46 = vadd.f32 %v846_v45, %v845_v44  ;;  %v910_v45 = vld [vmem:[%s1382_s4 + $0x50] sm:$0x3f] }
 0x1ea   : > { %v849_v48 = vadd.f32 %v848_v47, %v847_v46 }
 0x1ec   : > { %850 = vadd.xlane.f32.xlu1 %v849_v48 }
 0x275   : > { %v851_v49 = vpop.xlane.xlu1 %850 }
 0x276   : > { %v852_v50 = vrot.slane %v851_v49, 4 }
 0x278   : > { %v853_v51 = vadd.f32 %v852_v50, %v851_v49 }
 0x27a   : > { %v854_v52 = vrot.slane %v853_v51, 2 }
 0x27c   : > { %v855_v53 = vadd.f32 %v854_v52, %v853_v51 }
 0x27e   : > { %v856_v54 = vrot.slane %v855_v53, 1 }
 0x280   : > { %v857_v55 = vadd.f32 %v856_v54, %v855_v53 }
 0x282   : > { %1054 = vpush %v857_v55 }
 0x2b3   : > { %s1055_s30 = spop %1054 }
 0x2b4   : > { %s861_s6 = smul.f32 0.00012860082, %s1055_s30 }
 0x2b6   : > { %s862_s7 = sadd.f32 1e-05, %s861_s6 }
 0x2b8   : > { %v863_v56 = vstv %s862_s7  ;;  %s1051_s7 = smul.u32 88, %s1385_s19 }
 0x2b9   : > { %1070 = vrsqrt.f32 %v863_v56 }
 0x2ba   : > { %s224_s10 = scalar_lea.vmem %s1383_s5, %s1051_s7 }
 0x2c6   : > { %v1071_v57 = vpop.eup %1070 }
 0x2c7   : > { %1056 = vpush %v1071_v57 }
 0x2f8   : > { %s1057_s8 = spop %1056 }
 0x2f9   : > { %v866_v58 = vstv %s1057_s8 }
 0x2fa   : > { %v867_v60 = vmul.f32 %v866_v58, %v807_v7  ;;  %v868_v61 = vmul.f32 %v866_v58, %v808_v8  ;;  %v869_v62 = vmul.f32 %v866_v58, %v809_v9  ;;  %v870_v63 = vmul.f32 %v866_v58, %v810_v10  ;;  %v883_v8 = vld [vmem:[%s1381_s3 + $0x28] sm:$0x3f]  ;;  %v900_v10 = vld [vmem:[%s1382_s4] sm:$0x3f] }
 0x2fb   : > { %v871_v4 = vmul.f32 %v866_v58, %v1283_v12  ;;  %v872_v5 = vmul.f32 %v866_v58, %v812_v15  ;;  %v873_v7 = vmul.f32 %v866_v58, %v813_v20  ;;  %v874_v12 = vmul.f32 %v866_v58, %v814_v24 }
 0x2fc   : > { %v889_v9 = vmul.f32 %v878_v59, %v867_v60  ;;  %v890_v14 = vmul.f32 %v879_v1, %v868_v61  ;;  %v891_v15 = vmul.f32 %v880_v2, %v869_v62  ;;  %v892_v16 = vmul.f32 %v881_v3, %v870_v63 }
 0x2fd   : > { %v875_v18 = vmul.f32 %v866_v58, %v815_v28  ;;  %v893_v20 = vmul.f32 %v882_v6, %v871_v4  ;;  %v876_v21 = vmul.f32 %v866_v58, %v816_v32  ;;  %v894_v24 = vmul.f32 %v883_v8, %v872_v5 }
 0x2fe   : > { %v911_v26 = vadd.f32 %v900_v10, %v889_v9  ;;  %v912_v27 = vadd.f32 %v901_v11, %v890_v14  ;;  %v877_v28 = vmul.f32 %v866_v58, %v1293_v35  ;;  %v895_v29 = vmul.f32 %v884_v13, %v873_v7 }
 0x2ff   : > { %v913_v32 = vadd.f32 %v902_v17, %v891_v15  ;;  %v896_v33 = vmul.f32 %v885_v19, %v874_v12  ;;  %v914_v35 = vadd.f32 %v903_v23, %v892_v16  ;;  %v897_v36 = vmul.f32 %v886_v22, %v875_v18 }
 0x300   : > { %v915_v38 = vadd.f32 %v904_v25, %v893_v20  ;;  %1072 = vtanh.f32 %v911_v26  ;;  %v898_v39 = vmul.f32 %v887_v0, %v876_v21  ;;  %v916_v41 = vadd.f32 %v905_v30, %v894_v24 }
 0x301   : > { %1074 = vtanh.f32 %v912_v27  ;;  %v899_v42 = vmul.f32 %v888_v31, %v877_v28  ;;  %v917_v44 = vadd.f32 %v906_v34, %v895_v29  ;;  %v918_v46 = vadd.f32 %v907_v37, %v896_v33 }
 0x302   : > { %1076 = vtanh.f32 %v913_v32  ;;  %v919_v47 = vadd.f32 %v908_v40, %v897_v36  ;;  %v920_v48 = vadd.f32 %v909_v43, %v898_v39 }
 0x303   : > { %1078 = vtanh.f32 %v914_v35  ;;  %v921_v49 = vadd.f32 %v910_v45, %v899_v42 }
 0x304   : > { %1080 = vtanh.f32 %v915_v38 }
 0x305   : > { %1082 = vtanh.f32 %v916_v41 }
 0x306   : > { %1084 = vtanh.f32 %v917_v44 }
 0x307   : > { %1086 = vtanh.f32 %v918_v46 }
 0x308   : > { %1088 = vtanh.f32 %v919_v47 }
 0x309   : > { %1090 = vtanh.f32 %v920_v48 }
 0x30a   : > { %1092 = vtanh.f32 %v921_v49 }
 0x30d   : > { %v1073_v50 = vpop.eup %1072 }
 0x30e   : > { %v1075_v51 = vpop.eup %1074  ;;  %933 = vst [vmem:[%s224_s10] sm:$0x3f] %v1073_v50 }
 0x30f   : > { %v1077_v52 = vpop.eup %1076  ;;  %934 = vst [vmem:[%s224_s10 + $0x8] sm:$0x3f] %v1075_v51 }
 0x310   : > { %v1079_v53 = vpop.eup %1078  ;;  %935 = vst [vmem:[%s224_s10 + $0x10] sm:$0x3f] %v1077_v52 }
 0x311   : > { %v1081_v54 = vpop.eup %1080  ;;  %936 = vst [vmem:[%s224_s10 + $0x18] sm:$0x3f] %v1079_v53 }
 0x312   : > { %v1083_v55 = vpop.eup %1082  ;;  %937 = vst [vmem:[%s224_s10 + $0x20] sm:$0x3f] %v1081_v54 }
 0x313   : > { %v1085_v56 = vpop.eup %1084  ;;  %938 = vst [vmem:[%s224_s10 + $0x28] sm:$0x3f] %v1083_v55 }
 0x314   : > { %v1087_v57 = vpop.eup %1086  ;;  %939 = vst [vmem:[%s224_s10 + $0x30] sm:$0x3f] %v1085_v56 }
 0x315   : > { %v1089_v58 = vpop.eup %1088  ;;  %940 = vst [vmem:[%s224_s10 + $0x38] sm:$0x3f] %v1087_v57 }
 0x316   : > { %v1091_v59 = vpop.eup %1090  ;;  %941 = vst [vmem:[%s224_s10 + $0x40] sm:$0x3f] %v1089_v58 }
 0x317   : > { %v1093_v60 = vpop.eup %1092  ;;  %942 = vst [vmem:[%s224_s10 + $0x48] sm:$0x3f] %v1091_v59 }
 0x318   : > { %943 = vst.msk [vmem:[%s224_s10 + $0x50] sm:$0x3f] %vm791_vm3, %v1093_v60 }
 0x319 PF: > { %s15_s18 = sadd.s32 1, %s1100_s18  }
 0x31a   : > { %p12_p4 = scmp.ge.s32.totalorder %s15_s18, 6  }
 0x31c   :  { %14 = sbr.rel (!%p12_p4) target bundleno = 1 (0x1), region = 70 }

</bundles_post_ra>
